<compile_context>
chip_gen: v5e
topology: v5e:2x2
jax: 0.10.0
libtpu: 0.0.40
codegen_flags: <defaults>
</compile_context>

<pallas_src>
import functools

import jax
import jax.numpy as jnp
from jax.experimental import pallas as pl
from jax.experimental.pallas import tpu as pltpu

NUM_LAYERS = 4
GN_EPS = 1e-5


def _shift_taps(xb):
    """x[:, t-1] and x[:, t+1] with Conv1d zero padding at the boundaries.

    Built with a single zero lane-column concat each (boundary zeroing for
    free, no mask compares, no negative-shift roll)."""
    zero_col = jnp.zeros((xb.shape[0], 1), xb.dtype)
    x_m1 = jnp.concatenate([zero_col, xb[:, :-1]], axis=1)   # x_m1[:, t] = x[:, t-1]
    x_p1 = jnp.concatenate([xb[:, 1:], zero_col], axis=1)    # x_p1[:, t] = x[:, t+1]
    return x_m1, x_p1


def _conv_relu_gn(x, w, aux):
    """Conv1d(k=3, pad=1) -> ReLU -> GroupNorm(1, C) on one (Cin, T) slab.

    x   : (Cin, T)       activations (f32; bf16 for the first layer)
    w   : (3, Cout, Cin) bf16 conv taps
    aux : (Cout, 3)      f32  [conv_bias | gn_weight | gn_bias]
    """
    T = x.shape[-1]
    cout = w.shape[1]
    xb = x.astype(jnp.bfloat16)                     # bf16 only on the MXU path
    x_m1, x_p1 = _shift_taps(xb)

    # Three summed K=Cin dots instead of one dot against a (3*Cin, T) concat.
    y = (jnp.dot(w[0], x_m1, preferred_element_type=jnp.float32)
         + jnp.dot(w[1], xb, preferred_element_type=jnp.float32)
         + jnp.dot(w[2], x_p1, preferred_element_type=jnp.float32))

    bias = aux[:, 0:1]                              # (Cout, 1) f32
    gn_w = aux[:, 1:2]
    gn_b = aux[:, 2:3]
    y = jnp.maximum(y + bias, 0.0)                  # conv bias + ReLU

    # One-pass GroupNorm(num_groups=1) stats over the whole (Cout, T) slab.
    inv_n = 1.0 / (cout * T)
    mean = jnp.sum(y) * inv_n
    var = jnp.maximum(jnp.sum(y * y) * inv_n - mean * mean, 0.0)   # clamp >= 0
    scale = gn_w * jax.lax.rsqrt(var + GN_EPS)      # affine folded into the norm
    shift = gn_b - mean * scale
    return y * scale + shift                        # Dropout == identity (eval)


def posterior_encoder_kernel(mel_ref, eps_ref,
                             w0_ref, a0_ref, w1_ref, a1_ref,
                             w2_ref, a2_ref, w3_ref, a3_ref,
                             pw_ref, pb_ref, out_ref, *, z_dim):
    block_b = mel_ref.shape[0]

    # Params loaded once per grid step and reused for every batch element.
    layer_w = (w0_ref[...], w1_ref[...], w2_ref[...], w3_ref[...])
    layer_a = (a0_ref[...], a1_ref[...], a2_ref[...], a3_ref[...])
    pw = pw_ref[...]                                # (2*z_dim, hidden) bf16
    pb = pb_ref[...]                                # (2*z_dim, 1)      f32

    for b in range(block_b):                        # small static unroll
        h = mel_ref[b]                              # (mel_dim, T) bf16
        for w, aux in zip(layer_w, layer_a):
            h = _conv_relu_gn(h, w, aux)

        # proj: Conv1d(hidden, 2*z_dim, kernel_size=1) == channel matmul.
        stats = jnp.dot(pw, h.astype(jnp.bfloat16),
                        preferred_element_type=jnp.float32) + pb    # (2*z_dim, T)
        mu = stats[:z_dim]
        logvar = stats[z_dim:]
        z = mu + jnp.exp(0.5 * logvar) * eps_ref[b]                  # reparameterize

        # Two aligned sublane-slice stores (no materialized output concat).
        out_ref[b, :2 * z_dim, :] = stats
        out_ref[b, 2 * z_dim:, :] = z


def init_params(key, mel_dim, hidden, z_dim, num_layers=NUM_LAYERS, ksize=3):
    """Deterministic synthetic parameters, pre-packed for the (C, T) layout."""
    params = {}
    keys = jax.random.split(key, num_layers * 4 + 2)
    in_ch = mel_dim
    ki = 0
    for l in range(num_layers):
        conv_w = 0.1 * jax.random.normal(keys[ki], (hidden, in_ch, ksize), jnp.float32); ki += 1
        conv_b = 0.1 * jax.random.normal(keys[ki], (hidden,), jnp.float32); ki += 1
        gn_w = 1.0 + 0.1 * jax.random.normal(keys[ki], (hidden,), jnp.float32); ki += 1
        gn_b = 0.1 * jax.random.normal(keys[ki], (hidden,), jnp.float32); ki += 1
        params[f"w{l}"] = jnp.transpose(conv_w, (2, 0, 1))            # (3, hidden, in_ch)
        params[f"aux{l}"] = jnp.stack([conv_b, gn_w, gn_b], axis=1)   # (hidden, 3)
        in_ch = hidden
    proj_w = 0.1 * jax.random.normal(keys[ki], (2 * z_dim, hidden), jnp.float32); ki += 1
    proj_b = 0.1 * jax.random.normal(keys[ki], (2 * z_dim,), jnp.float32); ki += 1
    params["proj_w"] = proj_w                                          # (2*z_dim, hidden)
    params["proj_b"] = proj_b[:, None]                                 # (2*z_dim, 1)
    return params


def _pick_block_b(B, T, target_lane_cols=2048, max_block_b=8):
    """Batch elements per grid step: amortize per-step overhead, keep the
    static unroll small and B % block_b == 0."""
    bb = max(1, min(B, max_block_b, max(1, target_lane_cols // max(T, 1))))
    while B % bb:
        bb -= 1
    return bb


def posterior_encoder(mel, eps, params, block_b=None):
    """mel: (B, mel_dim, T) (PyTorch NCT layout, no wrapper transpose of mel),
    eps: (B, z_dim, T) standard-normal noise (== torch.randn_like(mu)).
    Returns (mu, logvar, z_ac), each (B, T, z_dim)."""
    B, mel_dim, T = mel.shape
    z_dim = params["proj_w"].shape[0] // 2
    if block_b is None:
        block_b = _pick_block_b(B, T)
    assert B % block_b == 0

    # Host-side pre-cast of MXU weights to bf16 (done once, outside the kernel);
    # mel streamed in bf16 halves HBM->VMEM traffic, eps stays f32.
    mel_bf16 = mel.astype(jnp.bfloat16)
    eps_f32 = eps.astype(jnp.float32)
    layer_args = []
    for l in range(NUM_LAYERS):
        layer_args += [params[f"w{l}"].astype(jnp.bfloat16), params[f"aux{l}"]]
    proj_w = params["proj_w"].astype(jnp.bfloat16)
    proj_b = params["proj_b"]

    def batch_map(i):
        return (i, 0, 0)

    param_specs = [pl.BlockSpec(a.shape, lambda i, n=a.ndim: (0,) * n)
                   for a in layer_args + [proj_w, proj_b]]
    in_specs = ([pl.BlockSpec((block_b, mel_dim, T), batch_map),
                 pl.BlockSpec((block_b, z_dim, T), batch_map)]
                + param_specs)

    kernel = functools.partial(posterior_encoder_kernel, z_dim=z_dim)

    packed = pl.pallas_call(
        kernel,
        out_shape=jax.ShapeDtypeStruct((B, 3 * z_dim, T), jnp.float32),
        grid_spec=pltpu.PrefetchScalarGridSpec(
            num_scalar_prefetch=0,
            grid=(B // block_b,),
            in_specs=in_specs,
            out_specs=pl.BlockSpec((block_b, 3 * z_dim, T), batch_map),
        ),
        compiler_params=pltpu.CompilerParams(
            dimension_semantics=("parallel",),   # shards batch blocks over v7x's 2 TCs
            vmem_limit_bytes=32 * 1024 * 1024,
        ),
    )(mel_bf16, eps_f32, *layer_args, proj_w, proj_b)

    # TODO(synk): downstream consumers should take the packed lane-dense
    # (B, 3*z_dim, T) NCT output directly; this transpose + split only exists
    # to match the PyTorch module's (B, T, z_dim) return signature.
    out = jnp.transpose(packed, (0, 2, 1))               # (B, T, 3*z_dim), small
    mu = out[..., :z_dim]
    logvar = out[..., z_dim:2 * z_dim]
    z_ac = out[..., 2 * z_dim:]
    return mu, logvar, z_ac


def reference(mel, eps, params):
    """Pure-JAX f32 reference with PyTorch semantics (for the sanity check)."""
    B, mel_dim, T = mel.shape
    z_dim = params["proj_w"].shape[0] // 2
    h = mel.astype(jnp.float32)                            # (B, C, T)
    for l in range(NUM_LAYERS):
        w = params[f"w{l}"]                                # (3, Cout, Cin)
        aux = params[f"aux{l}"]
        b, gw, gb = aux[:, 0], aux[:, 1], aux[:, 2]
        hp = jnp.pad(h, ((0, 0), (0, 0), (1, 1)))
        y = (jnp.einsum('oc,bct->bot', w[0], hp[:, :, 0:T])
             + jnp.einsum('oc,bct->bot', w[1], hp[:, :, 1:T + 1])
             + jnp.einsum('oc,bct->bot', w[2], hp[:, :, 2:T + 2])
             + b[None, :, None])
        y = jnp.maximum(y, 0.0)
        mean = jnp.mean(y, axis=(1, 2), keepdims=True)
        var = jnp.mean((y - mean) ** 2, axis=(1, 2), keepdims=True)
        h = (y - mean) / jnp.sqrt(var + GN_EPS) * gw[None, :, None] + gb[None, :, None]
    stats = jnp.einsum('oc,bct->bot', params["proj_w"], h) + params["proj_b"][None, :, :]
    mu = jnp.transpose(stats[:, :z_dim, :], (0, 2, 1))
    logvar = jnp.transpose(stats[:, z_dim:, :], (0, 2, 1))
    eps_t = jnp.transpose(eps, (0, 2, 1))
    z_ac = mu + jnp.exp(0.5 * logvar) * eps_t
    return mu, logvar, z_ac


if __name__ == "__main__":
    B, mel_dim, T = 2, 16, 128          # T multiple of 128: lane-dense slabs
    hidden, z_dim = 32, 8

    root = jax.random.PRNGKey(0)
    k_params, k_mel, k_eps = jax.random.split(root, 3)

    params = init_params(k_params, mel_dim, hidden, z_dim)
    mel = jax.random.normal(k_mel, (B, mel_dim, T), jnp.float32)
    eps = jax.random.normal(k_eps, (B, z_dim, T), jnp.float32)   # randn_like(mu), NCT layout

    mu, logvar, z_ac = posterior_encoder(mel, eps, params)
    jax.block_until_ready((mu, logvar, z_ac))

    mu_r, logvar_r, z_r = reference(mel, eps, params)
    assert mu.shape == (B, T, z_dim)
    assert logvar.shape == (B, T, z_dim)
    assert z_ac.shape == (B, T, z_dim)
    assert jnp.allclose(mu, mu_r, atol=5e-2, rtol=5e-2)
    assert jnp.allclose(logvar, logvar_r, atol=5e-2, rtol=5e-2)
    assert jnp.allclose(z_ac, z_r, atol=5e-2, rtol=5e-2)

    print("KERNEL_OK")
</pallas_src>

<mosaic_0001>
module attributes {stable_mosaic.version = 11 : i64} {
  func.func @posterior_encoder_kernel(%arg0: i32, %arg1: memref<2x16x128xbf16, #tpu.memory_space<vmem>>, %arg2: memref<2x8x128xf32, #tpu.memory_space<vmem>>, %arg3: memref<3x32x16xbf16, #tpu.memory_space<vmem>>, %arg4: memref<32x3xf32, #tpu.memory_space<vmem>>, %arg5: memref<3x32x32xbf16, #tpu.memory_space<vmem>>, %arg6: memref<32x3xf32, #tpu.memory_space<vmem>>, %arg7: memref<3x32x32xbf16, #tpu.memory_space<vmem>>, %arg8: memref<32x3xf32, #tpu.memory_space<vmem>>, %arg9: memref<3x32x32xbf16, #tpu.memory_space<vmem>>, %arg10: memref<32x3xf32, #tpu.memory_space<vmem>>, %arg11: memref<16x32xbf16, #tpu.memory_space<vmem>>, %arg12: memref<16x1xf32, #tpu.memory_space<vmem>>, %arg13: memref<2x24x128xf32, #tpu.memory_space<vmem>>) attributes {dimension_semantics = [#tpu.dimension_semantics<parallel>], iteration_bounds = array<i64: 1>, scalar_prefetch = 0 : i64, scratch_operands = 0 : i64, tpu.core_type = #tpu.core_type<tc>, window_params = [{transform_indices = @transform_0, window_bounds = array<i64: 2, 16, 128>}, {transform_indices = @transform_1, window_bounds = array<i64: 2, 8, 128>}, {pipeline_mode = #tpu.pipeline_mode<synchronous>, transform_indices = @transform_2, window_bounds = array<i64: 3, 32, 16>}, {pipeline_mode = #tpu.pipeline_mode<synchronous>, transform_indices = @transform_3, window_bounds = array<i64: 32, 3>}, {pipeline_mode = #tpu.pipeline_mode<synchronous>, transform_indices = @transform_4, window_bounds = array<i64: 3, 32, 32>}, {pipeline_mode = #tpu.pipeline_mode<synchronous>, transform_indices = @transform_5, window_bounds = array<i64: 32, 3>}, {pipeline_mode = #tpu.pipeline_mode<synchronous>, transform_indices = @transform_6, window_bounds = array<i64: 3, 32, 32>}, {pipeline_mode = #tpu.pipeline_mode<synchronous>, transform_indices = @transform_7, window_bounds = array<i64: 32, 3>}, {pipeline_mode = #tpu.pipeline_mode<synchronous>, transform_indices = @transform_8, window_bounds = array<i64: 3, 32, 32>}, {pipeline_mode = #tpu.pipeline_mode<synchronous>, transform_indices = @transform_9, window_bounds = array<i64: 32, 3>}, {pipeline_mode = #tpu.pipeline_mode<synchronous>, transform_indices = @transform_10, window_bounds = array<i64: 16, 32>}, {pipeline_mode = #tpu.pipeline_mode<synchronous>, transform_indices = @transform_11, window_bounds = array<i64: 16, 1>}, {transform_indices = @transform_12, window_bounds = array<i64: 2, 24, 128>}]} {
    %c0 = arith.constant 0 : index
    %c0_0 = arith.constant 0 : index
    %c0_1 = arith.constant 0 : index
    %0 = vector.load %arg3[%c0, %c0_0, %c0_1] : memref<3x32x16xbf16, #tpu.memory_space<vmem>>, vector<3x32x16xbf16>
    %c0_2 = arith.constant 0 : index
    %c0_3 = arith.constant 0 : index
    %c0_4 = arith.constant 0 : index
    %1 = vector.load %arg5[%c0_2, %c0_3, %c0_4] : memref<3x32x32xbf16, #tpu.memory_space<vmem>>, vector<3x32x32xbf16>
    %c0_5 = arith.constant 0 : index
    %c0_6 = arith.constant 0 : index
    %c0_7 = arith.constant 0 : index
    %2 = vector.load %arg7[%c0_5, %c0_6, %c0_7] : memref<3x32x32xbf16, #tpu.memory_space<vmem>>, vector<3x32x32xbf16>
    %c0_8 = arith.constant 0 : index
    %c0_9 = arith.constant 0 : index
    %c0_10 = arith.constant 0 : index
    %3 = vector.load %arg9[%c0_8, %c0_9, %c0_10] : memref<3x32x32xbf16, #tpu.memory_space<vmem>>, vector<3x32x32xbf16>
    %c0_11 = arith.constant 0 : index
    %c0_12 = arith.constant 0 : index
    %4 = vector.load %arg4[%c0_11, %c0_12] : memref<32x3xf32, #tpu.memory_space<vmem>>, vector<32x3xf32>
    %c0_13 = arith.constant 0 : index
    %c0_14 = arith.constant 0 : index
    %5 = vector.load %arg6[%c0_13, %c0_14] : memref<32x3xf32, #tpu.memory_space<vmem>>, vector<32x3xf32>
    %c0_15 = arith.constant 0 : index
    %c0_16 = arith.constant 0 : index
    %6 = vector.load %arg8[%c0_15, %c0_16] : memref<32x3xf32, #tpu.memory_space<vmem>>, vector<32x3xf32>
    %c0_17 = arith.constant 0 : index
    %c0_18 = arith.constant 0 : index
    %7 = vector.load %arg10[%c0_17, %c0_18] : memref<32x3xf32, #tpu.memory_space<vmem>>, vector<32x3xf32>
    %c0_19 = arith.constant 0 : index
    %c0_20 = arith.constant 0 : index
    %8 = vector.load %arg11[%c0_19, %c0_20] : memref<16x32xbf16, #tpu.memory_space<vmem>>, vector<16x32xbf16>
    %c0_21 = arith.constant 0 : index
    %c0_22 = arith.constant 0 : index
    %9 = vector.load %arg12[%c0_21, %c0_22] : memref<16x1xf32, #tpu.memory_space<vmem>>, vector<16x1xf32>
    %c0_23 = arith.constant 0 : index
    %c0_24 = arith.constant 0 : index
    %c0_25 = arith.constant 0 : index
    %10 = vector.load %arg1[%c0_23, %c0_24, %c0_25] : memref<2x16x128xbf16, #tpu.memory_space<vmem>>, vector<1x16x128xbf16>
    %11 = vector.shape_cast %10 : vector<1x16x128xbf16> to vector<16x128xbf16>
    %cst = arith.constant 0.000000e+00 : bf16
    %12 = vector.broadcast %cst : bf16 to vector<16x1xbf16>
    %13 = vector.extract_strided_slice %11 {offsets = [0, 0], sizes = [16, 127], strides = [1, 1]} : vector<16x128xbf16> to vector<16x127xbf16>
    %14 = tpu.concatenate %12, %13 in 1 : vector<16x1xbf16>, vector<16x127xbf16> -> vector<16x128xbf16>
    %15 = vector.extract_strided_slice %11 {offsets = [0, 1], sizes = [16, 127], strides = [1, 1]} : vector<16x128xbf16> to vector<16x127xbf16>
    %16 = tpu.concatenate %15, %12 in 1 : vector<16x127xbf16>, vector<16x1xbf16> -> vector<16x128xbf16>
    %17 = vector.extract_strided_slice %0 {offsets = [0, 0, 0], sizes = [1, 32, 16], strides = [1, 1, 1]} : vector<3x32x16xbf16> to vector<1x32x16xbf16>
    %18 = vector.shape_cast %17 : vector<1x32x16xbf16> to vector<32x16xbf16>
    %cst_26 = arith.constant dense<0.000000e+00> : vector<32x128xf32>
    %19 = tpu.matmul %18, %14, %cst_26 {dimension_numbers = #tpu.dot_dimension_numbers<[1], [0], [0], [1], [0, 0, 1, 1], [], []>} : vector<32x16xbf16>, vector<16x128xbf16>, vector<32x128xf32> -> vector<32x128xf32>
    %20 = vector.extract_strided_slice %0 {offsets = [1, 0, 0], sizes = [1, 32, 16], strides = [1, 1, 1]} : vector<3x32x16xbf16> to vector<1x32x16xbf16>
    %21 = vector.shape_cast %20 : vector<1x32x16xbf16> to vector<32x16xbf16>
    %cst_27 = arith.constant dense<0.000000e+00> : vector<32x128xf32>
    %22 = tpu.matmul %21, %11, %cst_27 {dimension_numbers = #tpu.dot_dimension_numbers<[1], [0], [0], [1], [0, 0, 1, 1], [], []>} : vector<32x16xbf16>, vector<16x128xbf16>, vector<32x128xf32> -> vector<32x128xf32>
    %23 = arith.addf %19, %22 : vector<32x128xf32>
    %24 = vector.extract_strided_slice %0 {offsets = [2, 0, 0], sizes = [1, 32, 16], strides = [1, 1, 1]} : vector<3x32x16xbf16> to vector<1x32x16xbf16>
    %25 = vector.shape_cast %24 : vector<1x32x16xbf16> to vector<32x16xbf16>
    %cst_28 = arith.constant dense<0.000000e+00> : vector<32x128xf32>
    %26 = tpu.matmul %25, %16, %cst_28 {dimension_numbers = #tpu.dot_dimension_numbers<[1], [0], [0], [1], [0, 0, 1, 1], [], []>} : vector<32x16xbf16>, vector<16x128xbf16>, vector<32x128xf32> -> vector<32x128xf32>
    %27 = arith.addf %23, %26 : vector<32x128xf32>
    %28 = vector.extract_strided_slice %4 {offsets = [0, 0], sizes = [32, 1], strides = [1, 1]} : vector<32x3xf32> to vector<32x1xf32>
    %29 = vector.extract_strided_slice %4 {offsets = [0, 1], sizes = [32, 1], strides = [1, 1]} : vector<32x3xf32> to vector<32x1xf32>
    %30 = vector.extract_strided_slice %4 {offsets = [0, 2], sizes = [32, 1], strides = [1, 1]} : vector<32x3xf32> to vector<32x1xf32>
    %31 = vector.broadcast %28 : vector<32x1xf32> to vector<32x128xf32>
    %32 = arith.addf %27, %31 : vector<32x128xf32>
    %cst_29 = arith.constant 0.000000e+00 : f32
    %33 = vector.broadcast %cst_29 : f32 to vector<32x128xf32>
    %34 = arith.maximumf %32, %33 : vector<32x128xf32>
    %35 = vector.shape_cast %34 : vector<32x128xf32> to vector<1x32x128xf32>
    %cst_30 = arith.constant dense<0.000000e+00> : vector<1xf32>
    %36 = vector.multi_reduction <add>, %35, %cst_30 [1, 2] : vector<1x32x128xf32> to vector<1xf32>
    %37 = vector.shape_cast %36 : vector<1xf32> to vector<1x1x1xf32>
    %38 = vector.extract %37[0, 0, 0] : f32 from vector<1x1x1xf32>
    %cst_31 = arith.constant 2.44140625E-4 : f32
    %39 = arith.mulf %38, %cst_31 : f32
    %40 = arith.mulf %34, %34 : vector<32x128xf32>
    %41 = vector.shape_cast %40 : vector<32x128xf32> to vector<1x32x128xf32>
    %cst_32 = arith.constant dense<0.000000e+00> : vector<1xf32>
    %42 = vector.multi_reduction <add>, %41, %cst_32 [1, 2] : vector<1x32x128xf32> to vector<1xf32>
    %43 = vector.shape_cast %42 : vector<1xf32> to vector<1x1x1xf32>
    %44 = vector.extract %43[0, 0, 0] : f32 from vector<1x1x1xf32>
    %cst_33 = arith.constant 2.44140625E-4 : f32
    %45 = arith.mulf %44, %cst_33 : f32
    %46 = arith.mulf %39, %39 : f32
    %47 = arith.subf %45, %46 : f32
    %cst_34 = arith.constant 0.000000e+00 : f32
    %48 = arith.maximumf %47, %cst_34 : f32
    %cst_35 = arith.constant 9.99999974E-6 : f32
    %49 = arith.addf %48, %cst_35 : f32
    %50 = math.rsqrt %49 : f32
    %51 = vector.broadcast %50 : f32 to vector<32x1xf32>
    %52 = arith.mulf %29, %51 : vector<32x1xf32>
    %53 = vector.broadcast %39 : f32 to vector<32x1xf32>
    %54 = arith.mulf %53, %52 : vector<32x1xf32>
    %55 = arith.subf %30, %54 : vector<32x1xf32>
    %56 = vector.broadcast %52 : vector<32x1xf32> to vector<32x128xf32>
    %57 = arith.mulf %34, %56 : vector<32x128xf32>
    %58 = vector.broadcast %55 : vector<32x1xf32> to vector<32x128xf32>
    %59 = arith.addf %57, %58 : vector<32x128xf32>
    %60 = arith.truncf %59 : vector<32x128xf32> to vector<32x128xbf16>
    %cst_36 = arith.constant 0.000000e+00 : bf16
    %61 = vector.broadcast %cst_36 : bf16 to vector<32x1xbf16>
    %62 = vector.extract_strided_slice %60 {offsets = [0, 0], sizes = [32, 127], strides = [1, 1]} : vector<32x128xbf16> to vector<32x127xbf16>
    %63 = tpu.concatenate %61, %62 in 1 : vector<32x1xbf16>, vector<32x127xbf16> -> vector<32x128xbf16>
    %64 = vector.extract_strided_slice %60 {offsets = [0, 1], sizes = [32, 127], strides = [1, 1]} : vector<32x128xbf16> to vector<32x127xbf16>
    %65 = tpu.concatenate %64, %61 in 1 : vector<32x127xbf16>, vector<32x1xbf16> -> vector<32x128xbf16>
    %66 = vector.extract_strided_slice %1 {offsets = [0, 0, 0], sizes = [1, 32, 32], strides = [1, 1, 1]} : vector<3x32x32xbf16> to vector<1x32x32xbf16>
    %67 = vector.shape_cast %66 : vector<1x32x32xbf16> to vector<32x32xbf16>
    %cst_37 = arith.constant dense<0.000000e+00> : vector<32x128xf32>
    %68 = tpu.matmul %67, %63, %cst_37 {dimension_numbers = #tpu.dot_dimension_numbers<[1], [0], [0], [1], [0, 0, 1, 1], [], []>} : vector<32x32xbf16>, vector<32x128xbf16>, vector<32x128xf32> -> vector<32x128xf32>
    %69 = vector.extract_strided_slice %1 {offsets = [1, 0, 0], sizes = [1, 32, 32], strides = [1, 1, 1]} : vector<3x32x32xbf16> to vector<1x32x32xbf16>
    %70 = vector.shape_cast %69 : vector<1x32x32xbf16> to vector<32x32xbf16>
    %cst_38 = arith.constant dense<0.000000e+00> : vector<32x128xf32>
    %71 = tpu.matmul %70, %60, %cst_38 {dimension_numbers = #tpu.dot_dimension_numbers<[1], [0], [0], [1], [0, 0, 1, 1], [], []>} : vector<32x32xbf16>, vector<32x128xbf16>, vector<32x128xf32> -> vector<32x128xf32>
    %72 = arith.addf %68, %71 : vector<32x128xf32>
    %73 = vector.extract_strided_slice %1 {offsets = [2, 0, 0], sizes = [1, 32, 32], strides = [1, 1, 1]} : vector<3x32x32xbf16> to vector<1x32x32xbf16>
    %74 = vector.shape_cast %73 : vector<1x32x32xbf16> to vector<32x32xbf16>
    %cst_39 = arith.constant dense<0.000000e+00> : vector<32x128xf32>
    %75 = tpu.matmul %74, %65, %cst_39 {dimension_numbers = #tpu.dot_dimension_numbers<[1], [0], [0], [1], [0, 0, 1, 1], [], []>} : vector<32x32xbf16>, vector<32x128xbf16>, vector<32x128xf32> -> vector<32x128xf32>
    %76 = arith.addf %72, %75 : vector<32x128xf32>
    %77 = vector.extract_strided_slice %5 {offsets = [0, 0], sizes = [32, 1], strides = [1, 1]} : vector<32x3xf32> to vector<32x1xf32>
    %78 = vector.extract_strided_slice %5 {offsets = [0, 1], sizes = [32, 1], strides = [1, 1]} : vector<32x3xf32> to vector<32x1xf32>
    %79 = vector.extract_strided_slice %5 {offsets = [0, 2], sizes = [32, 1], strides = [1, 1]} : vector<32x3xf32> to vector<32x1xf32>
    %80 = vector.broadcast %77 : vector<32x1xf32> to vector<32x128xf32>
    %81 = arith.addf %76, %80 : vector<32x128xf32>
    %cst_40 = arith.constant 0.000000e+00 : f32
    %82 = vector.broadcast %cst_40 : f32 to vector<32x128xf32>
    %83 = arith.maximumf %81, %82 : vector<32x128xf32>
    %84 = vector.shape_cast %83 : vector<32x128xf32> to vector<1x32x128xf32>
    %cst_41 = arith.constant dense<0.000000e+00> : vector<1xf32>
    %85 = vector.multi_reduction <add>, %84, %cst_41 [1, 2] : vector<1x32x128xf32> to vector<1xf32>
    %86 = vector.shape_cast %85 : vector<1xf32> to vector<1x1x1xf32>
    %87 = vector.extract %86[0, 0, 0] : f32 from vector<1x1x1xf32>
    %cst_42 = arith.constant 2.44140625E-4 : f32
    %88 = arith.mulf %87, %cst_42 : f32
    %89 = arith.mulf %83, %83 : vector<32x128xf32>
    %90 = vector.shape_cast %89 : vector<32x128xf32> to vector<1x32x128xf32>
    %cst_43 = arith.constant dense<0.000000e+00> : vector<1xf32>
    %91 = vector.multi_reduction <add>, %90, %cst_43 [1, 2] : vector<1x32x128xf32> to vector<1xf32>
    %92 = vector.shape_cast %91 : vector<1xf32> to vector<1x1x1xf32>
    %93 = vector.extract %92[0, 0, 0] : f32 from vector<1x1x1xf32>
    %cst_44 = arith.constant 2.44140625E-4 : f32
    %94 = arith.mulf %93, %cst_44 : f32
    %95 = arith.mulf %88, %88 : f32
    %96 = arith.subf %94, %95 : f32
    %cst_45 = arith.constant 0.000000e+00 : f32
    %97 = arith.maximumf %96, %cst_45 : f32
    %cst_46 = arith.constant 9.99999974E-6 : f32
    %98 = arith.addf %97, %cst_46 : f32
    %99 = math.rsqrt %98 : f32
    %100 = vector.broadcast %99 : f32 to vector<32x1xf32>
    %101 = arith.mulf %78, %100 : vector<32x1xf32>
    %102 = vector.broadcast %88 : f32 to vector<32x1xf32>
    %103 = arith.mulf %102, %101 : vector<32x1xf32>
    %104 = arith.subf %79, %103 : vector<32x1xf32>
    %105 = vector.broadcast %101 : vector<32x1xf32> to vector<32x128xf32>
    %106 = arith.mulf %83, %105 : vector<32x128xf32>
    %107 = vector.broadcast %104 : vector<32x1xf32> to vector<32x128xf32>
    %108 = arith.addf %106, %107 : vector<32x128xf32>
    %109 = arith.truncf %108 : vector<32x128xf32> to vector<32x128xbf16>
    %cst_47 = arith.constant 0.000000e+00 : bf16
    %110 = vector.broadcast %cst_47 : bf16 to vector<32x1xbf16>
    %111 = vector.extract_strided_slice %109 {offsets = [0, 0], sizes = [32, 127], strides = [1, 1]} : vector<32x128xbf16> to vector<32x127xbf16>
    %112 = tpu.concatenate %110, %111 in 1 : vector<32x1xbf16>, vector<32x127xbf16> -> vector<32x128xbf16>
    %113 = vector.extract_strided_slice %109 {offsets = [0, 1], sizes = [32, 127], strides = [1, 1]} : vector<32x128xbf16> to vector<32x127xbf16>
    %114 = tpu.concatenate %113, %110 in 1 : vector<32x127xbf16>, vector<32x1xbf16> -> vector<32x128xbf16>
    %115 = vector.extract_strided_slice %2 {offsets = [0, 0, 0], sizes = [1, 32, 32], strides = [1, 1, 1]} : vector<3x32x32xbf16> to vector<1x32x32xbf16>
    %116 = vector.shape_cast %115 : vector<1x32x32xbf16> to vector<32x32xbf16>
    %cst_48 = arith.constant dense<0.000000e+00> : vector<32x128xf32>
    %117 = tpu.matmul %116, %112, %cst_48 {dimension_numbers = #tpu.dot_dimension_numbers<[1], [0], [0], [1], [0, 0, 1, 1], [], []>} : vector<32x32xbf16>, vector<32x128xbf16>, vector<32x128xf32> -> vector<32x128xf32>
    %118 = vector.extract_strided_slice %2 {offsets = [1, 0, 0], sizes = [1, 32, 32], strides = [1, 1, 1]} : vector<3x32x32xbf16> to vector<1x32x32xbf16>
    %119 = vector.shape_cast %118 : vector<1x32x32xbf16> to vector<32x32xbf16>
    %cst_49 = arith.constant dense<0.000000e+00> : vector<32x128xf32>
    %120 = tpu.matmul %119, %109, %cst_49 {dimension_numbers = #tpu.dot_dimension_numbers<[1], [0], [0], [1], [0, 0, 1, 1], [], []>} : vector<32x32xbf16>, vector<32x128xbf16>, vector<32x128xf32> -> vector<32x128xf32>
    %121 = arith.addf %117, %120 : vector<32x128xf32>
    %122 = vector.extract_strided_slice %2 {offsets = [2, 0, 0], sizes = [1, 32, 32], strides = [1, 1, 1]} : vector<3x32x32xbf16> to vector<1x32x32xbf16>
    %123 = vector.shape_cast %122 : vector<1x32x32xbf16> to vector<32x32xbf16>
    %cst_50 = arith.constant dense<0.000000e+00> : vector<32x128xf32>
    %124 = tpu.matmul %123, %114, %cst_50 {dimension_numbers = #tpu.dot_dimension_numbers<[1], [0], [0], [1], [0, 0, 1, 1], [], []>} : vector<32x32xbf16>, vector<32x128xbf16>, vector<32x128xf32> -> vector<32x128xf32>
    %125 = arith.addf %121, %124 : vector<32x128xf32>
    %126 = vector.extract_strided_slice %6 {offsets = [0, 0], sizes = [32, 1], strides = [1, 1]} : vector<32x3xf32> to vector<32x1xf32>
    %127 = vector.extract_strided_slice %6 {offsets = [0, 1], sizes = [32, 1], strides = [1, 1]} : vector<32x3xf32> to vector<32x1xf32>
    %128 = vector.extract_strided_slice %6 {offsets = [0, 2], sizes = [32, 1], strides = [1, 1]} : vector<32x3xf32> to vector<32x1xf32>
    %129 = vector.broadcast %126 : vector<32x1xf32> to vector<32x128xf32>
    %130 = arith.addf %125, %129 : vector<32x128xf32>
    %cst_51 = arith.constant 0.000000e+00 : f32
    %131 = vector.broadcast %cst_51 : f32 to vector<32x128xf32>
    %132 = arith.maximumf %130, %131 : vector<32x128xf32>
    %133 = vector.shape_cast %132 : vector<32x128xf32> to vector<1x32x128xf32>
    %cst_52 = arith.constant dense<0.000000e+00> : vector<1xf32>
    %134 = vector.multi_reduction <add>, %133, %cst_52 [1, 2] : vector<1x32x128xf32> to vector<1xf32>
    %135 = vector.shape_cast %134 : vector<1xf32> to vector<1x1x1xf32>
    %136 = vector.extract %135[0, 0, 0] : f32 from vector<1x1x1xf32>
    %cst_53 = arith.constant 2.44140625E-4 : f32
    %137 = arith.mulf %136, %cst_53 : f32
    %138 = arith.mulf %132, %132 : vector<32x128xf32>
    %139 = vector.shape_cast %138 : vector<32x128xf32> to vector<1x32x128xf32>
    %cst_54 = arith.constant dense<0.000000e+00> : vector<1xf32>
    %140 = vector.multi_reduction <add>, %139, %cst_54 [1, 2] : vector<1x32x128xf32> to vector<1xf32>
    %141 = vector.shape_cast %140 : vector<1xf32> to vector<1x1x1xf32>
    %142 = vector.extract %141[0, 0, 0] : f32 from vector<1x1x1xf32>
    %cst_55 = arith.constant 2.44140625E-4 : f32
    %143 = arith.mulf %142, %cst_55 : f32
    %144 = arith.mulf %137, %137 : f32
    %145 = arith.subf %143, %144 : f32
    %cst_56 = arith.constant 0.000000e+00 : f32
    %146 = arith.maximumf %145, %cst_56 : f32
    %cst_57 = arith.constant 9.99999974E-6 : f32
    %147 = arith.addf %146, %cst_57 : f32
    %148 = math.rsqrt %147 : f32
    %149 = vector.broadcast %148 : f32 to vector<32x1xf32>
    %150 = arith.mulf %127, %149 : vector<32x1xf32>
    %151 = vector.broadcast %137 : f32 to vector<32x1xf32>
    %152 = arith.mulf %151, %150 : vector<32x1xf32>
    %153 = arith.subf %128, %152 : vector<32x1xf32>
    %154 = vector.broadcast %150 : vector<32x1xf32> to vector<32x128xf32>
    %155 = arith.mulf %132, %154 : vector<32x128xf32>
    %156 = vector.broadcast %153 : vector<32x1xf32> to vector<32x128xf32>
    %157 = arith.addf %155, %156 : vector<32x128xf32>
    %158 = arith.truncf %157 : vector<32x128xf32> to vector<32x128xbf16>
    %cst_58 = arith.constant 0.000000e+00 : bf16
    %159 = vector.broadcast %cst_58 : bf16 to vector<32x1xbf16>
    %160 = vector.extract_strided_slice %158 {offsets = [0, 0], sizes = [32, 127], strides = [1, 1]} : vector<32x128xbf16> to vector<32x127xbf16>
    %161 = tpu.concatenate %159, %160 in 1 : vector<32x1xbf16>, vector<32x127xbf16> -> vector<32x128xbf16>
    %162 = vector.extract_strided_slice %158 {offsets = [0, 1], sizes = [32, 127], strides = [1, 1]} : vector<32x128xbf16> to vector<32x127xbf16>
    %163 = tpu.concatenate %162, %159 in 1 : vector<32x127xbf16>, vector<32x1xbf16> -> vector<32x128xbf16>
    %164 = vector.extract_strided_slice %3 {offsets = [0, 0, 0], sizes = [1, 32, 32], strides = [1, 1, 1]} : vector<3x32x32xbf16> to vector<1x32x32xbf16>
    %165 = vector.shape_cast %164 : vector<1x32x32xbf16> to vector<32x32xbf16>
    %cst_59 = arith.constant dense<0.000000e+00> : vector<32x128xf32>
    %166 = tpu.matmul %165, %161, %cst_59 {dimension_numbers = #tpu.dot_dimension_numbers<[1], [0], [0], [1], [0, 0, 1, 1], [], []>} : vector<32x32xbf16>, vector<32x128xbf16>, vector<32x128xf32> -> vector<32x128xf32>
    %167 = vector.extract_strided_slice %3 {offsets = [1, 0, 0], sizes = [1, 32, 32], strides = [1, 1, 1]} : vector<3x32x32xbf16> to vector<1x32x32xbf16>
    %168 = vector.shape_cast %167 : vector<1x32x32xbf16> to vector<32x32xbf16>
    %cst_60 = arith.constant dense<0.000000e+00> : vector<32x128xf32>
    %169 = tpu.matmul %168, %158, %cst_60 {dimension_numbers = #tpu.dot_dimension_numbers<[1], [0], [0], [1], [0, 0, 1, 1], [], []>} : vector<32x32xbf16>, vector<32x128xbf16>, vector<32x128xf32> -> vector<32x128xf32>
    %170 = arith.addf %166, %169 : vector<32x128xf32>
    %171 = vector.extract_strided_slice %3 {offsets = [2, 0, 0], sizes = [1, 32, 32], strides = [1, 1, 1]} : vector<3x32x32xbf16> to vector<1x32x32xbf16>
    %172 = vector.shape_cast %171 : vector<1x32x32xbf16> to vector<32x32xbf16>
    %cst_61 = arith.constant dense<0.000000e+00> : vector<32x128xf32>
    %173 = tpu.matmul %172, %163, %cst_61 {dimension_numbers = #tpu.dot_dimension_numbers<[1], [0], [0], [1], [0, 0, 1, 1], [], []>} : vector<32x32xbf16>, vector<32x128xbf16>, vector<32x128xf32> -> vector<32x128xf32>
    %174 = arith.addf %170, %173 : vector<32x128xf32>
    %175 = vector.extract_strided_slice %7 {offsets = [0, 0], sizes = [32, 1], strides = [1, 1]} : vector<32x3xf32> to vector<32x1xf32>
    %176 = vector.extract_strided_slice %7 {offsets = [0, 1], sizes = [32, 1], strides = [1, 1]} : vector<32x3xf32> to vector<32x1xf32>
    %177 = vector.extract_strided_slice %7 {offsets = [0, 2], sizes = [32, 1], strides = [1, 1]} : vector<32x3xf32> to vector<32x1xf32>
    %178 = vector.broadcast %175 : vector<32x1xf32> to vector<32x128xf32>
    %179 = arith.addf %174, %178 : vector<32x128xf32>
    %cst_62 = arith.constant 0.000000e+00 : f32
    %180 = vector.broadcast %cst_62 : f32 to vector<32x128xf32>
    %181 = arith.maximumf %179, %180 : vector<32x128xf32>
    %182 = vector.shape_cast %181 : vector<32x128xf32> to vector<1x32x128xf32>
    %cst_63 = arith.constant dense<0.000000e+00> : vector<1xf32>
    %183 = vector.multi_reduction <add>, %182, %cst_63 [1, 2] : vector<1x32x128xf32> to vector<1xf32>
    %184 = vector.shape_cast %183 : vector<1xf32> to vector<1x1x1xf32>
    %185 = vector.extract %184[0, 0, 0] : f32 from vector<1x1x1xf32>
    %cst_64 = arith.constant 2.44140625E-4 : f32
    %186 = arith.mulf %185, %cst_64 : f32
    %187 = arith.mulf %181, %181 : vector<32x128xf32>
    %188 = vector.shape_cast %187 : vector<32x128xf32> to vector<1x32x128xf32>
    %cst_65 = arith.constant dense<0.000000e+00> : vector<1xf32>
    %189 = vector.multi_reduction <add>, %188, %cst_65 [1, 2] : vector<1x32x128xf32> to vector<1xf32>
    %190 = vector.shape_cast %189 : vector<1xf32> to vector<1x1x1xf32>
    %191 = vector.extract %190[0, 0, 0] : f32 from vector<1x1x1xf32>
    %cst_66 = arith.constant 2.44140625E-4 : f32
    %192 = arith.mulf %191, %cst_66 : f32
    %193 = arith.mulf %186, %186 : f32
    %194 = arith.subf %192, %193 : f32
    %cst_67 = arith.constant 0.000000e+00 : f32
    %195 = arith.maximumf %194, %cst_67 : f32
    %cst_68 = arith.constant 9.99999974E-6 : f32
    %196 = arith.addf %195, %cst_68 : f32
    %197 = math.rsqrt %196 : f32
    %198 = vector.broadcast %197 : f32 to vector<32x1xf32>
    %199 = arith.mulf %176, %198 : vector<32x1xf32>
    %200 = vector.broadcast %186 : f32 to vector<32x1xf32>
    %201 = arith.mulf %200, %199 : vector<32x1xf32>
    %202 = arith.subf %177, %201 : vector<32x1xf32>
    %203 = vector.broadcast %199 : vector<32x1xf32> to vector<32x128xf32>
    %204 = arith.mulf %181, %203 : vector<32x128xf32>
    %205 = vector.broadcast %202 : vector<32x1xf32> to vector<32x128xf32>
    %206 = arith.addf %204, %205 : vector<32x128xf32>
    %207 = arith.truncf %206 : vector<32x128xf32> to vector<32x128xbf16>
    %cst_69 = arith.constant dense<0.000000e+00> : vector<16x128xf32>
    %208 = tpu.matmul %8, %207, %cst_69 {dimension_numbers = #tpu.dot_dimension_numbers<[1], [0], [0], [1], [0, 0, 1, 1], [], []>} : vector<16x32xbf16>, vector<32x128xbf16>, vector<16x128xf32> -> vector<16x128xf32>
    %209 = vector.broadcast %9 : vector<16x1xf32> to vector<16x128xf32>
    %210 = arith.addf %208, %209 : vector<16x128xf32>
    %211 = vector.extract_strided_slice %210 {offsets = [0, 0], sizes = [8, 128], strides = [1, 1]} : vector<16x128xf32> to vector<8x128xf32>
    %212 = vector.extract_strided_slice %210 {offsets = [8, 0], sizes = [8, 128], strides = [1, 1]} : vector<16x128xf32> to vector<8x128xf32>
    %cst_70 = arith.constant 5.000000e-01 : f32
    %213 = vector.broadcast %cst_70 : f32 to vector<8x128xf32>
    %214 = arith.mulf %213, %212 : vector<8x128xf32>
    %215 = math.exp %214 : vector<8x128xf32>
    %c0_71 = arith.constant 0 : index
    %c0_72 = arith.constant 0 : index
    %c0_73 = arith.constant 0 : index
    %216 = vector.load %arg2[%c0_71, %c0_72, %c0_73] : memref<2x8x128xf32, #tpu.memory_space<vmem>>, vector<1x8x128xf32>
    %217 = vector.shape_cast %216 : vector<1x8x128xf32> to vector<8x128xf32>
    %218 = arith.mulf %215, %217 : vector<8x128xf32>
    %219 = arith.addf %211, %218 : vector<8x128xf32>
    %c0_74 = arith.constant 0 : index
    %c0_75 = arith.constant 0 : index
    %c0_76 = arith.constant 0 : index
    %220 = vector.load %arg13[%c0_74, %c0_75, %c0_76] : memref<2x24x128xf32, #tpu.memory_space<vmem>>, vector<1x16x128xf32>
    %221 = vector.shape_cast %220 : vector<1x16x128xf32> to vector<16x128xf32>
    %222 = vector.shape_cast %210 : vector<16x128xf32> to vector<1x16x128xf32>
    tpu.vector_store %arg13[%c0_74, %c0_75, %c0_76], %222 {strides = array<i32>} : memref<2x24x128xf32, #tpu.memory_space<vmem>>, vector<1x16x128xf32>,
    %c0_77 = arith.constant 0 : index
    %c16 = arith.constant 16 : index
    %c0_78 = arith.constant 0 : index
    %223 = vector.load %arg13[%c0_77, %c16, %c0_78] : memref<2x24x128xf32, #tpu.memory_space<vmem>>, vector<1x8x128xf32>
    %224 = vector.shape_cast %223 : vector<1x8x128xf32> to vector<8x128xf32>
    %225 = vector.shape_cast %219 : vector<8x128xf32> to vector<1x8x128xf32>
    tpu.vector_store %arg13[%c0_77, %c16, %c0_78], %225 {strides = array<i32>} : memref<2x24x128xf32, #tpu.memory_space<vmem>>, vector<1x8x128xf32>,
    %c1 = arith.constant 1 : index
    %c0_79 = arith.constant 0 : index
    %c0_80 = arith.constant 0 : index
    %226 = vector.load %arg1[%c1, %c0_79, %c0_80] : memref<2x16x128xbf16, #tpu.memory_space<vmem>>, vector<1x16x128xbf16>
    %227 = vector.shape_cast %226 : vector<1x16x128xbf16> to vector<16x128xbf16>
    %cst_81 = arith.constant 0.000000e+00 : bf16
    %228 = vector.broadcast %cst_81 : bf16 to vector<16x1xbf16>
    %229 = vector.extract_strided_slice %227 {offsets = [0, 0], sizes = [16, 127], strides = [1, 1]} : vector<16x128xbf16> to vector<16x127xbf16>
    %230 = tpu.concatenate %228, %229 in 1 : vector<16x1xbf16>, vector<16x127xbf16> -> vector<16x128xbf16>
    %231 = vector.extract_strided_slice %227 {offsets = [0, 1], sizes = [16, 127], strides = [1, 1]} : vector<16x128xbf16> to vector<16x127xbf16>
    %232 = tpu.concatenate %231, %228 in 1 : vector<16x127xbf16>, vector<16x1xbf16> -> vector<16x128xbf16>
    %233 = vector.extract_strided_slice %0 {offsets = [0, 0, 0], sizes = [1, 32, 16], strides = [1, 1, 1]} : vector<3x32x16xbf16> to vector<1x32x16xbf16>
    %234 = vector.shape_cast %233 : vector<1x32x16xbf16> to vector<32x16xbf16>
    %cst_82 = arith.constant dense<0.000000e+00> : vector<32x128xf32>
    %235 = tpu.matmul %234, %230, %cst_82 {dimension_numbers = #tpu.dot_dimension_numbers<[1], [0], [0], [1], [0, 0, 1, 1], [], []>} : vector<32x16xbf16>, vector<16x128xbf16>, vector<32x128xf32> -> vector<32x128xf32>
    %236 = vector.extract_strided_slice %0 {offsets = [1, 0, 0], sizes = [1, 32, 16], strides = [1, 1, 1]} : vector<3x32x16xbf16> to vector<1x32x16xbf16>
    %237 = vector.shape_cast %236 : vector<1x32x16xbf16> to vector<32x16xbf16>
    %cst_83 = arith.constant dense<0.000000e+00> : vector<32x128xf32>
    %238 = tpu.matmul %237, %227, %cst_83 {dimension_numbers = #tpu.dot_dimension_numbers<[1], [0], [0], [1], [0, 0, 1, 1], [], []>} : vector<32x16xbf16>, vector<16x128xbf16>, vector<32x128xf32> -> vector<32x128xf32>
    %239 = arith.addf %235, %238 : vector<32x128xf32>
    %240 = vector.extract_strided_slice %0 {offsets = [2, 0, 0], sizes = [1, 32, 16], strides = [1, 1, 1]} : vector<3x32x16xbf16> to vector<1x32x16xbf16>
    %241 = vector.shape_cast %240 : vector<1x32x16xbf16> to vector<32x16xbf16>
    %cst_84 = arith.constant dense<0.000000e+00> : vector<32x128xf32>
    %242 = tpu.matmul %241, %232, %cst_84 {dimension_numbers = #tpu.dot_dimension_numbers<[1], [0], [0], [1], [0, 0, 1, 1], [], []>} : vector<32x16xbf16>, vector<16x128xbf16>, vector<32x128xf32> -> vector<32x128xf32>
    %243 = arith.addf %239, %242 : vector<32x128xf32>
    %244 = vector.extract_strided_slice %4 {offsets = [0, 0], sizes = [32, 1], strides = [1, 1]} : vector<32x3xf32> to vector<32x1xf32>
    %245 = vector.extract_strided_slice %4 {offsets = [0, 1], sizes = [32, 1], strides = [1, 1]} : vector<32x3xf32> to vector<32x1xf32>
    %246 = vector.extract_strided_slice %4 {offsets = [0, 2], sizes = [32, 1], strides = [1, 1]} : vector<32x3xf32> to vector<32x1xf32>
    %247 = vector.broadcast %244 : vector<32x1xf32> to vector<32x128xf32>
    %248 = arith.addf %243, %247 : vector<32x128xf32>
    %cst_85 = arith.constant 0.000000e+00 : f32
    %249 = vector.broadcast %cst_85 : f32 to vector<32x128xf32>
    %250 = arith.maximumf %248, %249 : vector<32x128xf32>
    %251 = vector.shape_cast %250 : vector<32x128xf32> to vector<1x32x128xf32>
    %cst_86 = arith.constant dense<0.000000e+00> : vector<1xf32>
    %252 = vector.multi_reduction <add>, %251, %cst_86 [1, 2] : vector<1x32x128xf32> to vector<1xf32>
    %253 = vector.shape_cast %252 : vector<1xf32> to vector<1x1x1xf32>
    %254 = vector.extract %253[0, 0, 0] : f32 from vector<1x1x1xf32>
    %cst_87 = arith.constant 2.44140625E-4 : f32
    %255 = arith.mulf %254, %cst_87 : f32
    %256 = arith.mulf %250, %250 : vector<32x128xf32>
    %257 = vector.shape_cast %256 : vector<32x128xf32> to vector<1x32x128xf32>
    %cst_88 = arith.constant dense<0.000000e+00> : vector<1xf32>
    %258 = vector.multi_reduction <add>, %257, %cst_88 [1, 2] : vector<1x32x128xf32> to vector<1xf32>
    %259 = vector.shape_cast %258 : vector<1xf32> to vector<1x1x1xf32>
    %260 = vector.extract %259[0, 0, 0] : f32 from vector<1x1x1xf32>
    %cst_89 = arith.constant 2.44140625E-4 : f32
    %261 = arith.mulf %260, %cst_89 : f32
    %262 = arith.mulf %255, %255 : f32
    %263 = arith.subf %261, %262 : f32
    %cst_90 = arith.constant 0.000000e+00 : f32
    %264 = arith.maximumf %263, %cst_90 : f32
    %cst_91 = arith.constant 9.99999974E-6 : f32
    %265 = arith.addf %264, %cst_91 : f32
    %266 = math.rsqrt %265 : f32
    %267 = vector.broadcast %266 : f32 to vector<32x1xf32>
    %268 = arith.mulf %245, %267 : vector<32x1xf32>
    %269 = vector.broadcast %255 : f32 to vector<32x1xf32>
    %270 = arith.mulf %269, %268 : vector<32x1xf32>
    %271 = arith.subf %246, %270 : vector<32x1xf32>
    %272 = vector.broadcast %268 : vector<32x1xf32> to vector<32x128xf32>
    %273 = arith.mulf %250, %272 : vector<32x128xf32>
    %274 = vector.broadcast %271 : vector<32x1xf32> to vector<32x128xf32>
    %275 = arith.addf %273, %274 : vector<32x128xf32>
    %276 = arith.truncf %275 : vector<32x128xf32> to vector<32x128xbf16>
    %cst_92 = arith.constant 0.000000e+00 : bf16
    %277 = vector.broadcast %cst_92 : bf16 to vector<32x1xbf16>
    %278 = vector.extract_strided_slice %276 {offsets = [0, 0], sizes = [32, 127], strides = [1, 1]} : vector<32x128xbf16> to vector<32x127xbf16>
    %279 = tpu.concatenate %277, %278 in 1 : vector<32x1xbf16>, vector<32x127xbf16> -> vector<32x128xbf16>
    %280 = vector.extract_strided_slice %276 {offsets = [0, 1], sizes = [32, 127], strides = [1, 1]} : vector<32x128xbf16> to vector<32x127xbf16>
    %281 = tpu.concatenate %280, %277 in 1 : vector<32x127xbf16>, vector<32x1xbf16> -> vector<32x128xbf16>
    %282 = vector.extract_strided_slice %1 {offsets = [0, 0, 0], sizes = [1, 32, 32], strides = [1, 1, 1]} : vector<3x32x32xbf16> to vector<1x32x32xbf16>
    %283 = vector.shape_cast %282 : vector<1x32x32xbf16> to vector<32x32xbf16>
    %cst_93 = arith.constant dense<0.000000e+00> : vector<32x128xf32>
    %284 = tpu.matmul %283, %279, %cst_93 {dimension_numbers = #tpu.dot_dimension_numbers<[1], [0], [0], [1], [0, 0, 1, 1], [], []>} : vector<32x32xbf16>, vector<32x128xbf16>, vector<32x128xf32> -> vector<32x128xf32>
    %285 = vector.extract_strided_slice %1 {offsets = [1, 0, 0], sizes = [1, 32, 32], strides = [1, 1, 1]} : vector<3x32x32xbf16> to vector<1x32x32xbf16>
    %286 = vector.shape_cast %285 : vector<1x32x32xbf16> to vector<32x32xbf16>
    %cst_94 = arith.constant dense<0.000000e+00> : vector<32x128xf32>
    %287 = tpu.matmul %286, %276, %cst_94 {dimension_numbers = #tpu.dot_dimension_numbers<[1], [0], [0], [1], [0, 0, 1, 1], [], []>} : vector<32x32xbf16>, vector<32x128xbf16>, vector<32x128xf32> -> vector<32x128xf32>
    %288 = arith.addf %284, %287 : vector<32x128xf32>
    %289 = vector.extract_strided_slice %1 {offsets = [2, 0, 0], sizes = [1, 32, 32], strides = [1, 1, 1]} : vector<3x32x32xbf16> to vector<1x32x32xbf16>
    %290 = vector.shape_cast %289 : vector<1x32x32xbf16> to vector<32x32xbf16>
    %cst_95 = arith.constant dense<0.000000e+00> : vector<32x128xf32>
    %291 = tpu.matmul %290, %281, %cst_95 {dimension_numbers = #tpu.dot_dimension_numbers<[1], [0], [0], [1], [0, 0, 1, 1], [], []>} : vector<32x32xbf16>, vector<32x128xbf16>, vector<32x128xf32> -> vector<32x128xf32>
    %292 = arith.addf %288, %291 : vector<32x128xf32>
    %293 = vector.extract_strided_slice %5 {offsets = [0, 0], sizes = [32, 1], strides = [1, 1]} : vector<32x3xf32> to vector<32x1xf32>
    %294 = vector.extract_strided_slice %5 {offsets = [0, 1], sizes = [32, 1], strides = [1, 1]} : vector<32x3xf32> to vector<32x1xf32>
    %295 = vector.extract_strided_slice %5 {offsets = [0, 2], sizes = [32, 1], strides = [1, 1]} : vector<32x3xf32> to vector<32x1xf32>
    %296 = vector.broadcast %293 : vector<32x1xf32> to vector<32x128xf32>
    %297 = arith.addf %292, %296 : vector<32x128xf32>
    %cst_96 = arith.constant 0.000000e+00 : f32
    %298 = vector.broadcast %cst_96 : f32 to vector<32x128xf32>
    %299 = arith.maximumf %297, %298 : vector<32x128xf32>
    %300 = vector.shape_cast %299 : vector<32x128xf32> to vector<1x32x128xf32>
    %cst_97 = arith.constant dense<0.000000e+00> : vector<1xf32>
    %301 = vector.multi_reduction <add>, %300, %cst_97 [1, 2] : vector<1x32x128xf32> to vector<1xf32>
    %302 = vector.shape_cast %301 : vector<1xf32> to vector<1x1x1xf32>
    %303 = vector.extract %302[0, 0, 0] : f32 from vector<1x1x1xf32>
    %cst_98 = arith.constant 2.44140625E-4 : f32
    %304 = arith.mulf %303, %cst_98 : f32
    %305 = arith.mulf %299, %299 : vector<32x128xf32>
    %306 = vector.shape_cast %305 : vector<32x128xf32> to vector<1x32x128xf32>
    %cst_99 = arith.constant dense<0.000000e+00> : vector<1xf32>
    %307 = vector.multi_reduction <add>, %306, %cst_99 [1, 2] : vector<1x32x128xf32> to vector<1xf32>
    %308 = vector.shape_cast %307 : vector<1xf32> to vector<1x1x1xf32>
    %309 = vector.extract %308[0, 0, 0] : f32 from vector<1x1x1xf32>
    %cst_100 = arith.constant 2.44140625E-4 : f32
    %310 = arith.mulf %309, %cst_100 : f32
    %311 = arith.mulf %304, %304 : f32
    %312 = arith.subf %310, %311 : f32
    %cst_101 = arith.constant 0.000000e+00 : f32
    %313 = arith.maximumf %312, %cst_101 : f32
    %cst_102 = arith.constant 9.99999974E-6 : f32
    %314 = arith.addf %313, %cst_102 : f32
    %315 = math.rsqrt %314 : f32
    %316 = vector.broadcast %315 : f32 to vector<32x1xf32>
    %317 = arith.mulf %294, %316 : vector<32x1xf32>
    %318 = vector.broadcast %304 : f32 to vector<32x1xf32>
    %319 = arith.mulf %318, %317 : vector<32x1xf32>
    %320 = arith.subf %295, %319 : vector<32x1xf32>
    %321 = vector.broadcast %317 : vector<32x1xf32> to vector<32x128xf32>
    %322 = arith.mulf %299, %321 : vector<32x128xf32>
    %323 = vector.broadcast %320 : vector<32x1xf32> to vector<32x128xf32>
    %324 = arith.addf %322, %323 : vector<32x128xf32>
    %325 = arith.truncf %324 : vector<32x128xf32> to vector<32x128xbf16>
    %cst_103 = arith.constant 0.000000e+00 : bf16
    %326 = vector.broadcast %cst_103 : bf16 to vector<32x1xbf16>
    %327 = vector.extract_strided_slice %325 {offsets = [0, 0], sizes = [32, 127], strides = [1, 1]} : vector<32x128xbf16> to vector<32x127xbf16>
    %328 = tpu.concatenate %326, %327 in 1 : vector<32x1xbf16>, vector<32x127xbf16> -> vector<32x128xbf16>
    %329 = vector.extract_strided_slice %325 {offsets = [0, 1], sizes = [32, 127], strides = [1, 1]} : vector<32x128xbf16> to vector<32x127xbf16>
    %330 = tpu.concatenate %329, %326 in 1 : vector<32x127xbf16>, vector<32x1xbf16> -> vector<32x128xbf16>
    %331 = vector.extract_strided_slice %2 {offsets = [0, 0, 0], sizes = [1, 32, 32], strides = [1, 1, 1]} : vector<3x32x32xbf16> to vector<1x32x32xbf16>
    %332 = vector.shape_cast %331 : vector<1x32x32xbf16> to vector<32x32xbf16>
    %cst_104 = arith.constant dense<0.000000e+00> : vector<32x128xf32>
    %333 = tpu.matmul %332, %328, %cst_104 {dimension_numbers = #tpu.dot_dimension_numbers<[1], [0], [0], [1], [0, 0, 1, 1], [], []>} : vector<32x32xbf16>, vector<32x128xbf16>, vector<32x128xf32> -> vector<32x128xf32>
    %334 = vector.extract_strided_slice %2 {offsets = [1, 0, 0], sizes = [1, 32, 32], strides = [1, 1, 1]} : vector<3x32x32xbf16> to vector<1x32x32xbf16>
    %335 = vector.shape_cast %334 : vector<1x32x32xbf16> to vector<32x32xbf16>
    %cst_105 = arith.constant dense<0.000000e+00> : vector<32x128xf32>
    %336 = tpu.matmul %335, %325, %cst_105 {dimension_numbers = #tpu.dot_dimension_numbers<[1], [0], [0], [1], [0, 0, 1, 1], [], []>} : vector<32x32xbf16>, vector<32x128xbf16>, vector<32x128xf32> -> vector<32x128xf32>
    %337 = arith.addf %333, %336 : vector<32x128xf32>
    %338 = vector.extract_strided_slice %2 {offsets = [2, 0, 0], sizes = [1, 32, 32], strides = [1, 1, 1]} : vector<3x32x32xbf16> to vector<1x32x32xbf16>
    %339 = vector.shape_cast %338 : vector<1x32x32xbf16> to vector<32x32xbf16>
    %cst_106 = arith.constant dense<0.000000e+00> : vector<32x128xf32>
    %340 = tpu.matmul %339, %330, %cst_106 {dimension_numbers = #tpu.dot_dimension_numbers<[1], [0], [0], [1], [0, 0, 1, 1], [], []>} : vector<32x32xbf16>, vector<32x128xbf16>, vector<32x128xf32> -> vector<32x128xf32>
    %341 = arith.addf %337, %340 : vector<32x128xf32>
    %342 = vector.extract_strided_slice %6 {offsets = [0, 0], sizes = [32, 1], strides = [1, 1]} : vector<32x3xf32> to vector<32x1xf32>
    %343 = vector.extract_strided_slice %6 {offsets = [0, 1], sizes = [32, 1], strides = [1, 1]} : vector<32x3xf32> to vector<32x1xf32>
    %344 = vector.extract_strided_slice %6 {offsets = [0, 2], sizes = [32, 1], strides = [1, 1]} : vector<32x3xf32> to vector<32x1xf32>
    %345 = vector.broadcast %342 : vector<32x1xf32> to vector<32x128xf32>
    %346 = arith.addf %341, %345 : vector<32x128xf32>
    %cst_107 = arith.constant 0.000000e+00 : f32
    %347 = vector.broadcast %cst_107 : f32 to vector<32x128xf32>
    %348 = arith.maximumf %346, %347 : vector<32x128xf32>
    %349 = vector.shape_cast %348 : vector<32x128xf32> to vector<1x32x128xf32>
    %cst_108 = arith.constant dense<0.000000e+00> : vector<1xf32>
    %350 = vector.multi_reduction <add>, %349, %cst_108 [1, 2] : vector<1x32x128xf32> to vector<1xf32>
    %351 = vector.shape_cast %350 : vector<1xf32> to vector<1x1x1xf32>
    %352 = vector.extract %351[0, 0, 0] : f32 from vector<1x1x1xf32>
    %cst_109 = arith.constant 2.44140625E-4 : f32
    %353 = arith.mulf %352, %cst_109 : f32
    %354 = arith.mulf %348, %348 : vector<32x128xf32>
    %355 = vector.shape_cast %354 : vector<32x128xf32> to vector<1x32x128xf32>
    %cst_110 = arith.constant dense<0.000000e+00> : vector<1xf32>
    %356 = vector.multi_reduction <add>, %355, %cst_110 [1, 2] : vector<1x32x128xf32> to vector<1xf32>
    %357 = vector.shape_cast %356 : vector<1xf32> to vector<1x1x1xf32>
    %358 = vector.extract %357[0, 0, 0] : f32 from vector<1x1x1xf32>
    %cst_111 = arith.constant 2.44140625E-4 : f32
    %359 = arith.mulf %358, %cst_111 : f32
    %360 = arith.mulf %353, %353 : f32
    %361 = arith.subf %359, %360 : f32
    %cst_112 = arith.constant 0.000000e+00 : f32
    %362 = arith.maximumf %361, %cst_112 : f32
    %cst_113 = arith.constant 9.99999974E-6 : f32
    %363 = arith.addf %362, %cst_113 : f32
    %364 = math.rsqrt %363 : f32
    %365 = vector.broadcast %364 : f32 to vector<32x1xf32>
    %366 = arith.mulf %343, %365 : vector<32x1xf32>
    %367 = vector.broadcast %353 : f32 to vector<32x1xf32>
    %368 = arith.mulf %367, %366 : vector<32x1xf32>
    %369 = arith.subf %344, %368 : vector<32x1xf32>
    %370 = vector.broadcast %366 : vector<32x1xf32> to vector<32x128xf32>
    %371 = arith.mulf %348, %370 : vector<32x128xf32>
    %372 = vector.broadcast %369 : vector<32x1xf32> to vector<32x128xf32>
    %373 = arith.addf %371, %372 : vector<32x128xf32>
    %374 = arith.truncf %373 : vector<32x128xf32> to vector<32x128xbf16>
    %cst_114 = arith.constant 0.000000e+00 : bf16
    %375 = vector.broadcast %cst_114 : bf16 to vector<32x1xbf16>
    %376 = vector.extract_strided_slice %374 {offsets = [0, 0], sizes = [32, 127], strides = [1, 1]} : vector<32x128xbf16> to vector<32x127xbf16>
    %377 = tpu.concatenate %375, %376 in 1 : vector<32x1xbf16>, vector<32x127xbf16> -> vector<32x128xbf16>
    %378 = vector.extract_strided_slice %374 {offsets = [0, 1], sizes = [32, 127], strides = [1, 1]} : vector<32x128xbf16> to vector<32x127xbf16>
    %379 = tpu.concatenate %378, %375 in 1 : vector<32x127xbf16>, vector<32x1xbf16> -> vector<32x128xbf16>
    %380 = vector.extract_strided_slice %3 {offsets = [0, 0, 0], sizes = [1, 32, 32], strides = [1, 1, 1]} : vector<3x32x32xbf16> to vector<1x32x32xbf16>
    %381 = vector.shape_cast %380 : vector<1x32x32xbf16> to vector<32x32xbf16>
    %cst_115 = arith.constant dense<0.000000e+00> : vector<32x128xf32>
    %382 = tpu.matmul %381, %377, %cst_115 {dimension_numbers = #tpu.dot_dimension_numbers<[1], [0], [0], [1], [0, 0, 1, 1], [], []>} : vector<32x32xbf16>, vector<32x128xbf16>, vector<32x128xf32> -> vector<32x128xf32>
    %383 = vector.extract_strided_slice %3 {offsets = [1, 0, 0], sizes = [1, 32, 32], strides = [1, 1, 1]} : vector<3x32x32xbf16> to vector<1x32x32xbf16>
    %384 = vector.shape_cast %383 : vector<1x32x32xbf16> to vector<32x32xbf16>
    %cst_116 = arith.constant dense<0.000000e+00> : vector<32x128xf32>
    %385 = tpu.matmul %384, %374, %cst_116 {dimension_numbers = #tpu.dot_dimension_numbers<[1], [0], [0], [1], [0, 0, 1, 1], [], []>} : vector<32x32xbf16>, vector<32x128xbf16>, vector<32x128xf32> -> vector<32x128xf32>
    %386 = arith.addf %382, %385 : vector<32x128xf32>
    %387 = vector.extract_strided_slice %3 {offsets = [2, 0, 0], sizes = [1, 32, 32], strides = [1, 1, 1]} : vector<3x32x32xbf16> to vector<1x32x32xbf16>
    %388 = vector.shape_cast %387 : vector<1x32x32xbf16> to vector<32x32xbf16>
    %cst_117 = arith.constant dense<0.000000e+00> : vector<32x128xf32>
    %389 = tpu.matmul %388, %379, %cst_117 {dimension_numbers = #tpu.dot_dimension_numbers<[1], [0], [0], [1], [0, 0, 1, 1], [], []>} : vector<32x32xbf16>, vector<32x128xbf16>, vector<32x128xf32> -> vector<32x128xf32>
    %390 = arith.addf %386, %389 : vector<32x128xf32>
    %391 = vector.extract_strided_slice %7 {offsets = [0, 0], sizes = [32, 1], strides = [1, 1]} : vector<32x3xf32> to vector<32x1xf32>
    %392 = vector.extract_strided_slice %7 {offsets = [0, 1], sizes = [32, 1], strides = [1, 1]} : vector<32x3xf32> to vector<32x1xf32>
    %393 = vector.extract_strided_slice %7 {offsets = [0, 2], sizes = [32, 1], strides = [1, 1]} : vector<32x3xf32> to vector<32x1xf32>
    %394 = vector.broadcast %391 : vector<32x1xf32> to vector<32x128xf32>
    %395 = arith.addf %390, %394 : vector<32x128xf32>
    %cst_118 = arith.constant 0.000000e+00 : f32
    %396 = vector.broadcast %cst_118 : f32 to vector<32x128xf32>
    %397 = arith.maximumf %395, %396 : vector<32x128xf32>
    %398 = vector.shape_cast %397 : vector<32x128xf32> to vector<1x32x128xf32>
    %cst_119 = arith.constant dense<0.000000e+00> : vector<1xf32>
    %399 = vector.multi_reduction <add>, %398, %cst_119 [1, 2] : vector<1x32x128xf32> to vector<1xf32>
    %400 = vector.shape_cast %399 : vector<1xf32> to vector<1x1x1xf32>
    %401 = vector.extract %400[0, 0, 0] : f32 from vector<1x1x1xf32>
    %cst_120 = arith.constant 2.44140625E-4 : f32
    %402 = arith.mulf %401, %cst_120 : f32
    %403 = arith.mulf %397, %397 : vector<32x128xf32>
    %404 = vector.shape_cast %403 : vector<32x128xf32> to vector<1x32x128xf32>
    %cst_121 = arith.constant dense<0.000000e+00> : vector<1xf32>
    %405 = vector.multi_reduction <add>, %404, %cst_121 [1, 2] : vector<1x32x128xf32> to vector<1xf32>
    %406 = vector.shape_cast %405 : vector<1xf32> to vector<1x1x1xf32>
    %407 = vector.extract %406[0, 0, 0] : f32 from vector<1x1x1xf32>
    %cst_122 = arith.constant 2.44140625E-4 : f32
    %408 = arith.mulf %407, %cst_122 : f32
    %409 = arith.mulf %402, %402 : f32
    %410 = arith.subf %408, %409 : f32
    %cst_123 = arith.constant 0.000000e+00 : f32
    %411 = arith.maximumf %410, %cst_123 : f32
    %cst_124 = arith.constant 9.99999974E-6 : f32
    %412 = arith.addf %411, %cst_124 : f32
    %413 = math.rsqrt %412 : f32
    %414 = vector.broadcast %413 : f32 to vector<32x1xf32>
    %415 = arith.mulf %392, %414 : vector<32x1xf32>
    %416 = vector.broadcast %402 : f32 to vector<32x1xf32>
    %417 = arith.mulf %416, %415 : vector<32x1xf32>
    %418 = arith.subf %393, %417 : vector<32x1xf32>
    %419 = vector.broadcast %415 : vector<32x1xf32> to vector<32x128xf32>
    %420 = arith.mulf %397, %419 : vector<32x128xf32>
    %421 = vector.broadcast %418 : vector<32x1xf32> to vector<32x128xf32>
    %422 = arith.addf %420, %421 : vector<32x128xf32>
    %423 = arith.truncf %422 : vector<32x128xf32> to vector<32x128xbf16>
    %cst_125 = arith.constant dense<0.000000e+00> : vector<16x128xf32>
    %424 = tpu.matmul %8, %423, %cst_125 {dimension_numbers = #tpu.dot_dimension_numbers<[1], [0], [0], [1], [0, 0, 1, 1], [], []>} : vector<16x32xbf16>, vector<32x128xbf16>, vector<16x128xf32> -> vector<16x128xf32>
    %425 = vector.broadcast %9 : vector<16x1xf32> to vector<16x128xf32>
    %426 = arith.addf %424, %425 : vector<16x128xf32>
    %427 = vector.extract_strided_slice %426 {offsets = [0, 0], sizes = [8, 128], strides = [1, 1]} : vector<16x128xf32> to vector<8x128xf32>
    %428 = vector.extract_strided_slice %426 {offsets = [8, 0], sizes = [8, 128], strides = [1, 1]} : vector<16x128xf32> to vector<8x128xf32>
    %cst_126 = arith.constant 5.000000e-01 : f32
    %429 = vector.broadcast %cst_126 : f32 to vector<8x128xf32>
    %430 = arith.mulf %429, %428 : vector<8x128xf32>
    %431 = math.exp %430 : vector<8x128xf32>
    %c1_127 = arith.constant 1 : index
    %c0_128 = arith.constant 0 : index
    %c0_129 = arith.constant 0 : index
    %432 = vector.load %arg2[%c1_127, %c0_128, %c0_129] : memref<2x8x128xf32, #tpu.memory_space<vmem>>, vector<1x8x128xf32>
    %433 = vector.shape_cast %432 : vector<1x8x128xf32> to vector<8x128xf32>
    %434 = arith.mulf %431, %433 : vector<8x128xf32>
    %435 = arith.addf %427, %434 : vector<8x128xf32>
    %c1_130 = arith.constant 1 : index
    %c0_131 = arith.constant 0 : index
    %c0_132 = arith.constant 0 : index
    %436 = vector.load %arg13[%c1_130, %c0_131, %c0_132] : memref<2x24x128xf32, #tpu.memory_space<vmem>>, vector<1x16x128xf32>
    %437 = vector.shape_cast %436 : vector<1x16x128xf32> to vector<16x128xf32>
    %438 = vector.shape_cast %426 : vector<16x128xf32> to vector<1x16x128xf32>
    tpu.vector_store %arg13[%c1_130, %c0_131, %c0_132], %438 {strides = array<i32>} : memref<2x24x128xf32, #tpu.memory_space<vmem>>, vector<1x16x128xf32>,
    %c1_133 = arith.constant 1 : index
    %c16_134 = arith.constant 16 : index
    %c0_135 = arith.constant 0 : index
    %439 = vector.load %arg13[%c1_133, %c16_134, %c0_135] : memref<2x24x128xf32, #tpu.memory_space<vmem>>, vector<1x8x128xf32>
    %440 = vector.shape_cast %439 : vector<1x8x128xf32> to vector<8x128xf32>
    %441 = vector.shape_cast %435 : vector<8x128xf32> to vector<1x8x128xf32>
    tpu.vector_store %arg13[%c1_133, %c16_134, %c0_135], %441 {strides = array<i32>} : memref<2x24x128xf32, #tpu.memory_space<vmem>>, vector<1x8x128xf32>,
    return
  }
  func.func @transform_0(%arg0: i32) -> (i32, i32, i32) {
    %c0_i32 = arith.constant 0 : i32
    %c0_i32_0 = arith.constant 0 : i32
    %c0_i32_1 = arith.constant 0 : i32
    return %arg0, %c0_i32, %c0_i32_0 : i32, i32, i32
  }
  func.func @transform_1(%arg0: i32) -> (i32, i32, i32) {
    %c0_i32 = arith.constant 0 : i32
    %c0_i32_0 = arith.constant 0 : i32
    %c0_i32_1 = arith.constant 0 : i32
    return %arg0, %c0_i32, %c0_i32_0 : i32, i32, i32
  }
  func.func @transform_2(%arg0: i32) -> (i32, i32, i32) {
    %c0_i32 = arith.constant 0 : i32
    %c0_i32_0 = arith.constant 0 : i32
    %c0_i32_1 = arith.constant 0 : i32
    %c0_i32_2 = arith.constant 0 : i32
    return %c0_i32, %c0_i32_0, %c0_i32_1 : i32, i32, i32
  }
  func.func @transform_3(%arg0: i32) -> (i32, i32) {
    %c0_i32 = arith.constant 0 : i32
    %c0_i32_0 = arith.constant 0 : i32
    %c0_i32_1 = arith.constant 0 : i32
    return %c0_i32, %c0_i32_0 : i32, i32
  }
  func.func @transform_4(%arg0: i32) -> (i32, i32, i32) {
    %c0_i32 = arith.constant 0 : i32
    %c0_i32_0 = arith.constant 0 : i32
    %c0_i32_1 = arith.constant 0 : i32
    %c0_i32_2 = arith.constant 0 : i32
    return %c0_i32, %c0_i32_0, %c0_i32_1 : i32, i32, i32
  }
  func.func @transform_5(%arg0: i32) -> (i32, i32) {
    %c0_i32 = arith.constant 0 : i32
    %c0_i32_0 = arith.constant 0 : i32
    %c0_i32_1 = arith.constant 0 : i32
    return %c0_i32, %c0_i32_0 : i32, i32
  }
  func.func @transform_6(%arg0: i32) -> (i32, i32, i32) {
    %c0_i32 = arith.constant 0 : i32
    %c0_i32_0 = arith.constant 0 : i32
    %c0_i32_1 = arith.constant 0 : i32
    %c0_i32_2 = arith.constant 0 : i32
    return %c0_i32, %c0_i32_0, %c0_i32_1 : i32, i32, i32
  }
  func.func @transform_7(%arg0: i32) -> (i32, i32) {
    %c0_i32 = arith.constant 0 : i32
    %c0_i32_0 = arith.constant 0 : i32
    %c0_i32_1 = arith.constant 0 : i32
    return %c0_i32, %c0_i32_0 : i32, i32
  }
  func.func @transform_8(%arg0: i32) -> (i32, i32, i32) {
    %c0_i32 = arith.constant 0 : i32
    %c0_i32_0 = arith.constant 0 : i32
    %c0_i32_1 = arith.constant 0 : i32
    %c0_i32_2 = arith.constant 0 : i32
    return %c0_i32, %c0_i32_0, %c0_i32_1 : i32, i32, i32
  }
  func.func @transform_9(%arg0: i32) -> (i32, i32) {
    %c0_i32 = arith.constant 0 : i32
    %c0_i32_0 = arith.constant 0 : i32
    %c0_i32_1 = arith.constant 0 : i32
    return %c0_i32, %c0_i32_0 : i32, i32
  }
  func.func @transform_10(%arg0: i32) -> (i32, i32) {
    %c0_i32 = arith.constant 0 : i32
    %c0_i32_0 = arith.constant 0 : i32
    %c0_i32_1 = arith.constant 0 : i32
    return %c0_i32, %c0_i32_0 : i32, i32
  }
  func.func @transform_11(%arg0: i32) -> (i32, i32) {
    %c0_i32 = arith.constant 0 : i32
    %c0_i32_0 = arith.constant 0 : i32
    %c0_i32_1 = arith.constant 0 : i32
    return %c0_i32, %c0_i32_0 : i32, i32
  }
  func.func @transform_12(%arg0: i32) -> (i32, i32, i32) {
    %c0_i32 = arith.constant 0 : i32
    %c0_i32_0 = arith.constant 0 : i32
    %c0_i32_1 = arith.constant 0 : i32
    return %arg0, %c0_i32, %c0_i32_0 : i32, i32, i32
  }
}

</mosaic_0001>

<bundles_post_ra>
// kernel: tpu_custom_call.1
= control target key start
LH: loop header
LB: loop body
LE: loop exit
PB: predicated region body
PF: predicated region fallthrough
CT: control target
= control target key end

     0   :  { %s3600_s0 = inlined_call_operand.vmem [shape: bf16[2,16,128], index: 0, kind: input, shape index: {}]   ;;  %s3601_s1 = inlined_call_operand.vmem [shape: f32[2,8,128], index: 1, kind: input, shape index: {}]   ;;  %s3602_s2 = inlined_call_operand.vmem [shape: bf16[3,32,16], index: 2, kind: input, shape index: {}]   ;;  %s3603_s3 = inlined_call_operand.vmem [shape: f32[32,3], index: 3, kind: input, shape index: {}]   ;;  %s3604_s4 = inlined_call_operand.vmem [shape: bf16[3,32,32], index: 4, kind: input, shape index: {}]   ;;  %s3605_s5 = inlined_call_operand.vmem [shape: f32[32,3], index: 5, kind: input, shape index: {}]   ;;  %s3606_s6 = inlined_call_operand.vmem [shape: bf16[3,32,32], index: 6, kind: input, shape index: {}]   ;;  %s3607_s7 = inlined_call_operand.vmem [shape: f32[32,3], index: 7, kind: input, shape index: {}]   ;;  %s3608_s8 = inlined_call_operand.vmem [shape: bf16[3,32,32], index: 8, kind: input, shape index: {}]   ;;  %s3609_s9 = inlined_call_operand.vmem [shape: f32[32,3], index: 9, kind: input, shape index: {}]   ;;  %s3610_s10 = inlined_call_operand.vmem [shape: bf16[16,32], index: 10, kind: input, shape index: {}]   ;;  %s3611_s11 = inlined_call_operand.vmem [shape: f32[16,1], index: 11, kind: input, shape index: {}]   ;;  %s3612_s12 = inlined_call_operand.hbm [shape: f32[2,24,128], index: 12, kind: output, shape index: {}]  }
   0x1   :  { %v2487_v0 = vld [vmem:[%s3600_s0] sm:$0xff] }
   0x2   :  { %17 = vsyncpa [#allocation3], 0  ;;  %s2688_s23 = smov 127   ;;  %156 = vmatpush.bf16.msra.mxu0 %v2487_v0  ;;  %s2689_s24 = smov 1   ;;  %v2464_v1 = vld [vmem:[%s3602_s2 + $0x10] sm:$0xff]  ;;  %vm142_vm0 = vcmask 130048  }
   0x3   :  { %125 = vrot.lane.b32.xlu0 %v2487_v0, %s2688_s23  ;;  %v2465_v2 = vld [vmem:[%s3602_s2 + $0x18] sm:$0xff]  ;;  %v2778_v3 = vld [vmem:[%s3603_s3] sm:$0xff]  ;;  %v2690_v4 = vmov 0   ;;  %v2786_v5 = vld [vmem:[%s3603_s3 + $0x8] sm:$0xff]  ;;  %vm127_vm1 = vcmask 1039360   ;;  %vm120_vm2 = vcmask 7168  }
   0x4   :  { %2546 = vset.pattern.permute.xlu1 %v2690_v4  ;;  %2547 = vset.pattern.permute.xlu2 %v2690_v4  ;;  %v2791_v6 = vld [vmem:[%s3603_s3 + $0x10] sm:$0xff]  ;;  %v2466_v9 = vld [vmem:[%s3602_s2 + $0x20] sm:$0xff]  ;;  %v2802_v10 = vld [vmem:[%s3603_s3 + $0x18] sm:$0xff]  ;;  %s2691_s17 = smov 0.0   ;;  %vm440_vm7 = vcmask 261120  }
   0x5   :  { %2285 = vmatmul.msk.bf16.vlgmr.msra.gmra.mxu0 %vm142_vm0, %v2464_v1  ;;  %244 = vperm.xlu1 %2546, %v2778_v3   ;;  %vm2806_vm3 = vmneg %vm120_vm2  ;;  %v2462_v13 = vld [vmem:[%s3602_s2] sm:$0xff]  ;;  %v2467_v14 = vld [vmem:[%s3602_s2 + $0x28] sm:$0xff] }
   0x6   :  { %254 = vperm.xlu2 %2547, %v2791_v6   ;;  %v2463_v15 = vld [vmem:[%s3602_s2 + $0x8] sm:$0xff] }
   0x7   :  { %v2656_v11 = vld [vmem:[%s3608_s8 + $0x8] sm:$0xff] }
   0xb   :  { %118 = vrot.lane.b32.xlu0 %v2487_v0, %s2689_s24 }
   0xd   :  { %249 = vperm.xlu1 %2546, %v2786_v5  }
   0xe   :  { %259 = vperm.xlu2 %2547, %v2802_v10  }
  0x15   :  { %2286 = vmatmul.msk.bf16.gmra.mxu0 %vm142_vm0, %v2465_v2 }
  0x60   :  { %v2828_v32 = vpop.permute.xlu2 %254 }
  0x68   :  { %v2841_v46 = vpop.permute.xlu2 %259 }
  0x75   :  { %v126_v7 = vpop.permute.xlu0 %125 }
  0x76   :  { %v129_v8 = vsel %vm127_vm1, %v126_v7, 0 }
  0x77   :  { %226 = vmatpush.bf16.msra.mxu2 %v129_v8  ;;  %v2824_v20 = vpop.permute.xlu1 %244 }
  0x7a   :  { %2307 = vmatmul.msk.bf16.vlgmr.msra.gmra.mxu2 %vm142_vm0, %v2466_v9 }
  0x7d   :  { %v119_v12 = vpop.permute.xlu0 %118 }
  0x7e   :  { %2296 = vmatpush.bf16.msk.msra.mxu1 %vm2806_vm3, %v119_v12 }
  0x7f   :  { %v2826_v27 = vpop.permute.xlu1 %249 }
  0x81   :  { %2297 = vmatmul.msk.bf16.vlgmr.msra.gmra.mxu1 %vm142_vm0, %v2462_v13 }
  0x82   :  { %v158_v16 = vpop.f32.mrf.mxu0 }
  0x8a   :  { %2308 = vmatmul.msk.bf16.gmra.mxu2 %vm142_vm0, %v2467_v14  ;;  %v160_v19 = vpop.f32.mrf.mxu0 }
  0x91   :  { %2298 = vmatmul.msk.bf16.gmra.mxu1 %vm142_vm0, %v2463_v15 }
  0x92   :  { %v163_v25 = vpop.f32.mrf.mxu0 }
  0x9a   :  { %v165_v38 = vpop.f32.mrf.mxu0 }
  0xfd   :  { %v228_v17 = vpop.f32.mrf.mxu2 }
  0xfe   :  { %v193_v18 = vpop.f32.mrf.mxu1 }
  0xff   :  { %v194_v24 = vadd.f32 %v193_v18, %v158_v16 }
 0x101   :  { %v238_v30 = vadd.f32 %v228_v17, %v194_v24 }
 0x103   :  { %v262_v35 = vadd.f32 %v2824_v20, %v238_v30 }
 0x105   :  { %v230_v21 = vpop.f32.mrf.mxu2  ;;  %v2835_v40 = vmax.f32 %v262_v35, 0.0 }
 0x106   :  { %v195_v22 = vpop.f32.mrf.mxu1 }
 0x107   :  { %v196_v23 = vadd.f32 %v195_v22, %v160_v19  ;;  %v283_v49 = vmul.f32 %v2835_v40, %v2835_v40 }
 0x109   :  { %v239_v26 = vadd.f32 %v230_v21, %v196_v23  ;;  %v2692_v23 = vmov 1  }
 0x10a   :  { %2548 = vset.pattern.permute.xlu2 %v2692_v23 }
 0x10b   :  { %v263_v33 = vadd.f32 %v2826_v27, %v239_v26 }
 0x10d   :  { %v233_v28 = vpop.f32.mrf.mxu2  ;;  %v2833_v37 = vmax.f32 %v263_v33, 0.0 }
 0x10e   :  { %v198_v29 = vpop.f32.mrf.mxu1 }
 0x10f   :  { %v199_v31 = vadd.f32 %v198_v29, %v163_v25  ;;  %v284_v45 = vmul.f32 %v2833_v37, %v2833_v37  ;;  %v270_v48 = vadd.f32 %v2833_v37, %v2835_v40 }
 0x111   :  { %v240_v34 = vadd.f32 %v233_v28, %v199_v31  ;;  %v287_v53 = vadd.f32 %v284_v45, %v283_v49 }
 0x113   :  { %v264_v36 = vadd.f32 %v2828_v32, %v240_v34 }
 0x115   :  { %v2837_v41 = vmax.f32 %v264_v36, 0.0  ;;  %v235_v43 = vpop.f32.mrf.mxu2  ;;  %v2693_v36 = vmov 2  }
 0x116   :  { %v200_v39 = vpop.f32.mrf.mxu1  ;;  %2549 = vset.pattern.permute.xlu0 %v2693_v36  ;;  %2550 = vset.pattern.permute.xlu1 %v2693_v36 }
 0x117   :  { %v201_v42 = vadd.f32 %v200_v39, %v165_v38  ;;  %v285_v50 = vmul.f32 %v2837_v41, %v2837_v41  ;;  %v271_v52 = vadd.f32 %v270_v48, %v2837_v41 }
 0x119   :  { %v241_v44 = vadd.f32 %v235_v43, %v201_v42  ;;  %v288_v56 = vadd.f32 %v287_v53, %v285_v50 }
 0x11b   :  { %v265_v47 = vadd.f32 %v2841_v46, %v241_v44 }
 0x11d   :  { %v2850_v51 = vmax.f32 %v265_v47, 0.0 }
 0x11f   :  { %v272_v54 = vadd.f32 %v271_v52, %v2850_v51  ;;  %v286_v55 = vmul.f32 %v2850_v51, %v2850_v51 }
 0x121   :  { %273 = vadd.xlane.f32.xlu0 %v272_v54  ;;  %v289_v57 = vadd.f32 %v288_v56, %v286_v55 }
 0x123   :  { %290 = vadd.xlane.f32.xlu1 %v289_v57 }
 0x194   :  { %v274_v58 = vpop.xlane.xlu0 %273 }
 0x195   :  { %v275_v59 = vrot.slane %v274_v58, 4 }
 0x196   :  { %v291_v60 = vpop.xlane.xlu1 %290 }
 0x197   :  { %v276_v61 = vadd.f32 %v275_v59, %v274_v58  ;;  %v292_v62 = vrot.slane %v291_v60, 4 }
 0x199   :  { %v277_v63 = vrot.slane %v276_v61, 2  ;;  %v293_v0 = vadd.f32 %v292_v62, %v291_v60 }
 0x19b   :  { %v278_v1 = vadd.f32 %v277_v63, %v276_v61  ;;  %v294_v2 = vrot.slane %v293_v0, 2 }
 0x19d   :  { %v279_v7 = vrot.slane %v278_v1, 1  ;;  %v295_v8 = vadd.f32 %v294_v2, %v293_v0 }
 0x19f   :  { %v280_v9 = vadd.f32 %v279_v7, %v278_v1  ;;  %v296_v12 = vrot.slane %v295_v8, 1 }
 0x1a1   :  { %2489 = vpush %v280_v9  ;;  %v297_v13 = vadd.f32 %v296_v12, %v295_v8  ;;  %v2470_v12 = vld [vmem:[%s3604_s4 + $0x10] sm:$0xff] }
 0x1a3   :  { %2491 = vpush %v297_v13  ;;  %v2897_v13 = vld [vmem:[%s3605_s5] sm:$0xff] }
 0x1d2   :  { %s2490_s29 = spop %2489 }
 0x1d3   :  { %s282_s30 = smul.f32 0.00024414063, %s2490_s29 }
 0x1d4   :  { %s2492_s13 = spop %2491 }
 0x1d5   :  { %s300_s14 = smul.f32 %s282_s30, %s282_s30  ;;  %v321_v26 = vstv %s282_s30 }
 0x1d6   :  { %s299_s15 = smul.f32 0.00024414063, %s2492_s13 }
 0x1d8   :  { %s301_s16 = ssub.f32 %s299_s15, %s300_s14 }
 0x1da   :  { %s302_s18 = smax.f32 %s2691_s17, %s301_s16 }
 0x1db   :  { %s303_s19 = sadd.f32 1e-05, %s302_s18 }
 0x1dd   :  { %v304_v14 = vstv %s303_s19 }
 0x1de   :  { %2602 = vrsqrt.f32 %v304_v14  ;;  %vm311_vm5 = vweird.f32 %v304_v14 }
 0x1e4   :  { %v2603_v15 = vpop.eup %2602 }
 0x1e5   :  { %v306_v16 = vmul.f32 %v2603_v15, %v304_v14  ;;  %vm312_vm4 = vweird.f32 %v2603_v15 }
 0x1e6   :  { %vm313_vm6 = vmor %vm311_vm5, %vm312_vm4 }
 0x1e7   :  { %v307_v17 = vmul.f32 %v2603_v15, %v306_v16 }
 0x1e9   :  { %v308_v18 = vmul.f32 0.5, %v307_v17 }
 0x1eb   :  { %v309_v19 = vsub.f32 1.5, %v308_v18  ;;  %v2910_v18 = vld [vmem:[%s3605_s5 + $0x18] sm:$0xff] }
 0x1ed   :  { %v310_v21 = vmul.f32 %v2603_v15, %v309_v19  ;;  %v2915_v19 = vld [vmem:[%s3605_s5 + $0x10] sm:$0xff] }
 0x1ef   :  { %v314_v22 = vsel %vm313_vm6, %v2603_v15, %v310_v21  ;;  %v2468_v15 = vld [vmem:[%s3604_s4] sm:$0xff]  ;;  %v2920_v21 = vld [vmem:[%s3605_s5 + $0x8] sm:$0xff] }
 0x1f0   :  { %2493 = vpush %v314_v22  ;;  %v2469_v22 = vld [vmem:[%s3604_s4 + $0x8] sm:$0xff] }
 0x221   :  { %s2494_s20 = spop %2493 }
 0x222   :  { %v316_v24 = vstv %s2494_s20 }
 0x223   :  { %v319_v25 = vmul.f32 %v316_v24, %v2791_v6  ;;  %v320_v29 = vmul.f32 %v316_v24, %v2802_v10  ;;  %v317_v31 = vmul.f32 %v316_v24, %v2778_v3  ;;  %v318_v34 = vmul.f32 %v316_v24, %v2786_v5 }
 0x225   :  { %v324_v28 = vmul.f32 %v321_v26, %v319_v25  ;;  %v325_v30 = vmul.f32 %v321_v26, %v320_v29  ;;  %v322_v33 = vmul.f32 %v321_v26, %v317_v31  ;;  %v323_v35 = vmul.f32 %v321_v26, %v318_v34  ;;  %v2472_v26 = vld [vmem:[%s3604_s4 + $0x20] sm:$0xff] }
 0x227   :  { %334 = vrot.lane.b32.xlu2 %v324_v28, %s2689_s24  ;;  %v2473_v28 = vld [vmem:[%s3604_s4 + $0x28] sm:$0xff] }
 0x22f   :  { %336 = vrot.lane.b32.xlu2 %v325_v30, %s2689_s24 }
 0x237   :  { %330 = vrot.lane.b32.xlu2 %v322_v33, %s2689_s24 }
 0x23f   :  { %332 = vrot.lane.b32.xlu2 %v323_v35, %s2689_s24 }
 0x247   :  { %358 = vperm.xlu2 %2548, %v319_v25  }
 0x24f   :  { %363 = vperm.xlu2 %2548, %v320_v29  }
 0x257   :  { %348 = vperm.xlu2 %2548, %v317_v31  }
 0x25f   :  { %353 = vperm.xlu2 %2548, %v318_v34  }
 0x267   :  { %2551 = vset.pattern.permute.xlu2 %v2693_v36 }
 0x281   :  { %v335_v38 = vpop.permute.xlu2 %334 }
 0x282   :  { %v344_v39 = vsub.f32 %v2791_v6, %v335_v38 }
 0x284   :  { %382 = vperm.xlu0 %2549, %v344_v39  }
 0x289   :  { %v337_v42 = vpop.permute.xlu2 %336 }
 0x28a   :  { %v345_v43 = vsub.f32 %v2802_v10, %v337_v42 }
 0x28c   :  { %387 = vperm.xlu1 %2550, %v345_v43   ;;  %2554 = vset.pattern.permute.xlu0 %v2690_v4 }
 0x291   :  { %v331_v44 = vpop.permute.xlu2 %330 }
 0x292   :  { %v342_v45 = vsub.f32 %v2778_v3, %v331_v44 }
 0x294   :  { %372 = vperm.xlu2 %2551, %v342_v45  }
 0x299   :  { %v333_v47 = vpop.permute.xlu2 %332 }
 0x29a   :  { %v343_v48 = vsub.f32 %v2786_v5, %v333_v47 }
 0x29c   :  { %377 = vperm.xlu1 %2550, %v343_v48   ;;  %2553 = vset.pattern.permute.xlu2 %v2690_v4 }
 0x2a1   :  { %v359_v6 = vpop.permute.xlu2 %358 }
 0x2a2   :  { %v368_v10 = vmul.f32 %v359_v6, %v2837_v41 }
 0x2a4   :  { %2552 = vset.pattern.permute.xlu1 %v2690_v4 }
 0x2a9   :  { %v364_v49 = vpop.permute.xlu2 %363 }
 0x2aa   :  { %v369_v54 = vmul.f32 %v364_v49, %v2850_v51 }
 0x2b1   :  { %v349_v50 = vpop.permute.xlu2 %348 }
 0x2b2   :  { %v366_v62 = vmul.f32 %v349_v50, %v2835_v40  ;;  %v2471_v40 = vld [vmem:[%s3604_s4 + $0x18] sm:$0xff] }
 0x2b9   :  { %v354_v57 = vpop.permute.xlu2 %353 }
 0x2ba   :  { %v367_v63 = vmul.f32 %v354_v57, %v2833_v37 }
 0x2ee   :  { %v373_v61 = vpop.permute.xlu2 %372 }
 0x2ef   :  { %v390_v41 = vadd.f32 %v373_v61, %v366_v62 }
 0x2f1   :  { %v394_v0 = vpack.c.bf16 %v390_v41, %v390_v41 }
 0x2f3   :  { %v402_v7 = vunpack.c.l.b16 %v394_v0 }
 0x2f6   :  { %v383_v52 = vpop.permute.xlu0 %382 }
 0x2f7   :  { %v392_v53 = vadd.f32 %v383_v52, %v368_v10 }
 0x2f9   :  { %v396_v3 = vpack.c.bf16 %v392_v53, %v392_v53 }
 0x2fb   :  { %v404_v5 = vunpack.c.l.b16 %v396_v3 }
 0x2fe   :  { %v388_v55 = vpop.permute.xlu1 %387 }
 0x2ff   :  { %v393_v56 = vadd.f32 %v388_v55, %v369_v54 }
 0x301   :  { %v397_v58 = vpack.c.bf16 %v393_v56, %v393_v56 }
 0x303   :  { %v405_v59 = vunpack.c.l.b16 %v397_v58 }
 0x305   :  { %v407_v60 = vpack.c.b16 %v405_v59, %v404_v5 }
 0x307   :  { %420 = vrot.lane.b32.xlu1 %v407_v60, %s2688_s23  ;;  %410 = vrot.lane.b32.xlu2 %v407_v60, %s2689_s24 }
 0x308   :  { %453 = vmatpush.bf16.msra.mxu3 %v407_v60 }
 0x30e   :  { %v378_v51 = vpop.permute.xlu1 %377 }
 0x30f   :  { %v391_v1 = vadd.f32 %v378_v51, %v367_v63  ;;  %542 = vperm.xlu1 %2552, %v2897_v13  }
 0x311   :  { %v395_v2 = vpack.c.bf16 %v391_v1, %v391_v1 }
 0x313   :  { %v403_v8 = vunpack.c.l.b16 %v395_v2 }
 0x315   :  { %v406_v9 = vpack.c.b16 %v403_v8, %v402_v7 }
 0x317   :  { %418 = vrot.lane.b32.xlu0 %v406_v9, %s2688_s23  ;;  %408 = vrot.lane.b32.xlu2 %v406_v9, %s2689_s24 }
 0x318   :  { %454 = vmatpush.bf16.msra.mxu3 %v406_v9  ;;  %557 = vperm.xlu1 %2552, %v2910_v18  }
 0x31b   :  { %2317 = vmatmul.msk.bf16.vlgmr.msra.gmra.mxu3 %vm440_vm7, %v2470_v12 }
 0x31f   :  { %552 = vperm.xlu0 %2554, %v2915_v19   ;;  %547 = vperm.xlu2 %2553, %v2920_v21  }
 0x320   :  { %2557 = vset.pattern.permute.xlu1 %v2693_v36 }
 0x327   :  { %2556 = vset.pattern.permute.xlu0 %v2692_v23  ;;  %2555 = vset.pattern.permute.xlu2 %v2692_v23 }
 0x32b   :  { %2318 = vmatmul.msk.bf16.gmra.mxu3 %vm440_vm7, %v2471_v40 }
 0x361   :  { %v411_v37 = vpop.permute.xlu2 %410 }
 0x362   :  { %2328 = vmatpush.bf16.msk.msrb.mxu0 %vm2806_vm3, %v411_v37 }
 0x371   :  { %v409_v14 = vpop.permute.xlu2 %408 }
 0x372   :  { %2330 = vmatpush.bf16.msk.msrb.mxu0 %vm2806_vm3, %v409_v14 }
 0x375   :  { %2331 = vmatmul.msk.bf16.vlgmr.msrb.gmra.mxu0 %vm440_vm7, %v2468_v15 }
 0x379   :  { %v421_v16 = vpop.permute.xlu1 %420  ;;  %v2941_v47 = vpop.permute.xlu2 %547 }
 0x37a   :  { %v426_v17 = vsel %vm127_vm1, %v421_v16, 0 }
 0x37b   :  { %523 = vmatpush.bf16.msrb.mxu1 %v426_v17 }
 0x381   :  { %v2943_v6 = vpop.permute.xlu1 %542 }
 0x385   :  { %2332 = vmatmul.msk.bf16.gmra.mxu0 %vm440_vm7, %v2469_v22 }
 0x389   :  { %v419_v24 = vpop.permute.xlu0 %418 }
 0x38a   :  { %v423_v25 = vsel %vm127_vm1, %v419_v24, 0  ;;  %v2958_v62 = vpop.permute.xlu1 %557 }
 0x38b   :  { %524 = vmatpush.bf16.msrb.mxu1 %v423_v25 }
 0x38e   :  { %2341 = vmatmul.msk.bf16.vlgmr.msrb.gmra.mxu1 %vm440_vm7, %v2472_v26 }
 0x391   :  { %v2945_v50 = vpop.permute.xlu0 %552 }
 0x39e   :  { %2342 = vmatmul.msk.bf16.gmra.mxu1 %vm440_vm7, %v2473_v28  ;;  %v456_v29 = vpop.f32.mrf.mxu3 }
 0x3a6   :  { %v458_v31 = vpop.f32.mrf.mxu3 }
 0x3ae   :  { %v461_v38 = vpop.f32.mrf.mxu3 }
 0x3b6   :  { %v463_v55 = vpop.f32.mrf.mxu3 }
 0x3f2   :  { %v491_v30 = vpop.f32.mrf.mxu0 }
 0x3f3   :  { %v492_v42 = vadd.f32 %v491_v30, %v456_v29 }
 0x3fa   :  { %v493_v33 = vpop.f32.mrf.mxu0 }
 0x3fb   :  { %v494_v43 = vadd.f32 %v493_v33, %v458_v31 }
 0x402   :  { %v496_v39 = vpop.f32.mrf.mxu0 }
 0x403   :  { %v497_v44 = vadd.f32 %v496_v39, %v461_v38 }
 0x40a   :  { %v498_v3 = vpop.f32.mrf.mxu0 }
 0x40b   :  { %v526_v34 = vpop.f32.mrf.mxu1  ;;  %v499_v58 = vadd.f32 %v498_v3, %v463_v55 }
 0x40c   :  { %v536_v48 = vadd.f32 %v526_v34, %v492_v42 }
 0x40e   :  { %v560_v53 = vadd.f32 %v2943_v6, %v536_v48 }
 0x410   :  { %v2952_v57 = vmax.f32 %v560_v53, 0.0 }
 0x412   :  { %v581_v41 = vmul.f32 %v2952_v57, %v2952_v57 }
 0x413   :  { %v528_v35 = vpop.f32.mrf.mxu1 }
 0x414   :  { %v537_v45 = vadd.f32 %v528_v35, %v494_v43 }
 0x416   :  { %v561_v52 = vadd.f32 %v2941_v47, %v537_v45 }
 0x418   :  { %v2950_v56 = vmax.f32 %v561_v52, 0.0 }
 0x41a   :  { %v582_v60 = vmul.f32 %v2950_v56, %v2950_v56  ;;  %v568_v51 = vadd.f32 %v2950_v56, %v2952_v57 }
 0x41b   :  { %v531_v49 = vpop.f32.mrf.mxu1 }
 0x41c   :  { %v538_v10 = vadd.f32 %v531_v49, %v497_v44  ;;  %v585_v7 = vadd.f32 %v582_v60, %v581_v41 }
 0x41e   :  { %v562_v54 = vadd.f32 %v2945_v50, %v538_v10 }
 0x420   :  { %v2954_v5 = vmax.f32 %v562_v54, 0.0 }
 0x422   :  { %v583_v0 = vmul.f32 %v2954_v5, %v2954_v5  ;;  %v569_v2 = vadd.f32 %v568_v51, %v2954_v5 }
 0x423   :  { %v533_v59 = vpop.f32.mrf.mxu1 }
 0x424   :  { %v539_v61 = vadd.f32 %v533_v59, %v499_v58  ;;  %v586_v12 = vadd.f32 %v585_v7, %v583_v0 }
 0x426   :  { %v563_v63 = vadd.f32 %v2958_v62, %v539_v61 }
 0x428   :  { %v2967_v1 = vmax.f32 %v563_v63, 0.0 }
 0x42a   :  { %v570_v8 = vadd.f32 %v569_v2, %v2967_v1  ;;  %v584_v9 = vmul.f32 %v2967_v1, %v2967_v1 }
 0x42c   :  { %571 = vadd.xlane.f32.xlu2 %v570_v8  ;;  %v587_v37 = vadd.f32 %v586_v12, %v584_v9 }
 0x42e   :  { %588 = vadd.xlane.f32.xlu1 %v587_v37 }
 0x49f   :  { %v572_v40 = vpop.xlane.xlu2 %571 }
 0x4a0   :  { %v573_v14 = vrot.slane %v572_v40, 4 }
 0x4a1   :  { %v589_v15 = vpop.xlane.xlu1 %588 }
 0x4a2   :  { %v574_v16 = vadd.f32 %v573_v14, %v572_v40  ;;  %v590_v17 = vrot.slane %v589_v15, 4 }
 0x4a4   :  { %v575_v22 = vrot.slane %v574_v16, 2  ;;  %v591_v24 = vadd.f32 %v590_v17, %v589_v15 }
 0x4a6   :  { %v592_v25 = vrot.slane %v591_v24, 2  ;;  %v576_v26 = vadd.f32 %v575_v22, %v574_v16 }
 0x4a8   :  { %v577_v28 = vrot.slane %v576_v26, 1  ;;  %v593_v29 = vadd.f32 %v592_v25, %v591_v24 }
 0x4aa   :  { %v578_v30 = vadd.f32 %v577_v28, %v576_v26  ;;  %v594_v31 = vrot.slane %v593_v29, 1 }
 0x4ac   :  { %2495 = vpush %v578_v30  ;;  %v595_v33 = vadd.f32 %v594_v31, %v593_v29 }
 0x4ae   :  { %2497 = vpush %v595_v33 }
 0x4dd   :  { %s2496_s28 = spop %2495 }
 0x4de   :  { %s580_s29 = smul.f32 0.00024414063, %s2496_s28 }
 0x4df   :  { %s2498_s30 = spop %2497 }
 0x4e0   :  { %s598_s13 = smul.f32 %s580_s29, %s580_s29  ;;  %v619_v52 = vstv %s580_s29 }
 0x4e1   :  { %s597_s14 = smul.f32 0.00024414063, %s2498_s30 }
 0x4e3   :  { %s599_s15 = ssub.f32 %s597_s14, %s598_s13 }
 0x4e5   :  { %s600_s16 = smax.f32 %s2691_s17, %s599_s15 }
 0x4e6   :  { %s601_s18 = sadd.f32 1e-05, %s600_s16 }
 0x4e8   :  { %v602_v34 = vstv %s601_s18 }
 0x4e9   :  { %2604 = vrsqrt.f32 %v602_v34  ;;  %vm609_vm9 = vweird.f32 %v602_v34 }
 0x4ef   :  { %v2605_v35 = vpop.eup %2604 }
 0x4f0   :  { %v604_v38 = vmul.f32 %v2605_v35, %v602_v34  ;;  %vm610_vm8 = vweird.f32 %v2605_v35 }
 0x4f1   :  { %vm611_vm10 = vmor %vm609_vm9, %vm610_vm8 }
 0x4f2   :  { %v605_v39 = vmul.f32 %v2605_v35, %v604_v38 }
 0x4f4   :  { %v606_v42 = vmul.f32 0.5, %v605_v39 }
 0x4f6   :  { %v607_v43 = vsub.f32 1.5, %v606_v42 }
 0x4f8   :  { %v608_v44 = vmul.f32 %v2605_v35, %v607_v43 }
 0x4fa   :  { %v612_v45 = vsel %vm611_vm10, %v2605_v35, %v608_v44  ;;  %v2474_v44 = vld [vmem:[%s3606_s6] sm:$0xff] }
 0x4fb   :  { %2499 = vpush %v612_v45  ;;  %v3019_v45 = vld [vmem:[%s3607_s7 + $0x8] sm:$0xff] }
 0x52c   :  { %s2500_s19 = spop %2499 }
 0x52d   :  { %v614_v48 = vstv %s2500_s19 }
 0x52e   :  { %v617_v49 = vmul.f32 %v614_v48, %v2915_v19  ;;  %v618_v53 = vmul.f32 %v614_v48, %v2910_v18  ;;  %v615_v54 = vmul.f32 %v614_v48, %v2897_v13  ;;  %v616_v58 = vmul.f32 %v614_v48, %v2920_v21  ;;  %v3024_v48 = vld [vmem:[%s3607_s7 + $0x10] sm:$0xff] }
 0x530   :  { %656 = vperm.xlu2 %2555, %v617_v49   ;;  %v622_v10 = vmul.f32 %v619_v52, %v617_v49  ;;  %v623_v55 = vmul.f32 %v619_v52, %v618_v53  ;;  %v620_v3 = vmul.f32 %v619_v52, %v615_v54  ;;  %v621_v59 = vmul.f32 %v619_v52, %v616_v58  ;;  %v3029_v49 = vld [vmem:[%s3607_s7] sm:$0xff]  ;;  %v3038_v52 = vld [vmem:[%s3607_s7 + $0x18] sm:$0xff] }
 0x532   :  { %632 = vrot.lane.b32.xlu0 %v622_v10, %s2689_s24 }
 0x538   :  { %646 = vperm.xlu2 %2555, %v615_v54   ;;  %v2478_v54 = vld [vmem:[%s3606_s6 + $0x20] sm:$0xff] }
 0x53a   :  { %634 = vrot.lane.b32.xlu0 %v623_v55, %s2689_s24  ;;  %v2475_v55 = vld [vmem:[%s3606_s6 + $0x8] sm:$0xff] }
 0x540   :  { %2560 = vset.pattern.permute.xlu2 %v2693_v36 }
 0x542   :  { %628 = vrot.lane.b32.xlu0 %v620_v3, %s2689_s24  ;;  %v2479_v3 = vld [vmem:[%s3606_s6 + $0x28] sm:$0xff] }
 0x54a   :  { %630 = vrot.lane.b32.xlu0 %v621_v59, %s2689_s24 }
 0x552   :  { %661 = vperm.xlu0 %2556, %v618_v53  }
 0x55a   :  { %2559 = vset.pattern.permute.xlu0 %v2693_v36 }
 0x5a4   :  { %v633_v60 = vpop.permute.xlu0 %632 }
 0x5a5   :  { %v642_v61 = vsub.f32 %v2915_v19, %v633_v60  ;;  %v657_v19 = vpop.permute.xlu2 %656 }
 0x5a6   :  { %v666_v9 = vmul.f32 %v657_v19, %v2954_v5 }
 0x5a7   :  { %680 = vperm.xlu1 %2557, %v642_v61  }
 0x5ac   :  { %v635_v41 = vpop.permute.xlu0 %634 }
 0x5ad   :  { %v643_v63 = vsub.f32 %v2910_v18, %v635_v41  ;;  %v647_v15 = vpop.permute.xlu2 %646 }
 0x5ae   :  { %v664_v25 = vmul.f32 %v647_v15, %v2952_v57  ;;  %v2476_v57 = vld [vmem:[%s3606_s6 + $0x10] sm:$0xff] }
 0x5af   :  { %2558 = vset.pattern.permute.xlu1 %v2692_v23  ;;  %685 = vperm.xlu0 %2559, %v643_v63  }
 0x5b0   :  { %651 = vperm.xlu1 %2558, %v616_v58  }
 0x5b4   :  { %v629_v51 = vpop.permute.xlu0 %628 }
 0x5b5   :  { %v640_v0 = vsub.f32 %v2897_v13, %v629_v51 }
 0x5b7   :  { %670 = vperm.xlu2 %2560, %v640_v0  }
 0x5b8   :  { %2563 = vset.pattern.permute.xlu1 %v2690_v4 }
 0x5bc   :  { %v631_v2 = vpop.permute.xlu0 %630 }
 0x5bd   :  { %v641_v7 = vsub.f32 %v2920_v21, %v631_v2 }
 0x5bf   :  { %675 = vperm.xlu0 %2559, %v641_v7   ;;  %2561 = vset.pattern.permute.xlu2 %v2690_v4 }
 0x5c4   :  { %v662_v18 = vpop.permute.xlu0 %661 }
 0x5c5   :  { %v667_v37 = vmul.f32 %v662_v18, %v2967_v1 }
 0x5c7   :  { %2562 = vset.pattern.permute.xlu0 %v2690_v4 }
 0x611   :  { %v671_v24 = vpop.permute.xlu2 %670 }
 0x612   :  { %v688_v26 = vadd.f32 %v671_v24, %v664_v25 }
 0x614   :  { %v692_v29 = vpack.c.bf16 %v688_v26, %v688_v26 }
 0x616   :  { %v700_v33 = vunpack.c.l.b16 %v692_v29 }
 0x619   :  { %v681_v8 = vpop.permute.xlu1 %680 }
 0x61a   :  { %v690_v12 = vadd.f32 %v681_v8, %v666_v9 }
 0x61c   :  { %v694_v40 = vpack.c.bf16 %v690_v12, %v690_v12 }
 0x61e   :  { %v702_v17 = vunpack.c.l.b16 %v694_v40 }
 0x621   :  { %v686_v13 = vpop.permute.xlu0 %685 }
 0x622   :  { %v691_v14 = vadd.f32 %v686_v13, %v667_v37  ;;  %v652_v5 = vpop.permute.xlu1 %651 }
 0x623   :  { %v665_v1 = vmul.f32 %v652_v5, %v2950_v56  ;;  %v2477_v56 = vld [vmem:[%s3606_s6 + $0x18] sm:$0xff] }
 0x624   :  { %v695_v16 = vpack.c.bf16 %v691_v14, %v691_v14 }
 0x626   :  { %v703_v21 = vunpack.c.l.b16 %v695_v16 }
 0x628   :  { %v705_v22 = vpack.c.b16 %v703_v21, %v702_v17 }
 0x62a   :  { %718 = vrot.lane.b32.xlu0 %v705_v22, %s2688_s23  ;;  %708 = vrot.lane.b32.xlu1 %v705_v22, %s2689_s24 }
 0x62b   :  { %750 = vmatpush.bf16.msrb.mxu2 %v705_v22 }
 0x631   :  { %v676_v28 = vpop.permute.xlu0 %675 }
 0x632   :  { %v689_v30 = vadd.f32 %v676_v28, %v665_v1  ;;  %844 = vperm.xlu0 %2562, %v3019_v45  }
 0x634   :  { %v693_v31 = vpack.c.bf16 %v689_v30, %v689_v30 }
 0x636   :  { %v701_v34 = vunpack.c.l.b16 %v693_v31 }
 0x638   :  { %v704_v35 = vpack.c.b16 %v701_v34, %v700_v33 }
 0x63a   :  { %716 = vrot.lane.b32.xlu1 %v704_v35, %s2688_s23  ;;  %706 = vrot.lane.b32.xlu2 %v704_v35, %s2689_s24 }
 0x63b   :  { %751 = vmatpush.bf16.msrb.mxu2 %v704_v35  ;;  %2564 = vset.pattern.permute.xlu0 %v2692_v23 }
 0x63e   :  { %2351 = vmatmul.msk.bf16.vlgmr.msrb.gmra.mxu2 %vm440_vm7, %v2476_v57 }
 0x642   :  { %849 = vperm.xlu1 %2563, %v3024_v48   ;;  %839 = vperm.xlu2 %2561, %v3029_v49  }
 0x64a   :  { %2565 = vset.pattern.permute.xlu1 %v2692_v23  ;;  %854 = vperm.xlu2 %2561, %v3038_v52  }
 0x64e   :  { %2352 = vmatmul.msk.bf16.gmra.mxu2 %vm440_vm7, %v2477_v56 }
 0x652   :  { %2566 = vset.pattern.permute.xlu2 %v2693_v36 }
 0x694   :  { %v707_v43 = vpop.permute.xlu2 %706 }
 0x69c   :  { %v709_v38 = vpop.permute.xlu1 %708  ;;  %v719_v39 = vpop.permute.xlu0 %718 }
 0x69d   :  { %v724_v42 = vsel %vm127_vm1, %v719_v39, 0  ;;  %2362 = vmatpush.bf16.msk.msrb.mxu3 %vm2806_vm3, %v709_v38  ;;  %v3059_v12 = vpop.permute.xlu2 %839 }
 0x69e   :  { %820 = vmatpush.bf16.msra.mxu0 %v724_v42 }
 0x6a1   :  { %2364 = vmatpush.bf16.msk.msrb.mxu3 %vm2806_vm3, %v707_v43 }
 0x6a4   :  { %2365 = vmatmul.msk.bf16.vlgmr.msrb.gmra.mxu3 %vm440_vm7, %v2474_v44  ;;  %v3057_v8 = vpop.permute.xlu0 %844 }
 0x6a5   :  { %v3074_v29 = vpop.permute.xlu2 %854 }
 0x6ac   :  { %v717_v10 = vpop.permute.xlu1 %716 }
 0x6ad   :  { %v721_v53 = vsel %vm127_vm1, %v717_v10, 0 }
 0x6ae   :  { %821 = vmatpush.bf16.msra.mxu0 %v721_v53 }
 0x6b1   :  { %2375 = vmatmul.msk.bf16.vlgmr.msra.gmra.mxu0 %vm440_vm7, %v2478_v54 }
 0x6b4   :  { %2366 = vmatmul.msk.bf16.gmra.mxu3 %vm440_vm7, %v2475_v55  ;;  %v3061_v13 = vpop.permute.xlu1 %849 }
 0x6c1   :  { %2376 = vmatmul.msk.bf16.gmra.mxu0 %vm440_vm7, %v2479_v3  ;;  %v753_v58 = vpop.f32.mrf.mxu2 }
 0x6c9   :  { %v755_v41 = vpop.f32.mrf.mxu2 }
 0x6d1   :  { %v758_v7 = vpop.f32.mrf.mxu2 }
 0x6d9   :  { %v760_v22 = vpop.f32.mrf.mxu2 }
 0x727   :  { %v788_v59 = vpop.f32.mrf.mxu3 }
 0x728   :  { %v789_v0 = vadd.f32 %v788_v59, %v753_v58 }
 0x72e   :  { %v823_v60 = vpop.f32.mrf.mxu0 }
 0x72f   :  { %v790_v61 = vpop.f32.mrf.mxu3  ;;  %v833_v9 = vadd.f32 %v823_v60, %v789_v0 }
 0x730   :  { %v791_v2 = vadd.f32 %v790_v61, %v755_v41 }
 0x731   :  { %v857_v15 = vadd.f32 %v3059_v12, %v833_v9 }
 0x733   :  { %v3068_v24 = vmax.f32 %v857_v15, 0.0 }
 0x735   :  { %v878_v30 = vmul.f32 %v3068_v24, %v3068_v24 }
 0x736   :  { %v825_v63 = vpop.f32.mrf.mxu0 }
 0x737   :  { %v793_v51 = vpop.f32.mrf.mxu3  ;;  %v834_v19 = vadd.f32 %v825_v63, %v791_v2 }
 0x738   :  { %v794_v18 = vadd.f32 %v793_v51, %v758_v7 }
 0x739   :  { %v858_v40 = vadd.f32 %v3057_v8, %v834_v19 }
 0x73b   :  { %v3066_v21 = vmax.f32 %v858_v40, 0.0 }
 0x73d   :  { %v879_v1 = vmul.f32 %v3066_v21, %v3066_v21  ;;  %v865_v33 = vadd.f32 %v3066_v21, %v3068_v24 }
 0x73e   :  { %v828_v37 = vpop.f32.mrf.mxu0 }
 0x73f   :  { %v835_v14 = vadd.f32 %v828_v37, %v794_v18  ;;  %v795_v17 = vpop.f32.mrf.mxu3  ;;  %v882_v56 = vadd.f32 %v879_v1, %v878_v30 }
 0x740   :  { %v796_v25 = vadd.f32 %v795_v17, %v760_v22 }
 0x741   :  { %v859_v16 = vadd.f32 %v3061_v13, %v835_v14 }
 0x743   :  { %v3070_v5 = vmax.f32 %v859_v16, 0.0 }
 0x745   :  { %v880_v34 = vmul.f32 %v3070_v5, %v3070_v5  ;;  %v866_v57 = vadd.f32 %v865_v33, %v3070_v5 }
 0x746   :  { %v830_v26 = vpop.f32.mrf.mxu0 }
 0x747   :  { %v836_v28 = vadd.f32 %v830_v26, %v796_v25  ;;  %v883_v42 = vadd.f32 %v882_v56, %v880_v34 }
 0x749   :  { %v860_v31 = vadd.f32 %v3074_v29, %v836_v28 }
 0x74b   :  { %v3083_v35 = vmax.f32 %v860_v31, 0.0 }
 0x74d   :  { %v867_v38 = vadd.f32 %v866_v57, %v3083_v35  ;;  %v881_v39 = vmul.f32 %v3083_v35, %v3083_v35 }
 0x74f   :  { %868 = vadd.xlane.f32.xlu1 %v867_v38  ;;  %v884_v43 = vadd.f32 %v883_v42, %v881_v39 }
 0x751   :  { %885 = vadd.xlane.f32.xlu2 %v884_v43 }
 0x7c2   :  { %v869_v44 = vpop.xlane.xlu1 %868 }
 0x7c3   :  { %v870_v10 = vrot.slane %v869_v44, 4 }
 0x7c4   :  { %v886_v53 = vpop.xlane.xlu2 %885 }
 0x7c5   :  { %v871_v54 = vadd.f32 %v870_v10, %v869_v44  ;;  %v887_v55 = vrot.slane %v886_v53, 4 }
 0x7c7   :  { %v872_v3 = vrot.slane %v871_v54, 2  ;;  %v888_v58 = vadd.f32 %v887_v55, %v886_v53 }
 0x7c9   :  { %v889_v59 = vrot.slane %v888_v58, 2  ;;  %v873_v60 = vadd.f32 %v872_v3, %v871_v54 }
 0x7cb   :  { %v874_v61 = vrot.slane %v873_v60, 1  ;;  %v890_v41 = vadd.f32 %v889_v59, %v888_v58 }
 0x7cd   :  { %v875_v63 = vadd.f32 %v874_v61, %v873_v60  ;;  %v891_v51 = vrot.slane %v890_v41, 1 }
 0x7cf   :  { %2501 = vpush %v875_v63  ;;  %v892_v0 = vadd.f32 %v891_v51, %v890_v41 }
 0x7d1   :  { %2503 = vpush %v892_v0 }
 0x800   :  { %s2502_s27 = spop %2501 }
 0x801   :  { %s877_s28 = smul.f32 0.00024414063, %s2502_s27 }
 0x802   :  { %s2504_s29 = spop %2503 }
 0x803   :  { %s895_s30 = smul.f32 %s877_s28, %s877_s28  ;;  %v916_v22 = vstv %s877_s28 }
 0x804   :  { %s894_s13 = smul.f32 0.00024414063, %s2504_s29 }
 0x806   :  { %s896_s14 = ssub.f32 %s894_s13, %s895_s30 }
 0x808   :  { %s897_s15 = smax.f32 %s2691_s17, %s896_s14 }
 0x809   :  { %s898_s16 = sadd.f32 1e-05, %s897_s15 }
 0x80b   :  { %v899_v2 = vstv %s898_s16 }
 0x80c   :  { %2606 = vrsqrt.f32 %v899_v2  ;;  %vm906_vm12 = vweird.f32 %v899_v2 }
 0x812   :  { %v2607_v7 = vpop.eup %2606 }
 0x813   :  { %v901_v19 = vmul.f32 %v2607_v7, %v899_v2  ;;  %vm907_vm11 = vweird.f32 %v2607_v7 }
 0x814   :  { %vm908_vm13 = vmor %vm906_vm12, %vm907_vm11 }
 0x815   :  { %v902_v18 = vmul.f32 %v2607_v7, %v901_v19 }
 0x817   :  { %v903_v9 = vmul.f32 0.5, %v902_v18 }
 0x819   :  { %v904_v37 = vsub.f32 1.5, %v903_v9 }
 0x81b   :  { %v905_v40 = vmul.f32 %v2607_v7, %v904_v37 }
 0x81d   :  { %v909_v14 = vsel %vm908_vm13, %v2607_v7, %v905_v40 }
 0x81e   :  { %2505 = vpush %v909_v14  ;;  %v2483_v14 = vld [vmem:[%s3608_s8 + $0x18] sm:$0xff] }
 0x84f   :  { %s2506_s18 = spop %2505 }
 0x850   :  { %v911_v15 = vstv %s2506_s18 }
 0x851   :  { %v914_v16 = vmul.f32 %v911_v15, %v3024_v48  ;;  %v915_v17 = vmul.f32 %v911_v15, %v3038_v52  ;;  %v912_v26 = vmul.f32 %v911_v15, %v3029_v49  ;;  %v913_v30 = vmul.f32 %v911_v15, %v3019_v45 }
 0x853   :  { %958 = vperm.xlu1 %2565, %v915_v17   ;;  %v919_v25 = vmul.f32 %v916_v22, %v914_v16  ;;  %v920_v1 = vmul.f32 %v916_v22, %v915_v17  ;;  %v917_v28 = vmul.f32 %v916_v22, %v912_v26  ;;  %v918_v31 = vmul.f32 %v916_v22, %v913_v30  ;;  %v3135_v22 = vld [vmem:[%s3609_s9 + $0x8] sm:$0xff] }
 0x855   :  { %929 = vrot.lane.b32.xlu0 %v919_v25, %s2689_s24 }
 0x85b   :  { %943 = vperm.xlu1 %2565, %v912_v26   ;;  %v2484_v26 = vld [vmem:[%s3608_s8 + $0x20] sm:$0xff] }
 0x85d   :  { %931 = vrot.lane.b32.xlu0 %v920_v1, %s2689_s24 }
 0x863   :  { %2569 = vset.pattern.permute.xlu1 %v2693_v36 }
 0x865   :  { %925 = vrot.lane.b32.xlu0 %v917_v28, %s2689_s24 }
 0x86d   :  { %927 = vrot.lane.b32.xlu0 %v918_v31, %s2689_s24  ;;  %v2622_v31 = vld [vmem:[%s3602_s2 + $0x10] sm:$0xff] }
 0x875   :  { %953 = vperm.xlu0 %2564, %v914_v16  }
 0x87d   :  { %2567 = vset.pattern.permute.xlu0 %v2693_v36 }
 0x8c5   :  { %v959_v10 = vpop.permute.xlu1 %958 }
 0x8c6   :  { %v964_v53 = vmul.f32 %v959_v10, %v3083_v35  ;;  %v2488_v35 = vld [vmem:[%s3600_s0 + $0x8] sm:$0xff] }
 0x8c7   :  { %v930_v33 = vpop.permute.xlu0 %929  ;;  %v2627_v10 = vld [vmem:[%s3602_s2 + $0x8] sm:$0xff] }
 0x8c8   :  { %v939_v34 = vsub.f32 %v3024_v48, %v930_v33  ;;  %v3159_v33 = vld [vmem:[%s3609_s9 + $0x10] sm:$0xff] }
 0x8ca   :  { %977 = vperm.xlu2 %2566, %v939_v34   ;;  %v3164_v34 = vld [vmem:[%s3609_s9] sm:$0xff] }
 0x8cd   :  { %v944_v61 = vpop.permute.xlu1 %943 }
 0x8cf   :  { %v932_v57 = vpop.permute.xlu0 %931 }
 0x8d0   :  { %v940_v56 = vsub.f32 %v3038_v52, %v932_v57  ;;  %v2485_v57 = vld [vmem:[%s3608_s8 + $0x28] sm:$0xff] }
 0x8d2   :  { %982 = vperm.xlu0 %2567, %v940_v56  }
 0x8d7   :  { %v926_v38 = vpop.permute.xlu0 %925 }
 0x8d8   :  { %v937_v39 = vsub.f32 %v3029_v49, %v926_v38 }
 0x8da   :  { %2568 = vset.pattern.permute.xlu0 %v2692_v23  ;;  %967 = vperm.xlu2 %2566, %v937_v39   ;;  %v2481_v39 = vld [vmem:[%s3608_s8 + $0x8] sm:$0xff] }
 0x8db   :  { %948 = vperm.xlu0 %2568, %v913_v30   ;;  %v2480_v30 = vld [vmem:[%s3608_s8] sm:$0xff] }
 0x8df   :  { %v928_v42 = vpop.permute.xlu0 %927 }
 0x8e0   :  { %v938_v43 = vsub.f32 %v3019_v45, %v928_v42  ;;  %v2623_v42 = vld [vmem:[%s3602_s2 + $0x18] sm:$0xff] }
 0x8e2   :  { %972 = vperm.xlu1 %2569, %v938_v43   ;;  %2570 = vset.pattern.permute.xlu2 %v2690_v4  ;;  %v3185_v43 = vld [vmem:[%s3609_s9 + $0x18] sm:$0xff] }
 0x8e3   :  { %2572 = vset.pattern.permute.xlu0 %v2690_v4 }
 0x8e7   :  { %v954_v48 = vpop.permute.xlu0 %953 }
 0x8e8   :  { %v963_v44 = vmul.f32 %v954_v48, %v3070_v5  ;;  %v961_v5 = vmul.f32 %v944_v61, %v3068_v24  ;;  %v2624_v48 = vld [vmem:[%s3602_s2 + $0x20] sm:$0xff] }
 0x8ea   :  { %2571 = vset.pattern.permute.xlu1 %v2690_v4 }
 0x924   :  { %v978_v52 = vpop.permute.xlu2 %977 }
 0x925   :  { %v987_v49 = vadd.f32 %v978_v52, %v963_v44  ;;  %v2625_v52 = vld [vmem:[%s3602_s2] sm:$0xff]  ;;  %v2626_v44 = vld [vmem:[%s3602_s2 + $0x28] sm:$0xff] }
 0x927   :  { %v991_v55 = vpack.c.bf16 %v987_v49, %v987_v49 }
 0x929   :  { %v999_v45 = vunpack.c.l.b16 %v991_v55 }
 0x934   :  { %v968_v41 = vpop.permute.xlu2 %967 }
 0x935   :  { %v985_v51 = vadd.f32 %v968_v41, %v961_v5 }
 0x937   :  { %v989_v7 = vpack.c.bf16 %v985_v51, %v985_v51 }
 0x939   :  { %v997_v9 = vunpack.c.l.b16 %v989_v7 }
 0x944   :  { %v983_v54 = vpop.permute.xlu0 %982 }
 0x945   :  { %v988_v3 = vadd.f32 %v983_v54, %v964_v53 }
 0x947   :  { %v992_v58 = vpack.c.bf16 %v988_v3, %v988_v3 }
 0x949   :  { %v1000_v59 = vunpack.c.l.b16 %v992_v58 }
 0x94b   :  { %v1002_v60 = vpack.c.b16 %v1000_v59, %v999_v45 }
 0x94d   :  { %1015 = vrot.lane.b32.xlu1 %v1002_v60, %s2688_s23  ;;  %1005 = vrot.lane.b32.xlu2 %v1002_v60, %s2689_s24  ;;  %v949_v63 = vpop.permute.xlu0 %948 }
 0x94e   :  { %1047 = vmatpush.bf16.msra.mxu1 %v1002_v60  ;;  %v962_v0 = vmul.f32 %v949_v63, %v3066_v21  ;;  %v2482_v21 = vld [vmem:[%s3608_s8 + $0x10] sm:$0xff] }
 0x954   :  { %v973_v2 = vpop.permute.xlu1 %972 }
 0x955   :  { %v986_v19 = vadd.f32 %v973_v2, %v962_v0  ;;  %1337 = vrot.lane.b32.xlu1 %v2488_v35, %s2689_s24 }
 0x957   :  { %v990_v18 = vpack.c.bf16 %v986_v19, %v986_v19 }
 0x959   :  { %v998_v37 = vunpack.c.l.b16 %v990_v18 }
 0x95b   :  { %v1001_v40 = vpack.c.b16 %v998_v37, %v997_v9 }
 0x95d   :  { %1013 = vrot.lane.b32.xlu2 %v1001_v40, %s2688_s23  ;;  %1003 = vrot.lane.b32.xlu0 %v1001_v40, %s2689_s24 }
 0x95e   :  { %1048 = vmatpush.bf16.msra.mxu1 %v1001_v40  ;;  %1141 = vperm.xlu1 %2571, %v3135_v22  }
 0x961   :  { %2385 = vmatmul.msk.bf16.vlgmr.msra.gmra.mxu1 %vm440_vm7, %v2482_v21 }
 0x962   :  { %1355 = vmatpush.bf16.msrb.mxu1 %v2488_v35 }
 0x965   :  { %1342 = vrot.lane.b32.xlu0 %v2488_v35, %s2688_s23  ;;  %1136 = vperm.xlu2 %2570, %v3164_v34  }
 0x966   :  { %2574 = vset.pattern.permute.xlu1 %v2692_v23 }
 0x96d   :  { %1146 = vperm.xlu0 %2572, %v3159_v33   ;;  %1151 = vperm.xlu2 %2570, %v3185_v43  }
 0x971   :  { %2386 = vmatmul.msk.bf16.gmra.mxu1 %vm440_vm7, %v2483_v14 }
 0x975   :  { %2575 = vset.pattern.permute.xlu0 %v2693_v36  ;;  %2573 = vset.pattern.permute.xlu2 %v2692_v23 }
 0x981   :  { %2422 = vmatmul.msk.bf16.vlgmr.msrb.gmra.mxu1 %vm142_vm0, %v2622_v31 }
 0x991   :  { %2423 = vmatmul.msk.bf16.gmra.mxu1 %vm142_vm0, %v2623_v42 }
 0x9a7   :  { %v1006_v24 = vpop.permute.xlu2 %1005 }
 0x9a8   :  { %2396 = vmatpush.bf16.msk.msra.mxu2 %vm2806_vm3, %v1006_v24 }
 0x9b7   :  { %v1014_v17 = vpop.permute.xlu2 %1013 }
 0x9b8   :  { %v1018_v25 = vsel %vm127_vm1, %v1014_v17, 0 }
 0x9bf   :  { %v1016_v15 = vpop.permute.xlu1 %1015  ;;  %v3207_v0 = vpop.permute.xlu2 %1136 }
 0x9c0   :  { %v1021_v16 = vsel %vm127_vm1, %v1016_v15, 0 }
 0x9c1   :  { %1117 = vmatpush.bf16.msra.mxu3 %v1021_v16 }
 0x9c5   :  { %1118 = vmatpush.bf16.msra.mxu3 %v1018_v25 }
 0x9c7   :  { %v1338_v1 = vpop.permute.xlu1 %1337 }
 0x9c8   :  { %2409 = vmatmul.msk.bf16.vlgmr.msra.gmra.mxu3 %vm440_vm7, %v2484_v26 }
 0x9cf   :  { %v1004_v28 = vpop.permute.xlu0 %1003 }
 0x9d0   :  { %2398 = vmatpush.bf16.msk.msra.mxu2 %vm2806_vm3, %v1004_v28  ;;  %v3205_v5 = vpop.permute.xlu1 %1141  ;;  %v3222_v28 = vpop.permute.xlu2 %1151 }
 0x9d3   :  { %2399 = vmatmul.msk.bf16.vlgmr.msra.gmra.mxu2 %vm440_vm7, %v2480_v30 }
 0x9d4   :  { %2425 = vmatpush.bf16.msk.msrb.mxu2 %vm2806_vm3, %v1338_v1 }
 0x9d7   :  { %v1343_v56 = vpop.permute.xlu0 %1342 }
 0x9d8   :  { %2410 = vmatmul.msk.bf16.gmra.mxu3 %vm440_vm7, %v2485_v57  ;;  %v1345_v38 = vsel %vm127_vm1, %v1343_v56, 0 }
 0x9d9   :  { %1393 = vmatpush.bf16.msrb.mxu3 %v1345_v38 }
 0x9de   :  { %v1050_v49 = vpop.f32.mrf.mxu1 }
 0x9df   :  { %v3209_v19 = vpop.permute.xlu0 %1146 }
 0x9e3   :  { %2400 = vmatmul.msk.bf16.gmra.mxu2 %vm440_vm7, %v2481_v39 }
 0x9e6   :  { %v1052_v54 = vpop.f32.mrf.mxu1 }
 0x9e8   :  { %2428 = vmatmul.msk.bf16.vlgmr.msrb.gmra.mxu3 %vm142_vm0, %v2624_v48 }
 0x9ee   :  { %v1055_v58 = vpop.f32.mrf.mxu1 }
 0x9f3   :  { %2426 = vmatmul.msk.bf16.vlgmr.msrb.gmra.mxu2 %vm142_vm0, %v2625_v52 }
 0x9f6   :  { %v1057_v63 = vpop.f32.mrf.mxu1 }
 0x9f8   :  { %2429 = vmatmul.msk.bf16.gmra.mxu3 %vm142_vm0, %v2626_v44 }
 0x9fe   :  { %v1357_v14 = vpop.f32.mrf.mxu1 }
 0xa03   :  { %2427 = vmatmul.msk.bf16.gmra.mxu2 %vm142_vm0, %v2627_v10 }
 0xa4b   :  { %v1120_v53 = vpop.f32.mrf.mxu3 }
 0xa53   :  { %v1122_v55 = vpop.f32.mrf.mxu3 }
 0xa56   :  { %v1085_v3 = vpop.f32.mrf.mxu2 }
 0xa57   :  { %v1086_v61 = vadd.f32 %v1085_v3, %v1050_v49  ;;  %v1359_v49 = vpop.f32.mrf.mxu1 }
 0xa59   :  { %v1130_v35 = vadd.f32 %v1120_v53, %v1086_v61 }
 0xa5b   :  { %v1125_v59 = vpop.f32.mrf.mxu3  ;;  %v1154_v37 = vadd.f32 %v3207_v0, %v1130_v35 }
 0xa5d   :  { %v3216_v15 = vmax.f32 %v1154_v37, 0.0 }
 0xa5e   :  { %v1087_v45 = vpop.f32.mrf.mxu2 }
 0xa5f   :  { %v1088_v60 = vadd.f32 %v1087_v45, %v1052_v54  ;;  %v1175_v30 = vmul.f32 %v3216_v15, %v3216_v15 }
 0xa61   :  { %v1131_v41 = vadd.f32 %v1122_v55, %v1088_v60 }
 0xa63   :  { %v1127_v7 = vpop.f32.mrf.mxu3  ;;  %v1155_v18 = vadd.f32 %v3205_v5, %v1131_v41 }
 0xa65   :  { %v3214_v24 = vmax.f32 %v1155_v18, 0.0 }
 0xa66   :  { %v1090_v51 = vpop.f32.mrf.mxu2 }
 0xa67   :  { %v1091_v2 = vadd.f32 %v1090_v51, %v1055_v58  ;;  %v1176_v26 = vmul.f32 %v3214_v24, %v3214_v24  ;;  %v1162_v57 = vadd.f32 %v3214_v24, %v3216_v15  ;;  %v1362_v58 = vpop.f32.mrf.mxu1 }
 0xa69   :  { %v1132_v9 = vadd.f32 %v1125_v59, %v1091_v2  ;;  %v1179_v42 = vadd.f32 %v1176_v26, %v1175_v30 }
 0xa6b   :  { %v1156_v40 = vadd.f32 %v3209_v19, %v1132_v9  ;;  %v1395_v25 = vpop.f32.mrf.mxu3 }
 0xa6d   :  { %v3218_v16 = vmax.f32 %v1156_v40, 0.0 }
 0xa6e   :  { %v1092_v21 = vpop.f32.mrf.mxu2 }
 0xa6f   :  { %v1093_v17 = vadd.f32 %v1092_v21, %v1057_v63  ;;  %v1177_v56 = vmul.f32 %v3218_v16, %v3218_v16  ;;  %v1163_v39 = vadd.f32 %v1162_v57, %v3218_v16  ;;  %v1364_v18 = vpop.f32.mrf.mxu1 }
 0xa71   :  { %v1133_v1 = vadd.f32 %v1127_v7, %v1093_v17  ;;  %v1180_v10 = vadd.f32 %v1179_v42, %v1177_v56 }
 0xa73   :  { %v1157_v31 = vadd.f32 %v3222_v28, %v1133_v1  ;;  %v1397_v54 = vpop.f32.mrf.mxu3 }
 0xa75   :  { %v3231_v38 = vmax.f32 %v1157_v31, 0.0 }
 0xa76   :  { %v1376_v48 = vpop.f32.mrf.mxu2 }
 0xa77   :  { %v1164_v52 = vadd.f32 %v1163_v39, %v3231_v38  ;;  %v1178_v44 = vmul.f32 %v3231_v38, %v3231_v38  ;;  %v1377_v45 = vadd.f32 %v1376_v48, %v1357_v14 }
 0xa79   :  { %1165 = vadd.xlane.f32.xlu1 %v1164_v52  ;;  %v1181_v53 = vadd.f32 %v1180_v10, %v1178_v44  ;;  %v1405_v41 = vadd.f32 %v1395_v25, %v1377_v45 }
 0xa7b   :  { %1182 = vadd.xlane.f32.xlu2 %v1181_v53  ;;  %v1400_v59 = vpop.f32.mrf.mxu3  ;;  %v1409_v2 = vadd.f32 %v1405_v41, %v2824_v20 }
 0xa7d   :  { %v3242_v21 = vmax.f32 %v1409_v2, 0.0 }
 0xa7e   :  { %v1378_v55 = vpop.f32.mrf.mxu2 }
 0xa7f   :  { %v1379_v3 = vadd.f32 %v1378_v55, %v1359_v49 }
 0xa81   :  { %v1406_v60 = vadd.f32 %v1397_v54, %v1379_v3 }
 0xa83   :  { %v1410_v51 = vadd.f32 %v1406_v60, %v2826_v27  ;;  %v1402_v40 = vpop.f32.mrf.mxu3 }
 0xa85   :  { %v3240_v9 = vmax.f32 %v1410_v51, 0.0 }
 0xa86   :  { %v1381_v61 = vpop.f32.mrf.mxu2 }
 0xa87   :  { %v1382_v63 = vadd.f32 %v1381_v61, %v1362_v58  ;;  %v1431_v25 = vmul.f32 %v3240_v9, %v3240_v9  ;;  %v1417_v20 = vadd.f32 %v3240_v9, %v3242_v21 }
 0xa89   :  { %v1407_v35 = vadd.f32 %v1400_v59, %v1382_v63 }
 0xa8b   :  { %v1411_v7 = vadd.f32 %v1407_v35, %v2828_v32  ;;  %v1430_v32 = vmul.f32 %v3242_v21, %v3242_v21 }
 0xa8d   :  { %v3244_v14 = vmax.f32 %v1411_v7, 0.0  ;;  %v1434_v57 = vadd.f32 %v1431_v25, %v1430_v32 }
 0xa8e   :  { %v1383_v37 = vpop.f32.mrf.mxu2 }
 0xa8f   :  { %v1384_v17 = vadd.f32 %v1383_v37, %v1364_v18  ;;  %v1432_v1 = vmul.f32 %v3244_v14, %v3244_v14  ;;  %v1418_v31 = vadd.f32 %v1417_v20, %v3244_v14 }
 0xa91   :  { %v1408_v26 = vadd.f32 %v1402_v40, %v1384_v17 }
 0xa93   :  { %v1412_v27 = vadd.f32 %v1408_v26, %v2841_v46  ;;  %v1435_v46 = vadd.f32 %v1434_v57, %v1432_v1 }
 0xa95   :  { %v3255_v30 = vmax.f32 %v1412_v27, 0.0 }
 0xa97   :  { %v1419_v56 = vadd.f32 %v1418_v31, %v3255_v30  ;;  %v1433_v39 = vmul.f32 %v3255_v30, %v3255_v30 }
 0xa99   :  { %1420 = vadd.xlane.f32.xlu0 %v1419_v56  ;;  %v1436_v42 = vadd.f32 %v1435_v46, %v1433_v39 }
 0xa9b   :  { %1437 = vadd.xlane.f32.xlu1 %v1436_v42 }
 0xaec   :  { %v1166_v48 = vpop.xlane.xlu1 %1165 }
 0xaed   :  { %v1167_v52 = vrot.slane %v1166_v48, 4 }
 0xaee   :  { %v1183_v44 = vpop.xlane.xlu2 %1182 }
 0xaef   :  { %v1168_v10 = vadd.f32 %v1167_v52, %v1166_v48  ;;  %v1184_v49 = vrot.slane %v1183_v44, 4 }
 0xaf1   :  { %v1169_v53 = vrot.slane %v1168_v10, 2  ;;  %v1185_v54 = vadd.f32 %v1184_v49, %v1183_v44 }
 0xaf3   :  { %v1186_v55 = vrot.slane %v1185_v54, 2  ;;  %v1170_v3 = vadd.f32 %v1169_v53, %v1168_v10 }
 0xaf5   :  { %v1171_v58 = vrot.slane %v1170_v3, 1  ;;  %v1187_v45 = vadd.f32 %v1186_v55, %v1185_v54 }
 0xaf7   :  { %v1172_v59 = vadd.f32 %v1171_v58, %v1170_v3  ;;  %v1188_v60 = vrot.slane %v1187_v45, 1  ;;  %v2628_v58 = vld [vmem:[%s3603_s3] sm:$0xff] }
 0xaf9   :  { %2507 = vpush %v1172_v59  ;;  %v1189_v61 = vadd.f32 %v1188_v60, %v1187_v45  ;;  %v2629_v59 = vld [vmem:[%s3603_s3 + $0x10] sm:$0xff] }
 0xafb   :  { %2509 = vpush %v1189_v61  ;;  %v2630_v61 = vld [vmem:[%s3603_s3 + $0x18] sm:$0xff] }
 0xb0c   :  { %v1421_v41 = vpop.xlane.xlu0 %1420 }
 0xb0d   :  { %v1422_v51 = vrot.slane %v1421_v41, 4 }
 0xb0e   :  { %v1438_v63 = vpop.xlane.xlu1 %1437 }
 0xb0f   :  { %v1439_v35 = vrot.slane %v1438_v63, 4  ;;  %v1423_v7 = vadd.f32 %v1422_v51, %v1421_v41 }
 0xb11   :  { %v1440_v18 = vadd.f32 %v1439_v35, %v1438_v63  ;;  %v1424_v37 = vrot.slane %v1423_v7, 2 }
 0xb13   :  { %v1441_v17 = vrot.slane %v1440_v18, 2  ;;  %v1425_v27 = vadd.f32 %v1424_v37, %v1423_v7  ;;  %v2631_v37 = vld [vmem:[%s3603_s3 + $0x8] sm:$0xff] }
 0xb15   :  { %v1442_v20 = vadd.f32 %v1441_v17, %v1440_v18  ;;  %v1426_v31 = vrot.slane %v1425_v27, 1 }
 0xb17   :  { %v1443_v57 = vrot.slane %v1442_v20, 1  ;;  %v1427_v46 = vadd.f32 %v1426_v31, %v1425_v27 }
 0xb19   :  { %v1444_v42 = vadd.f32 %v1443_v57, %v1442_v20 }
 0xb2a   :  { %s2508_s2 = spop %2507 }
 0xb2b   :  { %s3261_s0 = smul.f32 0.00024414063, %s2508_s2 }
 0xb2c   :  { %s2510_s21 = spop %2509 }
 0xb2d   :  { %s1192_s22 = smul.f32 %s3261_s0, %s3261_s0 }
 0xb2e   :  { %s1191_s25 = smul.f32 0.00024414063, %s2510_s21 }
 0xb30   :  { %s1193_s26 = ssub.f32 %s1191_s25, %s1192_s22 }
 0xb32   :  { %s1194_s27 = smax.f32 %s2691_s17, %s1193_s26 }
 0xb33   :  { %s1195_s28 = sadd.f32 1e-05, %s1194_s27 }
 0xb35   :  { %v1196_v2 = vstv %s1195_s28 }
 0xb36   :  { %2608 = vrsqrt.f32 %v1196_v2  ;;  %vm1203_vm15 = vweird.f32 %v1196_v2 }
 0xb3c   :  { %v2609_v40 = vpop.eup %2608 }
 0xb3d   :  { %v1198_v26 = vmul.f32 %v2609_v40, %v1196_v2  ;;  %vm1204_vm14 = vweird.f32 %v2609_v40 }
 0xb3e   :  { %vm1205_vm0 = vmor %vm1203_vm15, %vm1204_vm14 }
 0xb3f   :  { %v1199_v25 = vmul.f32 %v2609_v40, %v1198_v26  ;;  %v1213_v26 = vstv %s3261_s0 }
 0xb41   :  { %v1200_v32 = vmul.f32 0.5, %v1199_v25 }
 0xb43   :  { %v1201_v1 = vsub.f32 1.5, %v1200_v32 }
 0xb45   :  { %v1202_v56 = vmul.f32 %v2609_v40, %v1201_v1 }
 0xb47   :  { %v1206_v39 = vsel %vm1205_vm0, %v2609_v40, %v1202_v56 }
 0xb48   :  { %2511 = vpush %v1206_v39 }
 0xb49   :  { %2513 = vpush %v1427_v46 }
 0xb4a   :  { %2515 = vpush %v1444_v42 }
 0xb79   :  { %s3266_s29 = spop %2511 }
 0xb7a   :  { %s2514_s30 = spop %2513  ;;  %v1208_v7 = vstv %s3266_s29 }
 0xb7b   :  { %s1429_s13 = smul.f32 0.00024414063, %s2514_s30  ;;  %s2516_s14 = spop %2515  ;;  %v1209_v18 = vmul.f32 %v1208_v7, %v3164_v34  ;;  %v1211_v17 = vmul.f32 %v1208_v7, %v3159_v33  ;;  %v1212_v32 = vmul.f32 %v1208_v7, %v3185_v43  ;;  %v1210_v1 = vmul.f32 %v1208_v7, %v3135_v22 }
 0xb7c   :  { %s1446_s15 = smul.f32 0.00024414063, %s2516_s14 }
 0xb7d   :  { %s1447_s16 = smul.f32 %s1429_s13, %s1429_s13  ;;  %v1468_v63 = vstv %s1429_s13  ;;  %v1214_v25 = vmul.f32 %v1213_v26, %v1209_v18  ;;  %v1216_v20 = vmul.f32 %v1213_v26, %v1211_v17  ;;  %v1217_v31 = vmul.f32 %v1213_v26, %v1212_v32 }
 0xb7e   :  { %v1215_v57 = vmul.f32 %v1213_v26, %v1210_v1 }
 0xb7f   :  { %s1448_s18 = ssub.f32 %s1446_s15, %s1447_s16 }
 0xb81   :  { %s1449_s19 = smax.f32 %s2691_s17, %s1448_s18 }
 0xb82   :  { %s1450_s20 = sadd.f32 1e-05, %s1449_s19 }
 0xb84   :  { %v1451_v48 = vstv %s1450_s20 }
 0xb85   :  { %2610 = vrsqrt.f32 %v1451_v48  ;;  %vm1458_vm4 = vweird.f32 %v1451_v48 }
 0xb8b   :  { %v2611_v52 = vpop.eup %2610 }
 0xb8c   :  { %v1453_v44 = vmul.f32 %v2611_v52, %v1451_v48  ;;  %vm1459_vm2 = vweird.f32 %v2611_v52 }
 0xb8d   :  { %vm1460_vm5 = vmor %vm1458_vm4, %vm1459_vm2 }
 0xb8e   :  { %v1454_v10 = vmul.f32 %v2611_v52, %v1453_v44 }
 0xb90   :  { %v1455_v49 = vmul.f32 0.5, %v1454_v10 }
 0xb92   :  { %v1456_v53 = vsub.f32 1.5, %v1455_v49 }
 0xb94   :  { %v1457_v54 = vmul.f32 %v2611_v52, %v1456_v53 }
 0xb96   :  { %v1461_v55 = vsel %vm1460_vm5, %v2611_v52, %v1457_v54 }
 0xb97   :  { %2517 = vpush %v1461_v55 }
 0xbc8   :  { %s2518_s2 = spop %2517 }
 0xbc9   :  { %v1463_v3 = vstv %s2518_s2 }
 0xbca   :  { %v1464_v45 = vmul.f32 %v2628_v58, %v1463_v3  ;;  %v1466_v60 = vmul.f32 %v2629_v59, %v1463_v3  ;;  %v1467_v41 = vmul.f32 %v2630_v61, %v1463_v3  ;;  %v1465_v40 = vmul.f32 %v2631_v37, %v1463_v3 }
 0xbcc   :  { %v1472_v51 = vmul.f32 %v1468_v63, %v1467_v41  ;;  %v1471_v35 = vmul.f32 %v1468_v63, %v1466_v60  ;;  %v1469_v2 = vmul.f32 %v1468_v63, %v1464_v45  ;;  %v1470_v27 = vmul.f32 %v1468_v63, %v1465_v40 }
 0xbce   :  { %1483 = vrot.lane.b32.xlu1 %v1472_v51, %s2689_s24  ;;  %1481 = vrot.lane.b32.xlu2 %v1471_v35, %s2689_s24 }
 0xbcf   :  { %1477 = vrot.lane.b32.xlu0 %v1469_v2, %s2689_s24 }
 0xbd6   :  { %1222 = vrot.lane.b32.xlu1 %v1214_v25, %s2689_s24  ;;  %1479 = vrot.lane.b32.xlu2 %v1470_v27, %s2689_s24 }
 0xbd7   :  { %1226 = vrot.lane.b32.xlu0 %v1216_v20, %s2689_s24 }
 0xbde   :  { %1510 = vperm.xlu1 %2574, %v1467_v41   ;;  %1228 = vrot.lane.b32.xlu2 %v1217_v31, %s2689_s24 }
 0xbdf   :  { %1224 = vrot.lane.b32.xlu0 %v1215_v57, %s2689_s24 }
 0xbe6   :  { %1505 = vperm.xlu2 %2573, %v1466_v60   ;;  %1495 = vperm.xlu1 %2574, %v1464_v45  }
 0xbee   :  { %2576 = vset.pattern.permute.xlu2 %v2693_v36  ;;  %2578 = vset.pattern.permute.xlu1 %v2693_v36 }
 0xc28   :  { %v1482_v56 = vpop.permute.xlu2 %1481 }
 0xc29   :  { %v1491_v39 = vsub.f32 %v2629_v59, %v1482_v56 }
 0xc2b   :  { %1529 = vperm.xlu0 %2575, %v1491_v39  }
 0xc30   :  { %v1480_v46 = vpop.permute.xlu2 %1479 }
 0xc31   :  { %v1490_v42 = vsub.f32 %v2631_v37, %v1480_v46 }
 0xc33   :  { %1524 = vperm.xlu0 %2575, %v1490_v42  }
 0xc38   :  { %v1229_v54 = vpop.permute.xlu2 %1228 }
 0xc39   :  { %v1237_v3 = vsub.f32 %v3185_v43, %v1229_v54 }
 0xc40   :  { %v1484_v48 = vpop.permute.xlu1 %1483  ;;  %v1506_v59 = vpop.permute.xlu2 %1505 }
 0xc41   :  { %v1492_v52 = vsub.f32 %v2630_v61, %v1484_v48  ;;  %v1478_v44 = vpop.permute.xlu0 %1477 }
 0xc42   :  { %v1489_v10 = vsub.f32 %v2628_v58, %v1478_v44 }
 0xc43   :  { %1534 = vperm.xlu2 %2576, %v1492_v52  }
 0xc44   :  { %1519 = vperm.xlu1 %2578, %v1489_v10  }
 0xc49   :  { %v1227_v49 = vpop.permute.xlu0 %1226 }
 0xc4a   :  { %v1236_v53 = vsub.f32 %v3159_v33, %v1227_v49  ;;  %v1223_v33 = vpop.permute.xlu1 %1222 }
 0xc4b   :  { %2577 = vset.pattern.permute.xlu2 %v2692_v23  ;;  %v1234_v45 = vsub.f32 %v3164_v34, %v1223_v33 }
 0xc4c   :  { %2579 = vset.pattern.permute.xlu1 %v2692_v23  ;;  %1274 = vperm.xlu0 %2575, %v1236_v53  }
 0xc4d   :  { %1500 = vperm.xlu2 %2577, %v1465_v40   ;;  %1255 = vperm.xlu1 %2579, %v1212_v32  }
 0xc51   :  { %v1225_v55 = vpop.permute.xlu0 %1224 }
 0xc52   :  { %v1235_v58 = vsub.f32 %v3135_v22, %v1225_v55  ;;  %v1511_v43 = vpop.permute.xlu1 %1510  ;;  %v1515_v22 = vmul.f32 %v1506_v59, %v3244_v14 }
 0xc53   :  { %v1516_v60 = vmul.f32 %v1511_v43, %v3255_v30 }
 0xc54   :  { %2581 = vset.pattern.permute.xlu0 %v2692_v23 }
 0xc55   :  { %1250 = vperm.xlu2 %2577, %v1211_v17   ;;  %1240 = vperm.xlu1 %2579, %v1209_v18  }
 0xc56   :  { %1245 = vperm.xlu0 %2581, %v1210_v1  }
 0xc5a   :  { %v1496_v40 = vpop.permute.xlu1 %1495 }
 0xc5b   :  { %v1513_v30 = vmul.f32 %v1496_v40, %v3242_v21 }
 0xc5d   :  { %2580 = vset.pattern.permute.xlu2 %v2693_v36  ;;  %2582 = vset.pattern.permute.xlu1 %v2693_v36 }
 0xc5e   :  { %1279 = vperm.xlu2 %2580, %v1237_v3   ;;  %1269 = vperm.xlu1 %2582, %v1235_v58  }
 0xc5f   :  { %2585 = vset.pattern.permute.xlu0 %v2693_v36 }
 0xc66   :  { %1264 = vperm.xlu2 %2580, %v1234_v45   ;;  %2584 = vset.pattern.permute.xlu1 %v2692_v23 }
 0xc6e   :  { %2583 = vset.pattern.permute.xlu2 %v2692_v23 }
 0xc9d   :  { %v1535_v61 = vpop.permute.xlu2 %1534  ;;  %v1530_v41 = vpop.permute.xlu0 %1529 }
 0xc9e   :  { %v1540_v63 = vadd.f32 %v1535_v61, %v1516_v60  ;;  %v1539_v51 = vadd.f32 %v1530_v41, %v1515_v22  ;;  %v2633_v22 = vld [vmem:[%s3604_s4 + $0x18] sm:$0xff]  ;;  %v2634_v60 = vld [vmem:[%s3604_s4] sm:$0xff]  ;;  %v2635_v61 = vld [vmem:[%s3604_s4 + $0x8] sm:$0xff] }
 0xca0   :  { %v1544_v35 = vpack.c.bf16 %v1540_v63, %v1540_v63  ;;  %v1543_v2 = vpack.c.bf16 %v1539_v51, %v1539_v51  ;;  %v2636_v51 = vld [vmem:[%s3604_s4 + $0x20] sm:$0xff] }
 0xca2   :  { %v1552_v7 = vunpack.c.l.b16 %v1544_v35  ;;  %v1551_v18 = vunpack.c.l.b16 %v1543_v2  ;;  %v2637_v35 = vld [vmem:[%s3604_s4 + $0x28] sm:$0xff] }
 0xca4   :  { %v1554_v34 = vpack.c.b16 %v1552_v7, %v1551_v18 }
 0xca5   :  { %v1525_v14 = vpop.permute.xlu0 %1524 }
 0xca6   :  { %1557 = vrot.lane.b32.xlu0 %v1554_v34, %s2689_s24  ;;  %1567 = vrot.lane.b32.xlu2 %v1554_v34, %s2688_s23 }
 0xca7   :  { %v1501_v37 = vpop.permute.xlu2 %1500 }
 0xca8   :  { %v1514_v17 = vmul.f32 %v1501_v37, %v3240_v9 }
 0xcaa   :  { %v1538_v26 = vadd.f32 %v1525_v14, %v1514_v17 }
 0xcac   :  { %v1542_v27 = vpack.c.bf16 %v1538_v26, %v1538_v26 }
 0xcae   :  { %v1550_v31 = vunpack.c.l.b16 %v1542_v27 }
 0xcaf   :  { %v1251_v20 = vpop.permute.xlu2 %1250 }
 0xcb0   :  { %v1260_v9 = vmul.f32 %v1251_v20, %v3218_v16  ;;  %v3324_v16 = vld [vmem:[%s3610_s10] sm:$0xff] }
 0xcb6   :  { %v1520_v25 = vpop.permute.xlu1 %1519 }
 0xcb7   :  { %v1537_v32 = vadd.f32 %v1520_v25, %v1513_v30 }
 0xcb8   :  { %v1280_v48 = vpop.permute.xlu2 %1279 }
 0xcb9   :  { %v1541_v1 = vpack.c.bf16 %v1537_v32, %v1537_v32 }
 0xcbb   :  { %v1549_v57 = vunpack.c.l.b16 %v1541_v1 }
 0xcbd   :  { %v1553_v56 = vpack.c.b16 %v1550_v31, %v1549_v57 }
 0xcbe   :  { %v1275_v39 = vpop.permute.xlu0 %1274 }
 0xcbf   :  { %v1256_v46 = vpop.permute.xlu1 %1255  ;;  %1555 = vrot.lane.b32.xlu2 %v1553_v56, %s2689_s24  ;;  %1565 = vrot.lane.b32.xlu1 %v1553_v56, %s2688_s23  ;;  %v1284_v21 = vadd.f32 %v1275_v39, %v1260_v9 }
 0xcc0   :  { %v1261_v42 = vmul.f32 %v1256_v46, %v3231_v38  ;;  %v1265_v55 = vpop.permute.xlu2 %1264 }
 0xcc2   :  { %v1285_v52 = vadd.f32 %v1280_v48, %v1261_v42 }
 0xcc4   :  { %v1287_v44 = vpack.c.bf16 %v1285_v52, %v1284_v21 }
 0xcc6   :  { %1312 = vmatpush.bf16.msrb.mxu0 %v1287_v44 }
 0xcc7   :  { %v1241_v10 = vpop.permute.xlu1 %1240 }
 0xcc8   :  { %v1246_v49 = vpop.permute.xlu0 %1245  ;;  %v1258_v53 = vmul.f32 %v1241_v10, %v3216_v15 }
 0xcc9   :  { %v1259_v54 = vmul.f32 %v1246_v49, %v3214_v24  ;;  %v2632_v24 = vld [vmem:[%s3604_s4 + $0x10] sm:$0xff] }
 0xcca   :  { %v1282_v58 = vadd.f32 %v1265_v55, %v1258_v53 }
 0xcd0   :  { %v1270_v3 = vpop.permute.xlu1 %1269 }
 0xcd1   :  { %v1283_v33 = vadd.f32 %v1270_v3, %v1259_v54 }
 0xcd3   :  { %v1286_v45 = vpack.c.bf16 %v1283_v33, %v1282_v58 }
 0xcd5   :  { %1313 = vmatpush.bf16.msrb.mxu0 %v1286_v45 }
 0xcd8   :  { %2415 = vmatmul.msk.bf16.vlgmr.msrb.gmra.mxu0 %vm440_vm7, %v3324_v16 }
 0xcd9   :  { %1583 = vmatpush.bf16.msra.mxu0 %v1554_v34 }
 0xcdd   :  { %1584 = vmatpush.bf16.msra.mxu0 %v1553_v56 }
 0xce8   :  { %2430 = vmatmul.msk.bf16.vlgmr.msra.gmra.mxu0 %vm440_vm7, %v2632_v24 }
 0xcf8   :  { %2431 = vmatmul.msk.bf16.gmra.mxu0 %vm440_vm7, %v2633_v22 }
 0xd00   :  { %v1568_v38 = vpop.permute.xlu2 %1567 }
 0xd01   :  { %v1573_v15 = vsel %vm127_vm1, %v1568_v38, 0 }
 0xd02   :  { %1621 = vmatpush.bf16.msra.mxu2 %v1573_v15 }
 0xd18   :  { %v1558_v59 = vpop.permute.xlu0 %1557 }
 0xd19   :  { %2433 = vmatpush.bf16.msk.msra.mxu1 %vm2806_vm3, %v1558_v59  ;;  %v1556_v43 = vpop.permute.xlu2 %1555 }
 0xd1d   :  { %2435 = vmatpush.bf16.msk.msra.mxu1 %vm2806_vm3, %v1556_v43 }
 0xd20   :  { %2436 = vmatmul.msk.bf16.vlgmr.msra.gmra.mxu1 %vm440_vm7, %v2634_v60 }
 0xd30   :  { %2437 = vmatmul.msk.bf16.gmra.mxu1 %vm440_vm7, %v2635_v61 }
 0xd31   :  { %v1566_v41 = vpop.permute.xlu1 %1565 }
 0xd32   :  { %v1570_v63 = vsel %vm127_vm1, %v1566_v41, 0 }
 0xd33   :  { %1622 = vmatpush.bf16.msra.mxu2 %v1570_v63 }
 0xd36   :  { %2438 = vmatmul.msk.bf16.vlgmr.msra.gmra.mxu2 %vm440_vm7, %v2636_v51 }
 0xd46   :  { %2439 = vmatmul.msk.bf16.gmra.mxu2 %vm440_vm7, %v2637_v35 }
 0xd55   :  { %v3358_v2 = vpop.f32.mrf.mxu0 }
 0xd5d   :  { %v3360_v7 = vpop.f32.mrf.mxu0 }
 0xd65   :  { %v1586_v18 = vpop.f32.mrf.mxu0 }
 0xd6d   :  { %v1588_v37 = vpop.f32.mrf.mxu0 }
 0xd75   :  { %v1591_v26 = vpop.f32.mrf.mxu0 }
 0xd7d   :  { %v1593_v9 = vpop.f32.mrf.mxu0 }
 0xd9d   :  { %v1605_v34 = vpop.f32.mrf.mxu1 }
 0xd9e   :  { %v1606_v25 = vadd.f32 %v1605_v34, %v1586_v18 }
 0xda5   :  { %v1607_v40 = vpop.f32.mrf.mxu1 }
 0xda6   :  { %v1608_v27 = vadd.f32 %v1607_v40, %v1588_v37 }
 0xdad   :  { %v1610_v30 = vpop.f32.mrf.mxu1 }
 0xdae   :  { %v1611_v20 = vadd.f32 %v1610_v30, %v1591_v26 }
 0xdb5   :  { %v1612_v42 = vpop.f32.mrf.mxu1 }
 0xdb6   :  { %v1613_v52 = vadd.f32 %v1612_v42, %v1593_v9  ;;  %v2640_v42 = vld [vmem:[%s3605_s5] sm:$0xff] }
 0xdb9   :  { %v1624_v17 = vpop.f32.mrf.mxu2 }
 0xdba   :  { %v1634_v1 = vadd.f32 %v1624_v17, %v1606_v25 }
 0xdbc   :  { %v1638_v39 = vadd.f32 %v1634_v1, %v2943_v6  ;;  %v2638_v1 = vld [vmem:[%s3605_s5 + $0x10] sm:$0xff] }
 0xdbe   :  { %v3367_v21 = vmax.f32 %v1638_v39, 0.0 }
 0xdc1   :  { %v1626_v14 = vpop.f32.mrf.mxu2 }
 0xdc2   :  { %v1635_v32 = vadd.f32 %v1626_v14, %v1608_v27 }
 0xdc4   :  { %v1639_v57 = vadd.f32 %v1635_v32, %v2941_v47 }
 0xdc6   :  { %v3365_v48 = vmax.f32 %v1639_v57, 0.0  ;;  %v2639_v57 = vld [vmem:[%s3605_s5 + $0x18] sm:$0xff] }
 0xdc8   :  { %v1660_v53 = vmul.f32 %v3365_v48, %v3365_v48  ;;  %v1646_v6 = vadd.f32 %v3365_v48, %v3367_v21 }
 0xdc9   :  { %v1629_v31 = vpop.f32.mrf.mxu2 }
 0xdca   :  { %v1636_v56 = vadd.f32 %v1629_v31, %v1611_v20 }
 0xdcc   :  { %v1640_v46 = vadd.f32 %v1636_v56, %v2945_v50  ;;  %v1659_v50 = vmul.f32 %v3367_v21, %v3367_v21 }
 0xdce   :  { %v3369_v44 = vmax.f32 %v1640_v46, 0.0  ;;  %v1663_v58 = vadd.f32 %v1660_v53, %v1659_v50 }
 0xdd0   :  { %v1661_v54 = vmul.f32 %v3369_v44, %v3369_v44  ;;  %v1647_v3 = vadd.f32 %v1646_v6, %v3369_v44 }
 0xdd1   :  { %v1631_v10 = vpop.f32.mrf.mxu2 }
 0xdd2   :  { %v1637_v49 = vadd.f32 %v1631_v10, %v1613_v52 }
 0xdd4   :  { %v1641_v47 = vadd.f32 %v1637_v49, %v2958_v62  ;;  %v1664_v62 = vadd.f32 %v1663_v58, %v1661_v54  ;;  %v2641_v49 = vld [vmem:[%s3605_s5 + $0x8] sm:$0xff] }
 0xdd6   :  { %v3380_v55 = vmax.f32 %v1641_v47, 0.0 }
 0xdd8   :  { %v1648_v33 = vadd.f32 %v1647_v3, %v3380_v55  ;;  %v1662_v45 = vmul.f32 %v3380_v55, %v3380_v55 }
 0xdda   :  { %1649 = vadd.xlane.f32.xlu1 %v1648_v33  ;;  %v1665_v38 = vadd.f32 %v1664_v62, %v1662_v45 }
 0xddc   :  { %1666 = vadd.xlane.f32.xlu0 %v1665_v38 }
 0xe4d   :  { %v1650_v15 = vpop.xlane.xlu1 %1649 }
 0xe4e   :  { %v1651_v24 = vrot.slane %v1650_v15, 4 }
 0xe4f   :  { %v1667_v59 = vpop.xlane.xlu0 %1666 }
 0xe50   :  { %v1652_v43 = vadd.f32 %v1651_v24, %v1650_v15  ;;  %v1668_v22 = vrot.slane %v1667_v59, 4 }
 0xe52   :  { %v1653_v60 = vrot.slane %v1652_v43, 2  ;;  %v1669_v61 = vadd.f32 %v1668_v22, %v1667_v59 }
 0xe54   :  { %v1670_v41 = vrot.slane %v1669_v61, 2  ;;  %v1654_v63 = vadd.f32 %v1653_v60, %v1652_v43 }
 0xe56   :  { %v1655_v51 = vrot.slane %v1654_v63, 1  ;;  %v1671_v35 = vadd.f32 %v1670_v41, %v1669_v61 }
 0xe58   :  { %v1656_v18 = vadd.f32 %v1655_v51, %v1654_v63  ;;  %v1672_v34 = vrot.slane %v1671_v35, 1 }
 0xe5a   :  { %2519 = vpush %v1656_v18  ;;  %v1673_v37 = vadd.f32 %v1672_v34, %v1671_v35 }
 0xe5c   :  { %2521 = vpush %v1673_v37 }
 0xe8b   :  { %s2520_s4 = spop %2519 }
 0xe8c   :  { %s1658_s26 = smul.f32 0.00024414063, %s2520_s4 }
 0xe8d   :  { %s2522_s27 = spop %2521 }
 0xe8e   :  { %s1676_s28 = smul.f32 %s1658_s26, %s1658_s26  ;;  %v1697_v39 = vstv %s1658_s26 }
 0xe8f   :  { %s1675_s30 = smul.f32 0.00024414063, %s2522_s27 }
 0xe91   :  { %s1677_s14 = ssub.f32 %s1675_s30, %s1676_s28 }
 0xe93   :  { %s1678_s3 = smax.f32 %s2691_s17, %s1677_s14 }
 0xe94   :  { %s1679_s0 = sadd.f32 1e-05, %s1678_s3 }
 0xe96   :  { %v1680_v40 = vstv %s1679_s0 }
 0xe97   :  { %2612 = vrsqrt.f32 %v1680_v40  ;;  %vm1687_vm8 = vweird.f32 %v1680_v40 }
 0xe9d   :  { %v2613_v17 = vpop.eup %2612 }
 0xe9e   :  { %v1682_v14 = vmul.f32 %v2613_v17, %v1680_v40  ;;  %vm1688_vm6 = vweird.f32 %v2613_v17 }
 0xe9f   :  { %vm1689_vm9 = vmor %vm1687_vm8, %vm1688_vm6 }
 0xea0   :  { %v1683_v26 = vmul.f32 %v2613_v17, %v1682_v14 }
 0xea2   :  { %v1684_v30 = vmul.f32 0.5, %v1683_v26 }
 0xea4   :  { %v1685_v25 = vsub.f32 1.5, %v1684_v30 }
 0xea6   :  { %v1686_v27 = vmul.f32 %v2613_v17, %v1685_v25 }
 0xea8   :  { %v1690_v20 = vsel %vm1689_vm9, %v2613_v17, %v1686_v27 }
 0xea9   :  { %2523 = vpush %v1690_v20 }
 0xeda   :  { %s2524_s29 = spop %2523 }
 0xedb   :  { %v1692_v32 = vstv %s2524_s29 }
 0xedc   :  { %v1695_v31 = vmul.f32 %v2638_v1, %v1692_v32  ;;  %v1696_v56 = vmul.f32 %v2639_v57, %v1692_v32  ;;  %v1693_v52 = vmul.f32 %v2640_v42, %v1692_v32  ;;  %v1694_v53 = vmul.f32 %v2641_v49, %v1692_v32 }
 0xede   :  { %1739 = vperm.xlu1 %2584, %v1696_v56   ;;  %v1700_v46 = vmul.f32 %v1697_v39, %v1695_v31  ;;  %v1701_v9 = vmul.f32 %v1697_v39, %v1696_v56  ;;  %v1698_v10 = vmul.f32 %v1697_v39, %v1693_v52  ;;  %v1699_v47 = vmul.f32 %v1697_v39, %v1694_v53 }
 0xee0   :  { %1710 = vrot.lane.b32.xlu2 %v1700_v46, %s2689_s24 }
 0xee6   :  { %2587 = vset.pattern.permute.xlu1 %v2693_v36 }
 0xee8   :  { %1712 = vrot.lane.b32.xlu2 %v1701_v9, %s2689_s24  ;;  %v2644_v9 = vld [vmem:[%s3606_s6] sm:$0xff] }
 0xef0   :  { %1706 = vrot.lane.b32.xlu2 %v1698_v10, %s2689_s24  ;;  %v2647_v10 = vld [vmem:[%s3606_s6 + $0x28] sm:$0xff] }
 0xef8   :  { %1708 = vrot.lane.b32.xlu2 %v1699_v47, %s2689_s24 }
 0xf00   :  { %1734 = vperm.xlu2 %2583, %v1695_v31  }
 0xf08   :  { %1724 = vperm.xlu2 %2583, %v1693_v52   ;;  %v2646_v52 = vld [vmem:[%s3606_s6 + $0x8] sm:$0xff] }
 0xf10   :  { %1729 = vperm.xlu2 %2583, %v1694_v53  }
 0xf18   :  { %2586 = vset.pattern.permute.xlu2 %v2693_v36 }
 0xf3a   :  { %v1711_v6 = vpop.permute.xlu2 %1710 }
 0xf3b   :  { %v1720_v50 = vsub.f32 %v2638_v1, %v1711_v6  ;;  %v2642_v1 = vld [vmem:[%s3606_s6 + $0x10] sm:$0xff] }
 0xf3d   :  { %1758 = vperm.xlu0 %2585, %v1720_v50  }
 0xf42   :  { %v1713_v54 = vpop.permute.xlu2 %1712 }
 0xf43   :  { %v1721_v3 = vsub.f32 %v2639_v57, %v1713_v54 }
 0xf45   :  { %1763 = vperm.xlu2 %2586, %v1721_v3   ;;  %2588 = vset.pattern.permute.xlu0 %v2692_v23 }
 0xf4a   :  { %v1707_v58 = vpop.permute.xlu2 %1706 }
 0xf4b   :  { %v1718_v33 = vsub.f32 %v2640_v42, %v1707_v58  ;;  %v2645_v42 = vld [vmem:[%s3606_s6 + $0x20] sm:$0xff] }
 0xf4d   :  { %1748 = vperm.xlu1 %2587, %v1718_v33  }
 0xf50   :  { %v1740_v59 = vpop.permute.xlu1 %1739 }
 0xf51   :  { %v1745_v22 = vmul.f32 %v1740_v59, %v3380_v55 }
 0xf52   :  { %v1709_v45 = vpop.permute.xlu2 %1708 }
 0xf53   :  { %v1719_v62 = vsub.f32 %v2641_v49, %v1709_v45 }
 0xf55   :  { %1753 = vperm.xlu2 %2586, %v1719_v62  }
 0xf5a   :  { %v1735_v38 = vpop.permute.xlu2 %1734 }
 0xf5b   :  { %v1744_v61 = vmul.f32 %v1735_v38, %v3369_v44 }
 0xf5d   :  { %2589 = vset.pattern.permute.xlu2 %v2692_v23 }
 0xf62   :  { %v1725_v15 = vpop.permute.xlu2 %1724 }
 0xf63   :  { %v1742_v55 = vmul.f32 %v1725_v15, %v3367_v21 }
 0xf6a   :  { %v1730_v24 = vpop.permute.xlu2 %1729 }
 0xf6b   :  { %v1743_v17 = vmul.f32 %v1730_v24, %v3365_v48  ;;  %v2643_v48 = vld [vmem:[%s3606_s6 + $0x18] sm:$0xff] }
 0xf9f   :  { %v1764_v43 = vpop.permute.xlu2 %1763 }
 0xfa0   :  { %v1769_v60 = vadd.f32 %v1764_v43, %v1745_v22 }
 0xfa2   :  { %v1773_v63 = vpack.c.bf16 %v1769_v60, %v1769_v60 }
 0xfa4   :  { %v1781_v18 = vunpack.c.l.b16 %v1773_v63 }
 0xfaf   :  { %v1759_v41 = vpop.permute.xlu0 %1758  ;;  %v1754_v40 = vpop.permute.xlu2 %1753 }
 0xfb0   :  { %v1768_v51 = vadd.f32 %v1759_v41, %v1744_v61  ;;  %v1767_v14 = vadd.f32 %v1754_v40, %v1743_v17 }
 0xfb2   :  { %v1772_v35 = vpack.c.bf16 %v1768_v51, %v1768_v51  ;;  %v1771_v44 = vpack.c.bf16 %v1767_v14, %v1767_v14 }
 0xfb4   :  { %v1780_v34 = vunpack.c.l.b16 %v1772_v35  ;;  %v1779_v27 = vunpack.c.l.b16 %v1771_v44 }
 0xfb6   :  { %v1783_v37 = vpack.c.b16 %v1781_v18, %v1780_v34 }
 0xfb8   :  { %1796 = vrot.lane.b32.xlu2 %v1783_v37, %s2688_s23  ;;  %1786 = vrot.lane.b32.xlu1 %v1783_v37, %s2689_s24 }
 0xfb9   :  { %1812 = vmatpush.bf16.msra.mxu3 %v1783_v37 }
 0xfbf   :  { %v1749_v26 = vpop.permute.xlu1 %1748 }
 0xfc0   :  { %v1766_v30 = vadd.f32 %v1749_v26, %v1742_v55 }
 0xfc2   :  { %v1770_v25 = vpack.c.bf16 %v1766_v30, %v1766_v30 }
 0xfc4   :  { %v1778_v20 = vunpack.c.l.b16 %v1770_v25 }
 0xfc6   :  { %v1782_v32 = vpack.c.b16 %v1779_v27, %v1778_v20 }
 0xfc8   :  { %1794 = vrot.lane.b32.xlu0 %v1782_v32, %s2688_s23  ;;  %1784 = vrot.lane.b32.xlu1 %v1782_v32, %s2689_s24 }
 0xfc9   :  { %1813 = vmatpush.bf16.msra.mxu3 %v1782_v32 }
 0xfcc   :  { %2440 = vmatmul.msk.bf16.vlgmr.msra.gmra.mxu3 %vm440_vm7, %v2642_v1 }
 0xfdc   :  { %2441 = vmatmul.msk.bf16.gmra.mxu3 %vm440_vm7, %v2643_v48 }
0x1012   :  { %v1797_v21 = vpop.permute.xlu2 %1796 }
0x1013   :  { %v1802_v31 = vsel %vm127_vm1, %v1797_v21, 0 }
0x1014   :  { %1850 = vmatpush.bf16.msrb.mxu1 %v1802_v31 }
0x102a   :  { %v1787_v57 = vpop.permute.xlu1 %1786 }
0x102b   :  { %2443 = vmatpush.bf16.msk.msrb.mxu0 %vm2806_vm3, %v1787_v57 }
0x103a   :  { %v1795_v56 = vpop.permute.xlu0 %1794  ;;  %v1785_v39 = vpop.permute.xlu1 %1784 }
0x103b   :  { %v1799_v46 = vsel %vm127_vm1, %v1795_v56, 0  ;;  %2445 = vmatpush.bf16.msk.msrb.mxu0 %vm2806_vm3, %v1785_v39 }
0x103c   :  { %1851 = vmatpush.bf16.msrb.mxu1 %v1799_v46 }
0x103e   :  { %2446 = vmatmul.msk.bf16.vlgmr.msrb.gmra.mxu0 %vm440_vm7, %v2644_v9 }
0x103f   :  { %2448 = vmatmul.msk.bf16.vlgmr.msrb.gmra.mxu1 %vm440_vm7, %v2645_v42 }
0x104e   :  { %2447 = vmatmul.msk.bf16.gmra.mxu0 %vm440_vm7, %v2646_v52 }
0x104f   :  { %2449 = vmatmul.msk.bf16.gmra.mxu1 %vm440_vm7, %v2647_v10  ;;  %v1815_v49 = vpop.f32.mrf.mxu3 }
0x1057   :  { %v1817_v6 = vpop.f32.mrf.mxu3 }
0x105f   :  { %v1820_v33 = vpop.f32.mrf.mxu3 }
0x1067   :  { %v1822_v41 = vpop.f32.mrf.mxu3 }
0x10bb   :  { %v1834_v53 = vpop.f32.mrf.mxu0 }
0x10bc   :  { %v1853_v47 = vpop.f32.mrf.mxu1  ;;  %v1835_v58 = vadd.f32 %v1834_v53, %v1815_v49 }
0x10be   :  { %v1863_v38 = vadd.f32 %v1853_v47, %v1835_v58 }
0x10c0   :  { %v1867_v22 = vadd.f32 %v1863_v38, %v3059_v12 }
0x10c2   :  { %v3450_v51 = vmax.f32 %v1867_v22, 0.0 }
0x10c3   :  { %v1836_v50 = vpop.f32.mrf.mxu0 }
0x10c4   :  { %v1855_v54 = vpop.f32.mrf.mxu1  ;;  %v1837_v3 = vadd.f32 %v1836_v50, %v1817_v6 }
0x10c6   :  { %v1864_v45 = vadd.f32 %v1855_v54, %v1837_v3 }
0x10c8   :  { %v1868_v59 = vadd.f32 %v1864_v45, %v3057_v8 }
0x10ca   :  { %v3448_v61 = vmax.f32 %v1868_v59, 0.0  ;;  %v2650_v59 = vld [vmem:[%s3607_s7] sm:$0xff] }
0x10cb   :  { %v1839_v62 = vpop.f32.mrf.mxu0 }
0x10cc   :  { %v1840_v15 = vadd.f32 %v1839_v62, %v1820_v33  ;;  %v1858_v24 = vpop.f32.mrf.mxu1  ;;  %v1889_v40 = vmul.f32 %v3448_v61, %v3448_v61  ;;  %v1875_v8 = vadd.f32 %v3448_v61, %v3450_v51  ;;  %v2648_v33 = vld [vmem:[%s3607_s7 + $0x10] sm:$0xff]  ;;  %v2649_v62 = vld [vmem:[%s3607_s7 + $0x18] sm:$0xff] }
0x10ce   :  { %v1865_v43 = vadd.f32 %v1858_v24, %v1840_v15 }
0x10d0   :  { %v1869_v60 = vadd.f32 %v1865_v43, %v3061_v13  ;;  %v1888_v13 = vmul.f32 %v3450_v51, %v3450_v51 }
0x10d2   :  { %v3452_v35 = vmax.f32 %v1869_v60, 0.0  ;;  %v1892_v26 = vadd.f32 %v1889_v40, %v1888_v13 }
0x10d3   :  { %v1841_v63 = vpop.f32.mrf.mxu0 }
0x10d4   :  { %v1842_v18 = vadd.f32 %v1841_v63, %v1822_v41  ;;  %v1860_v34 = vpop.f32.mrf.mxu1  ;;  %v1890_v17 = vmul.f32 %v3452_v35, %v3452_v35  ;;  %v1876_v55 = vadd.f32 %v1875_v8, %v3452_v35  ;;  %v2651_v41 = vld [vmem:[%s3607_s7 + $0x8] sm:$0xff] }
0x10d6   :  { %v1866_v37 = vadd.f32 %v1860_v34, %v1842_v18  ;;  %v1893_v25 = vadd.f32 %v1892_v26, %v1890_v17 }
0x10d8   :  { %v1870_v12 = vadd.f32 %v1866_v37, %v3074_v29 }
0x10da   :  { %v3463_v14 = vmax.f32 %v1870_v12, 0.0 }
0x10dc   :  { %v1877_v44 = vadd.f32 %v1876_v55, %v3463_v14  ;;  %v1891_v30 = vmul.f32 %v3463_v14, %v3463_v14 }
0x10de   :  { %1878 = vadd.xlane.f32.xlu2 %v1877_v44  ;;  %v1894_v27 = vadd.f32 %v1893_v25, %v1891_v30 }
0x10e0   :  { %1895 = vadd.xlane.f32.xlu1 %v1894_v27 }
0x1151   :  { %v1879_v29 = vpop.xlane.xlu2 %1878 }
0x1152   :  { %v1880_v20 = vrot.slane %v1879_v29, 4 }
0x1153   :  { %v1896_v32 = vpop.xlane.xlu1 %1895 }
0x1154   :  { %v1881_v1 = vadd.f32 %v1880_v20, %v1879_v29  ;;  %v1897_v48 = vrot.slane %v1896_v32, 4 }
0x1156   :  { %v1882_v21 = vrot.slane %v1881_v1, 2  ;;  %v1898_v31 = vadd.f32 %v1897_v48, %v1896_v32 }
0x1158   :  { %v1899_v57 = vrot.slane %v1898_v31, 2  ;;  %v1883_v56 = vadd.f32 %v1882_v21, %v1881_v1 }
0x115a   :  { %v1884_v39 = vrot.slane %v1883_v56, 1  ;;  %v1900_v46 = vadd.f32 %v1899_v57, %v1898_v31 }
0x115c   :  { %v1885_v9 = vadd.f32 %v1884_v39, %v1883_v56  ;;  %v1901_v42 = vrot.slane %v1900_v46, 1 }
0x115e   :  { %2525 = vpush %v1885_v9  ;;  %v1902_v52 = vadd.f32 %v1901_v42, %v1900_v46 }
0x1160   :  { %2527 = vpush %v1902_v52 }
0x118f   :  { %s2526_s6 = spop %2525 }
0x1190   :  { %s1887_s29 = smul.f32 0.00024414063, %s2526_s6 }
0x1191   :  { %s2528_s13 = spop %2527 }
0x1192   :  { %s1905_s10 = smul.f32 %s1887_s29, %s1887_s29  ;;  %v1926_v15 = vstv %s1887_s29  ;;  %s2694_s29 = smov [#allocation2]  }
0x1193   :  { %s1904_s15 = smul.f32 0.00024414063, %s2528_s13  ;;  %s2259_s13 = sshll.u32 %s2694_s29, 4  ;;  %s2260_s13 = int_to_ptr.vmem [resolvable:$true] %s2259_s13 }
0x1195   :  { %s1906_s16 = ssub.f32 %s1904_s15, %s1905_s10 }
0x1197   :  { %s1907_s18 = smax.f32 %s2691_s17, %s1906_s16 }
0x1198   :  { %s1908_s19 = sadd.f32 1e-05, %s1907_s18 }
0x119a   :  { %v1909_v10 = vstv %s1908_s19 }
0x119b   :  { %2614 = vrsqrt.f32 %v1909_v10  ;;  %vm1916_vm11 = vweird.f32 %v1909_v10 }
0x11a1   :  { %v2615_v49 = vpop.eup %2614 }
0x11a2   :  { %v1911_v53 = vmul.f32 %v2615_v49, %v1909_v10  ;;  %vm1917_vm10 = vweird.f32 %v2615_v49 }
0x11a3   :  { %vm1918_vm12 = vmor %vm1916_vm11, %vm1917_vm10 }
0x11a4   :  { %v1912_v47 = vmul.f32 %v2615_v49, %v1911_v53 }
0x11a6   :  { %v1913_v6 = vmul.f32 0.5, %v1912_v47 }
0x11a8   :  { %v1914_v50 = vsub.f32 1.5, %v1913_v6 }
0x11aa   :  { %v1915_v54 = vmul.f32 %v2615_v49, %v1914_v50 }
0x11ac   :  { %v1919_v3 = vsel %vm1918_vm12, %v2615_v49, %v1915_v54 }
0x11ad   :  { %2529 = vpush %v1919_v3 }
0x11de   :  { %s2530_s20 = spop %2529 }
0x11df   :  { %v1921_v58 = vstv %s2530_s20 }
0x11e0   :  { %v1924_v45 = vmul.f32 %v2648_v33, %v1921_v58  ;;  %v1925_v38 = vmul.f32 %v2649_v62, %v1921_v58  ;;  %v1922_v43 = vmul.f32 %v2650_v59, %v1921_v58  ;;  %v1923_v63 = vmul.f32 %v2651_v41, %v1921_v58 }
0x11e2   :  { %1968 = vperm.xlu2 %2589, %v1925_v38   ;;  %v1929_v24 = vmul.f32 %v1926_v15, %v1924_v45  ;;  %v1930_v22 = vmul.f32 %v1926_v15, %v1925_v38  ;;  %v1927_v60 = vmul.f32 %v1926_v15, %v1922_v43  ;;  %v1928_v18 = vmul.f32 %v1926_v15, %v1923_v63  ;;  %v2655_v38 = vld [vmem:[%s3608_s8 + $0x20] sm:$0xff]  ;;  %v2657_v15 = vld [vmem:[%s3608_s8 + $0x28] sm:$0xff] }
0x11e4   :  { %1939 = vrot.lane.b32.xlu0 %v1929_v24, %s2689_s24 }
0x11ea   :  { %1953 = vperm.xlu2 %2589, %v1922_v43  }
0x11ec   :  { %1941 = vrot.lane.b32.xlu0 %v1930_v22, %s2689_s24 }
0x11f2   :  { %2592 = vset.pattern.permute.xlu2 %v2693_v36 }
0x11f4   :  { %1935 = vrot.lane.b32.xlu0 %v1927_v60, %s2689_s24 }
0x11fc   :  { %1937 = vrot.lane.b32.xlu0 %v1928_v18, %s2689_s24 }
0x1204   :  { %1963 = vperm.xlu0 %2588, %v1924_v45  }
0x120c   :  { %2590 = vset.pattern.permute.xlu0 %v2693_v36 }
0x123c   :  { %v1969_v44 = vpop.permute.xlu2 %1968 }
0x123d   :  { %v1974_v29 = vmul.f32 %v1969_v44, %v3463_v14 }
0x1244   :  { %v1954_v48 = vpop.permute.xlu2 %1953 }
0x1245   :  { %v1971_v56 = vmul.f32 %v1954_v48, %v3450_v51  ;;  %v2652_v51 = vld [vmem:[%s3608_s8 + $0x10] sm:$0xff] }
0x1256   :  { %v1940_v34 = vpop.permute.xlu0 %1939 }
0x1257   :  { %v1949_v37 = vsub.f32 %v2648_v33, %v1940_v34  ;;  %v2654_v33 = vld [vmem:[%s3608_s8] sm:$0xff] }
0x1259   :  { %1987 = vperm.xlu1 %2587, %v1949_v37  }
0x125e   :  { %v1942_v40 = vpop.permute.xlu0 %1941 }
0x125f   :  { %v1950_v8 = vsub.f32 %v2649_v62, %v1942_v40 }
0x1261   :  { %1992 = vperm.xlu0 %2590, %v1950_v8  }
0x1266   :  { %v1936_v12 = vpop.permute.xlu0 %1935 }
0x1267   :  { %v1947_v13 = vsub.f32 %v2650_v59, %v1936_v12 }
0x1269   :  { %2591 = vset.pattern.permute.xlu0 %v2692_v23  ;;  %1977 = vperm.xlu1 %2587, %v1947_v13  }
0x126a   :  { %1958 = vperm.xlu0 %2591, %v1923_v63  }
0x126e   :  { %v1938_v17 = vpop.permute.xlu0 %1937 }
0x126f   :  { %v1948_v55 = vsub.f32 %v2651_v41, %v1938_v17 }
0x1271   :  { %1982 = vperm.xlu2 %2592, %v1948_v55   ;;  %2593 = vset.pattern.permute.xlu1 %v2692_v23 }
0x1272   :  { %2596 = vset.pattern.permute.xlu0 %v2693_v36 }
0x1276   :  { %v1964_v26 = vpop.permute.xlu0 %1963 }
0x1277   :  { %v1973_v25 = vmul.f32 %v1964_v26, %v3452_v35 }
0x1279   :  { %2594 = vset.pattern.permute.xlu2 %v2692_v23 }
0x12cb   :  { %v1988_v30 = vpop.permute.xlu1 %1987  ;;  %v1983_v42 = vpop.permute.xlu2 %1982 }
0x12cc   :  { %v1997_v27 = vadd.f32 %v1988_v30, %v1973_v25 }
0x12ce   :  { %v2001_v32 = vpack.c.bf16 %v1997_v27, %v1997_v27 }
0x12d0   :  { %v2009_v31 = vunpack.c.l.b16 %v2001_v32 }
0x12d3   :  { %v1993_v20 = vpop.permute.xlu0 %1992 }
0x12d4   :  { %v1998_v1 = vadd.f32 %v1993_v20, %v1974_v29 }
0x12d6   :  { %v2002_v21 = vpack.c.bf16 %v1998_v1, %v1998_v1 }
0x12d8   :  { %v2010_v57 = vunpack.c.l.b16 %v2002_v21 }
0x12da   :  { %v2012_v39 = vpack.c.b16 %v2010_v57, %v2009_v31 }
0x12db   :  { %v1978_v46 = vpop.permute.xlu1 %1977 }
0x12dc   :  { %v1995_v9 = vadd.f32 %v1978_v46, %v1971_v56  ;;  %2025 = vrot.lane.b32.xlu0 %v2012_v39, %s2688_s23  ;;  %2015 = vrot.lane.b32.xlu1 %v2012_v39, %s2689_s24  ;;  %v1959_v35 = vpop.permute.xlu0 %1958 }
0x12dd   :  { %2041 = vmatpush.bf16.msrb.mxu2 %v2012_v39  ;;  %v1972_v14 = vmul.f32 %v1959_v35, %v3448_v61  ;;  %v2653_v61 = vld [vmem:[%s3608_s8 + $0x18] sm:$0xff] }
0x12de   :  { %v1999_v52 = vpack.c.bf16 %v1995_v9, %v1995_v9 }
0x12df   :  { %v1996_v10 = vadd.f32 %v1983_v42, %v1972_v14 }
0x12e0   :  { %v2007_v53 = vunpack.c.l.b16 %v1999_v52 }
0x12e1   :  { %v2000_v49 = vpack.c.bf16 %v1996_v10, %v1996_v10 }
0x12e3   :  { %v2008_v47 = vunpack.c.l.b16 %v2000_v49 }
0x12e5   :  { %v2011_v6 = vpack.c.b16 %v2008_v47, %v2007_v53 }
0x12e7   :  { %2023 = vrot.lane.b32.xlu1 %v2011_v6, %s2688_s23  ;;  %2013 = vrot.lane.b32.xlu2 %v2011_v6, %s2689_s24 }
0x12e8   :  { %2042 = vmatpush.bf16.msrb.mxu2 %v2011_v6 }
0x12eb   :  { %2450 = vmatmul.msk.bf16.vlgmr.msrb.gmra.mxu2 %vm440_vm7, %v2652_v51 }
0x12fb   :  { %2451 = vmatmul.msk.bf16.gmra.mxu2 %vm440_vm7, %v2653_v61 }
0x1341   :  { %v2014_v58 = vpop.permute.xlu2 %2013 }
0x134e   :  { %v2016_v50 = vpop.permute.xlu1 %2015  ;;  %v2026_v54 = vpop.permute.xlu0 %2025 }
0x134f   :  { %v2031_v3 = vsel %vm127_vm1, %v2026_v54, 0  ;;  %2453 = vmatpush.bf16.msk.msrb.mxu3 %vm2806_vm3, %v2016_v50 }
0x1350   :  { %2079 = vmatpush.bf16.msra.mxu0 %v2031_v3 }
0x1353   :  { %2455 = vmatpush.bf16.msk.msrb.mxu3 %vm2806_vm3, %v2014_v58 }
0x1356   :  { %2456 = vmatmul.msk.bf16.vlgmr.msrb.gmra.mxu3 %vm440_vm7, %v2654_v33 }
0x1359   :  { %v2024_v45 = vpop.permute.xlu1 %2023 }
0x135a   :  { %v2028_v62 = vsel %vm127_vm1, %v2024_v45, 0 }
0x135b   :  { %2080 = vmatpush.bf16.msra.mxu0 %v2028_v62 }
0x135e   :  { %2458 = vmatmul.msk.bf16.vlgmr.msra.gmra.mxu0 %vm440_vm7, %v2655_v38 }
0x1366   :  { %2457 = vmatmul.msk.bf16.gmra.mxu3 %vm440_vm7, %v2656_v11 }
0x136e   :  { %2459 = vmatmul.msk.bf16.gmra.mxu0 %vm440_vm7, %v2657_v15  ;;  %v2044_v24 = vpop.f32.mrf.mxu2 }
0x1376   :  { %v2046_v22 = vpop.f32.mrf.mxu2 }
0x137e   :  { %v2049_v34 = vpop.f32.mrf.mxu2 }
0x1386   :  { %v2051_v25 = vpop.f32.mrf.mxu2 }
0x13d9   :  { %v2063_v59 = vpop.f32.mrf.mxu3 }
0x13da   :  { %v2064_v18 = vadd.f32 %v2063_v59, %v2044_v24 }
0x13db   :  { %v2082_v43 = vpop.f32.mrf.mxu0 }
0x13dc   :  { %v2092_v8 = vadd.f32 %v2082_v43, %v2064_v18 }
0x13de   :  { %v2096_v26 = vadd.f32 %v2092_v8, %v3207_v0 }
0x13e0   :  { %v3535_v29 = vmax.f32 %v2096_v26, 0.0 }
0x13e1   :  { %v2065_v60 = vpop.f32.mrf.mxu3 }
0x13e2   :  { %v2066_v63 = vadd.f32 %v2065_v60, %v2046_v22  ;;  %v2658_v22 = vld [vmem:[%s3609_s9 + $0x10] sm:$0xff] }
0x13e3   :  { %v2084_v41 = vpop.f32.mrf.mxu0 }
0x13e4   :  { %v2093_v37 = vadd.f32 %v2084_v41, %v2066_v63  ;;  %v2659_v41 = vld [vmem:[%s3609_s9 + $0x18] sm:$0xff] }
0x13e6   :  { %v2097_v17 = vadd.f32 %v2093_v37, %v3205_v5 }
0x13e8   :  { %v3533_v30 = vmax.f32 %v2097_v17, 0.0 }
0x13e9   :  { %v2068_v40 = vpop.f32.mrf.mxu3 }
0x13ea   :  { %v2069_v12 = vadd.f32 %v2068_v40, %v2049_v34  ;;  %v2118_v21 = vmul.f32 %v3533_v30, %v3533_v30  ;;  %v2104_v5 = vadd.f32 %v3533_v30, %v3535_v29  ;;  %v2660_v40 = vld [vmem:[%s3609_s9] sm:$0xff] }
0x13eb   :  { %v2087_v13 = vpop.f32.mrf.mxu0 }
0x13ec   :  { %v2094_v55 = vadd.f32 %v2087_v13, %v2069_v12  ;;  %v2661_v13 = vld [vmem:[%s3609_s9 + $0x8] sm:$0xff] }
0x13ee   :  { %v2098_v44 = vadd.f32 %v2094_v55, %v3209_v19  ;;  %v2117_v19 = vmul.f32 %v3535_v29, %v3535_v29 }
0x13f0   :  { %v3537_v20 = vmax.f32 %v2098_v44, 0.0  ;;  %v2121_v39 = vadd.f32 %v2118_v21, %v2117_v19  ;;  %v110_v21 = vld [vmem:[%s3611_s11 + $0x8] sm:$0xff] }
0x13f1   :  { %v2070_v27 = vpop.f32.mrf.mxu3 }
0x13f2   :  { %v2071_v32 = vadd.f32 %v2070_v27, %v2051_v25  ;;  %v2119_v31 = vmul.f32 %v3537_v20, %v3537_v20  ;;  %v2105_v56 = vadd.f32 %v2104_v5, %v3537_v20 }
0x13f3   :  { %v2089_v1 = vpop.f32.mrf.mxu0 }
0x13f4   :  { %v2095_v48 = vadd.f32 %v2089_v1, %v2071_v32  ;;  %v2122_v35 = vadd.f32 %v2121_v39, %v2119_v31 }
0x13f6   :  { %v2099_v0 = vadd.f32 %v2095_v48, %v3222_v28 }
0x13f8   :  { %v3548_v57 = vmax.f32 %v2099_v0, 0.0 }
0x13fa   :  { %v2106_v46 = vadd.f32 %v2105_v56, %v3548_v57  ;;  %v2120_v9 = vmul.f32 %v3548_v57, %v3548_v57 }
0x13fc   :  { %2107 = vadd.xlane.f32.xlu2 %v2106_v46  ;;  %v2123_v14 = vadd.f32 %v2122_v35, %v2120_v9 }
0x13fe   :  { %2124 = vadd.xlane.f32.xlu0 %v2123_v14 }
0x146f   :  { %v2108_v28 = vpop.xlane.xlu2 %2107 }
0x1470   :  { %v2109_v42 = vrot.slane %v2108_v28, 4 }
0x1471   :  { %v2125_v52 = vpop.xlane.xlu0 %2124 }
0x1472   :  { %v2110_v10 = vadd.f32 %v2109_v42, %v2108_v28  ;;  %v2126_v49 = vrot.slane %v2125_v52, 4 }
0x1474   :  { %v2111_v53 = vrot.slane %v2110_v10, 2  ;;  %v2127_v47 = vadd.f32 %v2126_v49, %v2125_v52 }
0x1476   :  { %v2128_v6 = vrot.slane %v2127_v47, 2  ;;  %v2112_v51 = vadd.f32 %v2111_v53, %v2110_v10 }
0x1478   :  { %v2113_v61 = vrot.slane %v2112_v51, 1  ;;  %v2129_v50 = vadd.f32 %v2128_v6, %v2127_v47 }
0x147a   :  { %v2114_v54 = vadd.f32 %v2113_v61, %v2112_v51  ;;  %v2130_v3 = vrot.slane %v2129_v50, 1  ;;  %v1323_v61 = vld [vmem:[%s3601_s1] sm:$0xff] }
0x147c   :  { %2531 = vpush %v2114_v54  ;;  %v2131_v58 = vadd.f32 %v2130_v3, %v2129_v50 }
0x147e   :  { %2533 = vpush %v2131_v58 }
0x14ad   :  { %s2532_s8 = spop %2531 }
0x14ae   :  { %s2116_s16 = smul.f32 0.00024414063, %s2532_s8  ;;  %s2261_s8 = sshll.u32 %s3612_s12, 4  ;;  %s2262_s8 = int_to_ptr.hbm [resolvable:$true] %s2261_s8 }
0x14af   :  { %s2534_s18 = spop %2533 }
0x14b0   :  { %s2134_s19 = smul.f32 %s2116_s16, %s2116_s16  ;;  %v2155_v18 = vstv %s2116_s16  ;;  %s2695_s16 = smov 128  }
0x14b1   :  { %s2133_s20 = smul.f32 0.00024414063, %s2534_s18  ;;  %s2696_s18 = smov 8  }
0x14b3   :  { %s2135_s2 = ssub.f32 %s2133_s20, %s2134_s19 }
0x14b5   :  { %s2136_s5 = smax.f32 %s2691_s17, %s2135_s2 }
0x14b6   :  { %s2137_s21 = sadd.f32 1e-05, %s2136_s5 }
0x14b8   :  { %v2138_v33 = vstv %s2137_s21 }
0x14b9   :  { %2616 = vrsqrt.f32 %v2138_v33  ;;  %vm2145_vm3 = vweird.f32 %v2138_v33 }
0x14bf   :  { %v2617_v45 = vpop.eup %2616 }
0x14c0   :  { %v2140_v62 = vmul.f32 %v2617_v45, %v2138_v33  ;;  %vm2146_vm1 = vweird.f32 %v2617_v45 }
0x14c1   :  { %vm2147_vm13 = vmor %vm2145_vm3, %vm2146_vm1 }
0x14c2   :  { %v2141_v38 = vmul.f32 %v2617_v45, %v2140_v62 }
0x14c4   :  { %v2142_v11 = vmul.f32 0.5, %v2141_v38 }
0x14c6   :  { %v2143_v15 = vsub.f32 1.5, %v2142_v11 }
0x14c8   :  { %v2144_v24 = vmul.f32 %v2617_v45, %v2143_v15 }
0x14ca   :  { %v2148_v59 = vsel %vm2147_vm13, %v2617_v45, %v2144_v24 }
0x14cb   :  { %2535 = vpush %v2148_v59 }
0x14fc   :  { %s2536_s22 = spop %2535 }
0x14fd   :  { %v2150_v43 = vstv %s2536_s22 }
0x14fe   :  { %v2153_v60 = vmul.f32 %v2658_v22, %v2150_v43  ;;  %v2154_v63 = vmul.f32 %v2659_v41, %v2150_v43  ;;  %v2151_v8 = vmul.f32 %v2660_v40, %v2150_v43  ;;  %v2152_v17 = vmul.f32 %v2661_v13, %v2150_v43 }
0x1500   :  { %2197 = vperm.xlu2 %2594, %v2154_v63   ;;  %v2158_v34 = vmul.f32 %v2155_v18, %v2153_v60  ;;  %v2159_v37 = vmul.f32 %v2155_v18, %v2154_v63  ;;  %v2156_v12 = vmul.f32 %v2155_v18, %v2151_v8  ;;  %v2157_v55 = vmul.f32 %v2155_v18, %v2152_v17 }
0x1502   :  { %2168 = vrot.lane.b32.xlu1 %v2158_v34, %s2689_s24 }
0x1508   :  { %2598 = vset.pattern.permute.xlu2 %v2693_v36 }
0x150a   :  { %2170 = vrot.lane.b32.xlu1 %v2159_v37, %s2689_s24 }
0x1512   :  { %2164 = vrot.lane.b32.xlu1 %v2156_v12, %s2689_s24 }
0x151a   :  { %2166 = vrot.lane.b32.xlu1 %v2157_v55, %s2689_s24 }
0x1522   :  { %2192 = vperm.xlu1 %2593, %v2153_v60  }
0x152a   :  { %2595 = vset.pattern.permute.xlu1 %v2693_v36 }
0x155a   :  { %v2198_v0 = vpop.permute.xlu2 %2197 }
0x155b   :  { %v2203_v9 = vmul.f32 %v2198_v0, %v3548_v57 }
0x1574   :  { %v2169_v26 = vpop.permute.xlu1 %2168 }
0x1575   :  { %v2178_v44 = vsub.f32 %v2658_v22, %v2169_v26 }
0x1577   :  { %2216 = vperm.xlu1 %2595, %v2178_v44  }
0x157c   :  { %v2171_v25 = vpop.permute.xlu1 %2170 }
0x157d   :  { %v2179_v27 = vsub.f32 %v2659_v41, %v2171_v25 }
0x157f   :  { %2221 = vperm.xlu0 %2596, %v2179_v27   ;;  %2597 = vset.pattern.permute.xlu1 %v2692_v23  ;;  %v109_v23 = vld [vmem:[%s3611_s11] sm:$0xff] }
0x1580   :  { %2182 = vperm.xlu1 %2597, %v2151_v8  }
0x1584   :  { %v2165_v32 = vpop.permute.xlu1 %2164 }
0x1585   :  { %v2176_v1 = vsub.f32 %v2660_v40, %v2165_v32 }
0x1587   :  { %2206 = vperm.xlu2 %2598, %v2176_v1  }
0x1588   :  { %2187 = vperm.xlu1 %2597, %v2152_v17  }
0x158c   :  { %v2167_v48 = vpop.permute.xlu1 %2166 }
0x158d   :  { %v2177_v5 = vsub.f32 %v2661_v13, %v2167_v48 }
0x158f   :  { %2600 = vset.pattern.permute.xlu2 %v2690_v4 }
0x1590   :  { %2599 = vset.pattern.permute.xlu1 %v2693_v36  ;;  %1295 = vperm.xlu2 %2600, %v110_v21  }
0x1591   :  { %2211 = vperm.xlu1 %2599, %v2177_v5  }
0x1594   :  { %v2193_v19 = vpop.permute.xlu1 %2192 }
0x1595   :  { %v2202_v36 = vmul.f32 %v2193_v19, %v3537_v20 }
0x1599   :  { %2601 = vset.pattern.permute.xlu1 %v2690_v4 }
0x159a   :  { %1290 = vperm.xlu1 %2601, %v109_v23  }
0x15e1   :  { %v2207_v31 = vpop.permute.xlu2 %2206 }
0x15e9   :  { %v2217_v56 = vpop.permute.xlu1 %2216 }
0x15ea   :  { %v1296_v39 = vpop.permute.xlu2 %1295  ;;  %v2226_v14 = vadd.f32 %v2217_v56, %v2202_v36 }
0x15eb   :  { %v1318_v46 = vadd.f32 %v3360_v7, %v1296_v39 }
0x15ed   :  { %1327 = vst [vmem:[#allocation2 + $0x8] sm:$0xff] %v1318_v46  ;;  %v1320_v10 = vmul.f32 0.5, %v1318_v46 }
0x15ef   :  { %v1321_v49 = vmul.f32 1.442695, %v1320_v10 }
0x15f1   :  { %v2222_v35 = vpop.permute.xlu0 %2221  ;;  %2618 = vpow2.f32 %v1321_v49 }
0x15f2   :  { %v2227_v28 = vadd.f32 %v2222_v35, %v2203_v9  ;;  %v2183_v42 = vpop.permute.xlu1 %2182 }
0x15f3   :  { %v2200_v53 = vmul.f32 %v2183_v42, %v3535_v29 }
0x15f4   :  { %v2229_v52 = vpack.c.bf16 %v2227_v28, %v2226_v14 }
0x15f5   :  { %v2224_v7 = vadd.f32 %v2207_v31, %v2200_v53 }
0x15f6   :  { %2236 = vmatpush.bf16.msra.mxu1 %v2229_v52 }
0x15f7   :  { %v2619_v20 = vpop.eup %2618 }
0x15f8   :  { %v1324_v54 = vmul.f32 %v2619_v20, %v1323_v61 }
0x15fa   :  { %v2188_v4 = vpop.permute.xlu1 %2187 }
0x15fb   :  { %v2201_v47 = vmul.f32 %v2188_v4, %v3533_v30 }
0x1603   :  { %v2212_v6 = vpop.permute.xlu1 %2211 }
0x1604   :  { %v2225_v51 = vadd.f32 %v2212_v6, %v2201_v47 }
0x1606   :  { %v2228_v57 = vpack.c.bf16 %v2225_v51, %v2224_v7 }
0x1608   :  { %2237 = vmatpush.bf16.msra.mxu1 %v2228_v57 }
0x160b   :  { %2460 = vmatmul.msk.bf16.vlgmr.msra.gmra.mxu1 %vm440_vm7, %v3324_v16  ;;  %v2461_v16 = vld [vmem:[%s3601_s1 + $0x8] sm:$0xff] }
0x160c   :  { %v1291_v50 = vpop.permute.xlu1 %1290 }
0x160d   :  { %v1316_v29 = vadd.f32 %v3358_v2, %v1291_v50 }
0x160f   :  { %v1325_v3 = vadd.f32 %v1324_v54, %v1316_v29  ;;  %1326 = vst [vmem:[#allocation2] sm:$0xff] %v1316_v29 }
0x1611   :  { %1328 = vst [vmem:[#allocation2 + $0x10] sm:$0xff] %v1325_v3 }
0x1688   :  { %v2239_v30 = vpop.f32.mrf.mxu1 }
0x1689   :  { %v2240_v58 = vadd.f32 %v2239_v30, %v1291_v50 }
0x168b   :  { %2252 = vst [vmem:[#allocation2 + $0x18] sm:$0xff] %v2240_v58 }
0x1690   :  { %v2241_v33 = vpop.f32.mrf.mxu1 }
0x1691   :  { %v2242_v45 = vadd.f32 %v2241_v33, %v1296_v39 }
0x1693   :  { %v2244_v62 = vmul.f32 0.5, %v2242_v45  ;;  %2253 = vst [vmem:[#allocation2 + $0x20] sm:$0xff] %v2242_v45 }
0x1695   :  { %v2245_v38 = vmul.f32 1.442695, %v2244_v62 }
0x1697   :  { %2620 = vpow2.f32 %v2245_v38 }
0x169d   :  { %v2621_v2 = vpop.eup %2620 }
0x169e   :  { %v2249_v11 = vmul.f32 %v2621_v2, %v2461_v16 }
0x16a0   :  { %v2250_v15 = vadd.f32 %v2249_v11, %v2240_v58 }
0x16a2   :  { %2254 = vst [vmem:[#allocation2 + $0x28] sm:$0xff] %v2250_v15 }
0x16a3   :  { %2267 = dma.vmem_to_hbm [thread:$0]  %s2260_s13, 768, %s2262_s8, [#allocation3], %s2695_s16, %s2695_s16, %s2696_s18  }
0x16a4   :  { %2686 = dma.done.wait [#allocation3], 768  }
0x16a5   :  { %2687 = vsyncadd [#allocation3], 4294966528 }
0x16a6   :  { %2272 = vsyncpa [#allocation3], 1 }

</bundles_post_ra>
